<compile_context>
chip_gen: v7x
topology: tpu7x:2x2x1
jax: 0.10.0
libtpu: 0.0.40
codegen_flags: <defaults>
</compile_context>

<pallas_src>
import functools

import numpy as np
import jax
import jax.numpy as jnp
from jax import lax
from jax.experimental import pallas as pl
from jax.experimental.pallas import tpu as pltpu


# ----------------------------------------------------------------------------
# Parameter slab packing (runs once, outside jit).
# ----------------------------------------------------------------------------
def _np2(x):
    a = np.asarray(x, np.float32)
    if a.ndim == 0:
        a = a.reshape(1, 1)
    elif a.ndim == 1:
        a = a.reshape(1, -1)
    return a


def _pack_rows(entries, width, align=8):
    """Stack named (rows, cols<=width) arrays into one (N, width) f32 slab.

    Each entry is zero-padded to `width` lanes and its start row is aligned to
    `align` sublanes so every in-kernel static slice is tile-aligned.
    Returns (slab, {name: (row_start, row_count)}).
    """
    layout, chunks, n = {}, [], 0
    for name, arr in entries:
        arr = _np2(arr)
        r, c = arr.shape
        assert c <= width, (name, arr.shape, width)
        pad_r = (-r) % align
        arr = np.pad(arr, ((0, pad_r), (0, width - c)))
        layout[name] = (n, r)
        chunks.append(arr)
        n += r + pad_r
    return jnp.asarray(np.concatenate(chunks, axis=0)), layout


def pack_params(params, *, dim, num_heads, cluster_num, n_patches):
    """Pack the logical params into a 64-wide and a 128-wide slab."""
    scale = float((dim // num_heads) ** -0.5)
    ib, cb = params["image_branch"], params["clinic_branch"]

    e64 = [
        ("img_wemb", ib["wemb"]),                                    # (patch_dim, D)
        ("img_bemb", ib["bemb"]),
        ("img_base", np.concatenate([_np2(ib["cls"]), _np2(ib["pos"])], 0)),   # [cls; pos]
        ("sia_ws1", ib["ws1"]),                                      # (D, 32) zero-padded to 64 lanes
        ("sia_bs1", ib["bs1"]),
        ("sia_ws2", ib["ws2"]),
        ("sia_bs2", ib["bs2"]),
        ("cli_w", cb["w"]),
        # clinic Linear bias folded into the pos rows (cls row untouched):
        ("cli_base", np.concatenate([_np2(cb["cls"]), _np2(cb["pos"]) + _np2(cb["b"])], 0)),
    ]
    # Trace-time constant per-cluster pooling selector (C, C*P): row c is 1 on patches of cluster c.
    sel = np.kron(np.eye(cluster_num, dtype=np.float32),
                  np.ones((1, n_patches), np.float32))
    e128 = [("sel", sel)]

    for s, fk, hk in (("i", "image_CA", "image_head"), ("c", "clinic_CA", "clinic_head")):
        fp, hp = params[fk], params[hk]
        e64 += [
            (s + "n1g", fp["n1g"]), (s + "n1b", fp["n1b"]),
            (s + "wq", _np2(fp["wq"]) * scale), (s + "bq", _np2(fp["bq"]) * scale),  # scale folded
            (s + "wp", fp["wp"]), (s + "bp", fp["bp"]),
            (s + "n2g", fp["n2g"]), (s + "n2b", fp["n2b"]),
            (s + "w2", fp["w2"]), (s + "b2", fp["b2"]),
            (s + "hg", hp["g"]), (s + "hb", hp["b"]),
            (s + "hw", hp["w"]), (s + "hbias", hp["bias"]),
        ]
        e128 += [
            (s + "wkv", fp["wkv"]), (s + "bkv", fp["bkv"]),
            (s + "w1", fp["w1"]), (s + "b1", fp["b1"]),
        ]

    w64, lay64 = _pack_rows(e64, 64)
    w128, lay128 = _pack_rows(e128, 128)
    return w64, w128, lay64, lay128


# ----------------------------------------------------------------------------
# Single fused kernel: the entire Muti_Modal forward -> (1, 1) prediction.
# ----------------------------------------------------------------------------
def muti_modal_kernel(x_ref, c_ref, w64_ref, w128_ref, pred_ref,
                      img_tok_ref, cli_tok_ref, *,
                      lay64, lay128, num_heads, cluster_num, n_patches,
                      clinic_dim, dim):
    hd = dim // num_heads
    f32, bf16 = jnp.float32, jnp.bfloat16

    def g64(name):                         # static, 8-aligned slab row slice
        s, n = lay64[name]
        return w64_ref[s:s + n, :]

    def g128(name):
        s, n = lay128[name]
        return w128_ref[s:s + n, :]

    def g64s(name):                        # scalar parameter stored at (row, lane 0)
        s, _ = lay64[name]
        return w64_ref[s:s + 1, 0:1]

    def mxu(a, b):                         # bf16 MXU operands, f32 accumulation
        return jnp.dot(a.astype(bf16), b.astype(bf16), preferred_element_type=f32)

    def layer_norm(t, g, b, eps):
        mu = jnp.mean(t, axis=-1, keepdims=True)
        var = jnp.mean(jnp.square(t - mu), axis=-1, keepdims=True)
        return (t - mu) * lax.rsqrt(var + eps) * g + b

    def gelu(x):
        # TODO(synk): torch nn.GELU() is erf-exact; tanh-approx used here (Mosaic-safe elementwise).
        return 0.5 * x * (1.0 + jnp.tanh(0.7978845608028654 * (x + 0.044715 * x * x * x)))

    # ---- Image_Branch: patch embedding + gated (siamese) attention pool ------
    emb = mxu(x_ref[...], g64("img_wemb")) + g64("img_bemb")                 # (C*P, D)
    h = jnp.tanh(mxu(emb, g64("sia_ws1")) + g64("sia_bs1"))                  # (C*P, 64) lanes>=32 are 0
    a = jnp.sum(h * g64("sia_ws2"), axis=-1, keepdims=True) + g64s("sia_bs2")  # (C*P, 1)
    # per-cluster A^T @ rep as one matmul with a constant block-diagonal selector
    sel = g128("sel")[:, 0:cluster_num * n_patches]                          # (C, C*P) of 0/1
    pooled = mxu(sel, a * emb)                                               # (C, D)
    base_i = g64("img_base")                                                 # [cls; pos]  (C+1, D)
    img_tok_ref[0:1, :] = base_i[0:1, :]
    img_tok_ref[1:cluster_num + 1, :] = base_i[1:cluster_num + 1, :] + pooled

    # ---- Clinic_Branch: Linear(1, D) == outer product (bias folded into base) -
    c_emb = c_ref[...] * g64("cli_w")                                        # (Nc, D)
    base_c = g64("cli_base")                                                 # [cls; pos+b] (Nc+1, D)
    cli_tok_ref[0:1, :] = base_c[0:1, :]
    cli_tok_ref[1:clinic_dim + 1, :] = base_c[1:clinic_dim + 1, :] + c_emb

    img_tokens = img_tok_ref[...]                                            # (C+1, D)
    cli_tokens = cli_tok_ref[...]                                            # (Nc+1, D)

    # ---- Fusion_Block: cross attention (kv from kv_tok, q from q_tok) + MLP --
    def fusion_block(kv_tok, q_tok, s):
        xn = layer_norm(kv_tok, g64(s + "n1g"), g64(s + "n1b"), 1e-5)
        qn = layer_norm(q_tok, g64(s + "n1g"), g64(s + "n1b"), 1e-5)
        # full-width projections; attention scale is pre-folded into wq/bq
        q_all = mxu(qn, g64(s + "wq")) + g64(s + "bq")                       # (Nq, D)
        kv_all = mxu(xn, g128(s + "wkv")) + g128(s + "bkv")                  # (Nk, 2D): [K | V]
        q16 = q_all.astype(bf16)
        kv16 = kv_all.astype(bf16)
        wp16 = g64(s + "wp").astype(bf16)                                    # (D, D)
        y = g64(s + "bp")                                                    # proj bias, broadcasts
        for hh in range(num_heads):                                          # static unroll (H = 4)
            lo, hi = hh * hd, (hh + 1) * hd
            qh = q16[:, lo:hi]                                               # (Nq, hd)
            kh = kv16[:, lo:hi]                                              # (Nk, hd)
            vh = kv16[:, dim + lo:dim + hi]                                  # (Nk, hd)
            sc = lax.dot_general(qh, kh, (((1,), (1,)), ((), ())),
                                 preferred_element_type=f32)                 # (Nq, Nk)
            sc = sc - jnp.max(sc, axis=-1, keepdims=True)
            e = jnp.exp(sc)
            p = e * pl.reciprocal(jnp.sum(e, axis=-1, keepdims=True), approx=True)
            oh = jnp.dot(p.astype(bf16), vh, preferred_element_type=f32)     # (Nq, hd)
            # head-concat folded into the output-projection accumulation:
            y = y + jnp.dot(oh.astype(bf16), wp16[lo:hi, :],
                            preferred_element_type=f32)                      # (Nq, D)
        yn = layer_norm(y, g64(s + "n2g"), g64(s + "n2b"), 1e-5)
        h1 = mxu(yn, g128(s + "w1")) + g128(s + "b1")                        # (Nq, hidden)
        m = mxu(gelu(h1), g64(s + "w2")) + g64(s + "b2")                     # (Nq, D)
        return y + m                                                         # dropout / droppath = identity

    # ---- classification head on the cls (row-0) token ------------------------
    def head(feat, s):
        cls_n = layer_norm(feat[0:1, :], g64(s + "hg"), g64(s + "hb"), 1e-6)
        logit = jnp.sum(cls_n * g64(s + "hw"), axis=-1, keepdims=True) + g64s(s + "hbias")
        return jax.nn.sigmoid(logit)

    image_feat = fusion_block(img_tokens, cli_tokens, "i")                   # (Nc+1, D)
    clinic_feat = fusion_block(cli_tokens, img_tokens, "c")                  # (C+1, D)
    pred_ref[...] = 0.5 * (head(image_feat, "i") + head(clinic_feat, "c"))


# ----------------------------------------------------------------------------
# Wrapper: single pallas_call, no grid, 4 inputs, everything resident in VMEM.
# ----------------------------------------------------------------------------
def muti_modal_forward(x, clinic, w64, w128, *, lay64, lay128, num_heads=4):
    C, _, P, Din = x.shape
    Nc = clinic.size                       # clinic is (1, Nc)
    dim = w64.shape[1]
    kernel = functools.partial(
        muti_modal_kernel, lay64=lay64, lay128=lay128, num_heads=num_heads,
        cluster_num=C, n_patches=P, clinic_dim=Nc, dim=dim)
    return pl.pallas_call(
        kernel,
        out_shape=jax.ShapeDtypeStruct((1, 1), jnp.float32),
        scratch_shapes=[pltpu.VMEM((C + 1, dim), jnp.float32),    # image tokens [cls; pos+pooled]
                        pltpu.VMEM((Nc + 1, dim), jnp.float32)],  # clinic tokens [cls; pos+emb]
    )(x.reshape(C * P, Din), clinic.reshape(-1, 1), w64, w128)


# ----------------------------------------------------------------------------
# Deterministic logical parameter init (shapes follow Muti_Modal.__init__).
# ----------------------------------------------------------------------------
def init_params(key, *, cluster_num=10, patch_dim=128, clinic_dim=16,
                dim=64, num_heads=4, mlp_ratio=2, num_classes=1):
    assert num_classes == 1
    keys = iter(jax.random.split(key, 64))
    hidden = dim * mlp_ratio

    def nrm(shape, s=0.02):
        return s * jax.random.normal(next(keys), shape, dtype=jnp.float32)

    params = {
        "image_branch": dict(
            wemb=nrm((patch_dim, dim)), bemb=nrm((dim,)),
            ws1=nrm((dim, 32)), bs1=nrm((32,)),
            ws2=nrm((32,)), bs2=nrm(()),                       # Linear(32, 1)
            cls=nrm((1, dim), 1.0), pos=nrm((cluster_num, dim), 1.0),
        ),
        "clinic_branch": dict(
            w=nrm((dim,)), b=nrm((dim,)),                      # Linear(1, dim)
            cls=nrm((1, dim), 1.0), pos=nrm((clinic_dim, dim), 1.0),
        ),
    }

    def fusion():
        return dict(
            n1g=jnp.ones((dim,), jnp.float32), n1b=jnp.zeros((dim,), jnp.float32),
            wq=nrm((dim, dim)), bq=nrm((dim,)),
            wkv=nrm((dim, 2 * dim)), bkv=nrm((2 * dim,)),      # joint kv Linear
            wp=nrm((dim, dim)), bp=nrm((dim,)),
            n2g=jnp.ones((dim,), jnp.float32), n2b=jnp.zeros((dim,), jnp.float32),
            w1=nrm((dim, hidden)), b1=nrm((hidden,)),
            w2=nrm((hidden, dim)), b2=nrm((dim,)),
        )

    def head():
        return dict(g=jnp.ones((dim,), jnp.float32), b=jnp.zeros((dim,), jnp.float32),
                    w=nrm((dim,)), bias=nrm(()))

    params["image_CA"] = fusion()
    params["clinic_CA"] = fusion()
    params["image_head"] = head()
    params["clinic_head"] = head()
    return params


if __name__ == "__main__":
    cluster_num, n_patches, patch_dim = 10, 8, 128
    clinic_dim, dim, num_heads, mlp_ratio = 16, 64, 4, 2

    key = jax.random.PRNGKey(0)
    kx, kc, kp = jax.random.split(key, 3)
    x = jax.random.normal(kx, (cluster_num, 1, n_patches, patch_dim), dtype=jnp.float32)
    clinic = jax.random.normal(kc, (1, clinic_dim), dtype=jnp.float32)

    params = init_params(kp, cluster_num=cluster_num, patch_dim=patch_dim,
                         clinic_dim=clinic_dim, dim=dim, num_heads=num_heads,
                         mlp_ratio=mlp_ratio)
    w64, w128, lay64, lay128 = pack_params(params, dim=dim, num_heads=num_heads,
                                           cluster_num=cluster_num, n_patches=n_patches)

    fwd = jax.jit(functools.partial(muti_modal_forward, lay64=lay64, lay128=lay128,
                                    num_heads=num_heads))
    pred = jax.block_until_ready(fwd(x, clinic, w64, w128))
    assert pred.shape == (1, 1)
    assert bool(jnp.all(jnp.isfinite(pred)))
    print("KERNEL_OK")
</pallas_src>

<mosaic_0001>
module attributes {stable_mosaic.version = 11 : i64} {
  func.func @muti_modal_kernel(%arg0: memref<80x128xf32, #tpu.memory_space<vmem>>, %arg1: memref<16x1xf32, #tpu.memory_space<vmem>>, %arg2: memref<960x64xf32, #tpu.memory_space<vmem>>, %arg3: memref<304x128xf32, #tpu.memory_space<vmem>>, %arg4: memref<1x1xf32, #tpu.memory_space<vmem>>, %arg5: memref<11x64xf32, #tpu.memory_space<vmem>>, %arg6: memref<17x64xf32, #tpu.memory_space<vmem>>) attributes {dimension_semantics = [], scalar_prefetch = 0 : i64, scratch_operands = 2 : i64, tpu.core_type = #tpu.core_type<tc>} {
    %c0 = arith.constant 0 : index
    %c0_0 = arith.constant 0 : index
    %0 = vector.load %arg0[%c0, %c0_0] : memref<80x128xf32, #tpu.memory_space<vmem>>, vector<80x128xf32>
    %c0_1 = arith.constant 0 : index
    %c0_2 = arith.constant 0 : index
    %1 = vector.load %arg2[%c0_1, %c0_2] : memref<960x64xf32, #tpu.memory_space<vmem>>, vector<128x64xf32>
    %2 = arith.truncf %0 : vector<80x128xf32> to vector<80x128xbf16>
    %3 = arith.truncf %1 : vector<128x64xf32> to vector<128x64xbf16>
    %cst = arith.constant dense<0.000000e+00> : vector<80x64xf32>
    %4 = tpu.matmul %2, %3, %cst {dimension_numbers = #tpu.dot_dimension_numbers<[1], [0], [0], [1], [0, 0, 1, 1], [], []>} : vector<80x128xbf16>, vector<128x64xbf16>, vector<80x64xf32> -> vector<80x64xf32>
    %c128 = arith.constant 128 : index
    %c0_3 = arith.constant 0 : index
    %5 = vector.load %arg2[%c128, %c0_3] : memref<960x64xf32, #tpu.memory_space<vmem>>, vector<1x64xf32>
    %6 = vector.broadcast %5 : vector<1x64xf32> to vector<80x64xf32>
    %7 = arith.addf %4, %6 : vector<80x64xf32>
    %c152 = arith.constant 152 : index
    %c0_4 = arith.constant 0 : index
    %8 = vector.load %arg2[%c152, %c0_4] : memref<960x64xf32, #tpu.memory_space<vmem>>, vector<64x64xf32>
    %9 = arith.truncf %7 : vector<80x64xf32> to vector<80x64xbf16>
    %10 = arith.truncf %8 : vector<64x64xf32> to vector<64x64xbf16>
    %cst_5 = arith.constant dense<0.000000e+00> : vector<80x64xf32>
    %11 = tpu.matmul %9, %10, %cst_5 {dimension_numbers = #tpu.dot_dimension_numbers<[1], [0], [0], [1], [0, 0, 1, 1], [], []>} : vector<80x64xbf16>, vector<64x64xbf16>, vector<80x64xf32> -> vector<80x64xf32>
    %c216 = arith.constant 216 : index
    %c0_6 = arith.constant 0 : index
    %12 = vector.load %arg2[%c216, %c0_6] : memref<960x64xf32, #tpu.memory_space<vmem>>, vector<1x64xf32>
    %13 = vector.broadcast %12 : vector<1x64xf32> to vector<80x64xf32>
    %14 = arith.addf %11, %13 : vector<80x64xf32>
    %15 = math.tanh %14 : vector<80x64xf32>
    %c224 = arith.constant 224 : index
    %c0_7 = arith.constant 0 : index
    %16 = vector.load %arg2[%c224, %c0_7] : memref<960x64xf32, #tpu.memory_space<vmem>>, vector<1x64xf32>
    %17 = vector.broadcast %16 : vector<1x64xf32> to vector<80x64xf32>
    %18 = arith.mulf %15, %17 : vector<80x64xf32>
    %cst_8 = arith.constant dense<0.000000e+00> : vector<80xf32>
    %19 = vector.multi_reduction <add>, %18, %cst_8 [1] : vector<80x64xf32> to vector<80xf32>
    %20 = vector.shape_cast %19 : vector<80xf32> to vector<80x1xf32>
    %c232 = arith.constant 232 : index
    %c0_9 = arith.constant 0 : index
    %21 = vector.load %arg2[%c232, %c0_9] : memref<960x64xf32, #tpu.memory_space<vmem>>, vector<1x1xf32>
    %22 = vector.broadcast %21 : vector<1x1xf32> to vector<80x1xf32>
    %23 = arith.addf %20, %22 : vector<80x1xf32>
    %c0_10 = arith.constant 0 : index
    %c0_11 = arith.constant 0 : index
    %24 = vector.load %arg3[%c0_10, %c0_11] : memref<304x128xf32, #tpu.memory_space<vmem>>, vector<10x128xf32>
    %25 = vector.extract_strided_slice %24 {offsets = [0, 0], sizes = [10, 80], strides = [1, 1]} : vector<10x128xf32> to vector<10x80xf32>
    %26 = vector.broadcast %23 : vector<80x1xf32> to vector<80x64xf32>
    %27 = arith.mulf %26, %7 : vector<80x64xf32>
    %28 = arith.truncf %25 : vector<10x80xf32> to vector<10x80xbf16>
    %29 = arith.truncf %27 : vector<80x64xf32> to vector<80x64xbf16>
    %cst_12 = arith.constant dense<0.000000e+00> : vector<10x64xf32>
    %30 = tpu.matmul %28, %29, %cst_12 {dimension_numbers = #tpu.dot_dimension_numbers<[1], [0], [0], [1], [0, 0, 1, 1], [], []>} : vector<10x80xbf16>, vector<80x64xbf16>, vector<10x64xf32> -> vector<10x64xf32>
    %c136 = arith.constant 136 : index
    %c0_13 = arith.constant 0 : index
    %31 = vector.load %arg2[%c136, %c0_13] : memref<960x64xf32, #tpu.memory_space<vmem>>, vector<11x64xf32>
    %32 = vector.extract_strided_slice %31 {offsets = [0, 0], sizes = [1, 64], strides = [1, 1]} : vector<11x64xf32> to vector<1x64xf32>
    %c0_14 = arith.constant 0 : index
    %c0_15 = arith.constant 0 : index
    %33 = vector.load %arg5[%c0_14, %c0_15] : memref<11x64xf32, #tpu.memory_space<vmem>>, vector<1x64xf32>
    tpu.vector_store %arg5[%c0_14, %c0_15], %32 {strides = array<i32>} : memref<11x64xf32, #tpu.memory_space<vmem>>, vector<1x64xf32>,
    %34 = vector.extract_strided_slice %31 {offsets = [1, 0], sizes = [10, 64], strides = [1, 1]} : vector<11x64xf32> to vector<10x64xf32>
    %35 = arith.addf %34, %30 : vector<10x64xf32>
    %c1 = arith.constant 1 : index
    %c0_16 = arith.constant 0 : index
    %36 = vector.load %arg5[%c1, %c0_16] : memref<11x64xf32, #tpu.memory_space<vmem>>, vector<10x64xf32>
    tpu.vector_store %arg5[%c1, %c0_16], %35 {strides = array<i32>} : memref<11x64xf32, #tpu.memory_space<vmem>>, vector<10x64xf32>,
    %c0_17 = arith.constant 0 : index
    %c0_18 = arith.constant 0 : index
    %37 = vector.load %arg1[%c0_17, %c0_18] : memref<16x1xf32, #tpu.memory_space<vmem>>, vector<16x1xf32>
    %c240 = arith.constant 240 : index
    %c0_19 = arith.constant 0 : index
    %38 = vector.load %arg2[%c240, %c0_19] : memref<960x64xf32, #tpu.memory_space<vmem>>, vector<1x64xf32>
    %39 = vector.broadcast %37 : vector<16x1xf32> to vector<16x64xf32>
    %40 = vector.broadcast %38 : vector<1x64xf32> to vector<16x64xf32>
    %41 = arith.mulf %39, %40 : vector<16x64xf32>
    %c248 = arith.constant 248 : index
    %c0_20 = arith.constant 0 : index
    %42 = vector.load %arg2[%c248, %c0_20] : memref<960x64xf32, #tpu.memory_space<vmem>>, vector<17x64xf32>
    %43 = vector.extract_strided_slice %42 {offsets = [0, 0], sizes = [1, 64], strides = [1, 1]} : vector<17x64xf32> to vector<1x64xf32>
    %c0_21 = arith.constant 0 : index
    %c0_22 = arith.constant 0 : index
    %44 = vector.load %arg6[%c0_21, %c0_22] : memref<17x64xf32, #tpu.memory_space<vmem>>, vector<1x64xf32>
    tpu.vector_store %arg6[%c0_21, %c0_22], %43 {strides = array<i32>} : memref<17x64xf32, #tpu.memory_space<vmem>>, vector<1x64xf32>,
    %45 = vector.extract_strided_slice %42 {offsets = [1, 0], sizes = [16, 64], strides = [1, 1]} : vector<17x64xf32> to vector<16x64xf32>
    %46 = arith.addf %45, %41 : vector<16x64xf32>
    %c1_23 = arith.constant 1 : index
    %c0_24 = arith.constant 0 : index
    %47 = vector.load %arg6[%c1_23, %c0_24] : memref<17x64xf32, #tpu.memory_space<vmem>>, vector<16x64xf32>
    tpu.vector_store %arg6[%c1_23, %c0_24], %46 {strides = array<i32>} : memref<17x64xf32, #tpu.memory_space<vmem>>, vector<16x64xf32>,
    %c0_25 = arith.constant 0 : index
    %c0_26 = arith.constant 0 : index
    %48 = vector.load %arg5[%c0_25, %c0_26] : memref<11x64xf32, #tpu.memory_space<vmem>>, vector<11x64xf32>
    %c0_27 = arith.constant 0 : index
    %c0_28 = arith.constant 0 : index
    %49 = vector.load %arg6[%c0_27, %c0_28] : memref<17x64xf32, #tpu.memory_space<vmem>>, vector<17x64xf32>
    %c272 = arith.constant 272 : index
    %c0_29 = arith.constant 0 : index
    %50 = vector.load %arg2[%c272, %c0_29] : memref<960x64xf32, #tpu.memory_space<vmem>>, vector<1x64xf32>
    %c280 = arith.constant 280 : index
    %c0_30 = arith.constant 0 : index
    %51 = vector.load %arg2[%c280, %c0_30] : memref<960x64xf32, #tpu.memory_space<vmem>>, vector<1x64xf32>
    %cst_31 = arith.constant dense<0.000000e+00> : vector<11xf32>
    %52 = vector.multi_reduction <add>, %48, %cst_31 [1] : vector<11x64xf32> to vector<11xf32>
    %53 = vector.shape_cast %52 : vector<11xf32> to vector<11x1xf32>
    %cst_32 = arith.constant 6.400000e+01 : f32
    %54 = vector.broadcast %cst_32 : f32 to vector<11x1xf32>
    %55 = arith.divf %53, %54 : vector<11x1xf32>
    %56 = vector.broadcast %55 : vector<11x1xf32> to vector<11x64xf32>
    %57 = arith.subf %48, %56 : vector<11x64xf32>
    %58 = arith.mulf %57, %57 : vector<11x64xf32>
    %cst_33 = arith.constant dense<0.000000e+00> : vector<11xf32>
    %59 = vector.multi_reduction <add>, %58, %cst_33 [1] : vector<11x64xf32> to vector<11xf32>
    %60 = vector.shape_cast %59 : vector<11xf32> to vector<11x1xf32>
    %cst_34 = arith.constant 6.400000e+01 : f32
    %61 = vector.broadcast %cst_34 : f32 to vector<11x1xf32>
    %62 = arith.divf %60, %61 : vector<11x1xf32>
    %63 = vector.broadcast %55 : vector<11x1xf32> to vector<11x64xf32>
    %64 = arith.subf %48, %63 : vector<11x64xf32>
    %cst_35 = arith.constant 9.99999974E-6 : f32
    %65 = vector.broadcast %cst_35 : f32 to vector<11x1xf32>
    %66 = arith.addf %62, %65 : vector<11x1xf32>
    %67 = math.rsqrt %66 : vector<11x1xf32>
    %68 = vector.broadcast %67 : vector<11x1xf32> to vector<11x64xf32>
    %69 = arith.mulf %64, %68 : vector<11x64xf32>
    %70 = vector.broadcast %50 : vector<1x64xf32> to vector<11x64xf32>
    %71 = arith.mulf %69, %70 : vector<11x64xf32>
    %72 = vector.broadcast %51 : vector<1x64xf32> to vector<11x64xf32>
    %73 = arith.addf %71, %72 : vector<11x64xf32>
    %c272_36 = arith.constant 272 : index
    %c0_37 = arith.constant 0 : index
    %74 = vector.load %arg2[%c272_36, %c0_37] : memref<960x64xf32, #tpu.memory_space<vmem>>, vector<1x64xf32>
    %c280_38 = arith.constant 280 : index
    %c0_39 = arith.constant 0 : index
    %75 = vector.load %arg2[%c280_38, %c0_39] : memref<960x64xf32, #tpu.memory_space<vmem>>, vector<1x64xf32>
    %cst_40 = arith.constant dense<0.000000e+00> : vector<17xf32>
    %76 = vector.multi_reduction <add>, %49, %cst_40 [1] : vector<17x64xf32> to vector<17xf32>
    %77 = vector.shape_cast %76 : vector<17xf32> to vector<17x1xf32>
    %cst_41 = arith.constant 6.400000e+01 : f32
    %78 = vector.broadcast %cst_41 : f32 to vector<17x1xf32>
    %79 = arith.divf %77, %78 : vector<17x1xf32>
    %80 = vector.broadcast %79 : vector<17x1xf32> to vector<17x64xf32>
    %81 = arith.subf %49, %80 : vector<17x64xf32>
    %82 = arith.mulf %81, %81 : vector<17x64xf32>
    %cst_42 = arith.constant dense<0.000000e+00> : vector<17xf32>
    %83 = vector.multi_reduction <add>, %82, %cst_42 [1] : vector<17x64xf32> to vector<17xf32>
    %84 = vector.shape_cast %83 : vector<17xf32> to vector<17x1xf32>
    %cst_43 = arith.constant 6.400000e+01 : f32
    %85 = vector.broadcast %cst_43 : f32 to vector<17x1xf32>
    %86 = arith.divf %84, %85 : vector<17x1xf32>
    %87 = vector.broadcast %79 : vector<17x1xf32> to vector<17x64xf32>
    %88 = arith.subf %49, %87 : vector<17x64xf32>
    %cst_44 = arith.constant 9.99999974E-6 : f32
    %89 = vector.broadcast %cst_44 : f32 to vector<17x1xf32>
    %90 = arith.addf %86, %89 : vector<17x1xf32>
    %91 = math.rsqrt %90 : vector<17x1xf32>
    %92 = vector.broadcast %91 : vector<17x1xf32> to vector<17x64xf32>
    %93 = arith.mulf %88, %92 : vector<17x64xf32>
    %94 = vector.broadcast %74 : vector<1x64xf32> to vector<17x64xf32>
    %95 = arith.mulf %93, %94 : vector<17x64xf32>
    %96 = vector.broadcast %75 : vector<1x64xf32> to vector<17x64xf32>
    %97 = arith.addf %95, %96 : vector<17x64xf32>
    %c288 = arith.constant 288 : index
    %c0_45 = arith.constant 0 : index
    %98 = vector.load %arg2[%c288, %c0_45] : memref<960x64xf32, #tpu.memory_space<vmem>>, vector<64x64xf32>
    %99 = arith.truncf %97 : vector<17x64xf32> to vector<17x64xbf16>
    %100 = arith.truncf %98 : vector<64x64xf32> to vector<64x64xbf16>
    %cst_46 = arith.constant dense<0.000000e+00> : vector<17x64xf32>
    %101 = tpu.matmul %99, %100, %cst_46 {dimension_numbers = #tpu.dot_dimension_numbers<[1], [0], [0], [1], [0, 0, 1, 1], [], []>} : vector<17x64xbf16>, vector<64x64xbf16>, vector<17x64xf32> -> vector<17x64xf32>
    %c352 = arith.constant 352 : index
    %c0_47 = arith.constant 0 : index
    %102 = vector.load %arg2[%c352, %c0_47] : memref<960x64xf32, #tpu.memory_space<vmem>>, vector<1x64xf32>
    %103 = vector.broadcast %102 : vector<1x64xf32> to vector<17x64xf32>
    %104 = arith.addf %101, %103 : vector<17x64xf32>
    %c16 = arith.constant 16 : index
    %c0_48 = arith.constant 0 : index
    %105 = vector.load %arg3[%c16, %c0_48] : memref<304x128xf32, #tpu.memory_space<vmem>>, vector<64x128xf32>
    %106 = arith.truncf %73 : vector<11x64xf32> to vector<11x64xbf16>
    %107 = arith.truncf %105 : vector<64x128xf32> to vector<64x128xbf16>
    %cst_49 = arith.constant dense<0.000000e+00> : vector<11x128xf32>
    %108 = tpu.matmul %106, %107, %cst_49 {dimension_numbers = #tpu.dot_dimension_numbers<[1], [0], [0], [1], [0, 0, 1, 1], [], []>} : vector<11x64xbf16>, vector<64x128xbf16>, vector<11x128xf32> -> vector<11x128xf32>
    %c80 = arith.constant 80 : index
    %c0_50 = arith.constant 0 : index
    %109 = vector.load %arg3[%c80, %c0_50] : memref<304x128xf32, #tpu.memory_space<vmem>>, vector<1x128xf32>
    %110 = vector.broadcast %109 : vector<1x128xf32> to vector<11x128xf32>
    %111 = arith.addf %108, %110 : vector<11x128xf32>
    %112 = arith.truncf %104 : vector<17x64xf32> to vector<17x64xbf16>
    %113 = arith.truncf %111 : vector<11x128xf32> to vector<11x128xbf16>
    %c360 = arith.constant 360 : index
    %c0_51 = arith.constant 0 : index
    %114 = vector.load %arg2[%c360, %c0_51] : memref<960x64xf32, #tpu.memory_space<vmem>>, vector<64x64xf32>
    %115 = arith.truncf %114 : vector<64x64xf32> to vector<64x64xbf16>
    %c424 = arith.constant 424 : index
    %c0_52 = arith.constant 0 : index
    %116 = vector.load %arg2[%c424, %c0_52] : memref<960x64xf32, #tpu.memory_space<vmem>>, vector<1x64xf32>
    %117 = vector.extract_strided_slice %112 {offsets = [0, 0], sizes = [17, 16], strides = [1, 1]} : vector<17x64xbf16> to vector<17x16xbf16>
    %118 = vector.extract_strided_slice %113 {offsets = [0, 0], sizes = [11, 16], strides = [1, 1]} : vector<11x128xbf16> to vector<11x16xbf16>
    %119 = vector.extract_strided_slice %113 {offsets = [0, 64], sizes = [11, 16], strides = [1, 1]} : vector<11x128xbf16> to vector<11x16xbf16>
    %cst_53 = arith.constant dense<0.000000e+00> : vector<17x11xf32>
    %120 = tpu.matmul %117, %118, %cst_53 {dimension_numbers = #tpu.dot_dimension_numbers<[1], [1], [0], [0], [0, 0, 1, 0], [], []>} : vector<17x16xbf16>, vector<11x16xbf16>, vector<17x11xf32> -> vector<17x11xf32>
    %cst_54 = arith.constant dense<0xFF800000> : vector<17xf32>
    %121 = vector.multi_reduction <maximumf>, %120, %cst_54 [1] : vector<17x11xf32> to vector<17xf32>
    %122 = vector.shape_cast %121 : vector<17xf32> to vector<17x1xf32>
    %123 = vector.broadcast %122 : vector<17x1xf32> to vector<17x11xf32>
    %124 = arith.subf %120, %123 : vector<17x11xf32>
    %125 = math.exp %124 : vector<17x11xf32>
    %cst_55 = arith.constant dense<0.000000e+00> : vector<17xf32>
    %126 = vector.multi_reduction <add>, %125, %cst_55 [1] : vector<17x11xf32> to vector<17xf32>
    %127 = vector.shape_cast %126 : vector<17xf32> to vector<17x1xf32>
    %128 = tpu.reciprocal %127 {approx = true} : vector<17x1xf32> -> vector<17x1xf32>
    %129 = vector.broadcast %128 : vector<17x1xf32> to vector<17x11xf32>
    %130 = arith.mulf %125, %129 : vector<17x11xf32>
    %131 = arith.truncf %130 : vector<17x11xf32> to vector<17x11xbf16>
    %cst_56 = arith.constant dense<0.000000e+00> : vector<17x16xf32>
    %132 = tpu.matmul %131, %119, %cst_56 {dimension_numbers = #tpu.dot_dimension_numbers<[1], [0], [0], [1], [0, 0, 1, 1], [], []>} : vector<17x11xbf16>, vector<11x16xbf16>, vector<17x16xf32> -> vector<17x16xf32>
    %133 = arith.truncf %132 : vector<17x16xf32> to vector<17x16xbf16>
    %134 = vector.extract_strided_slice %115 {offsets = [0, 0], sizes = [16, 64], strides = [1, 1]} : vector<64x64xbf16> to vector<16x64xbf16>
    %cst_57 = arith.constant dense<0.000000e+00> : vector<17x64xf32>
    %135 = tpu.matmul %133, %134, %cst_57 {dimension_numbers = #tpu.dot_dimension_numbers<[1], [0], [0], [1], [0, 0, 1, 1], [], []>} : vector<17x16xbf16>, vector<16x64xbf16>, vector<17x64xf32> -> vector<17x64xf32>
    %136 = vector.broadcast %116 : vector<1x64xf32> to vector<17x64xf32>
    %137 = arith.addf %136, %135 : vector<17x64xf32>
    %138 = vector.extract_strided_slice %112 {offsets = [0, 16], sizes = [17, 16], strides = [1, 1]} : vector<17x64xbf16> to vector<17x16xbf16>
    %139 = vector.extract_strided_slice %113 {offsets = [0, 16], sizes = [11, 16], strides = [1, 1]} : vector<11x128xbf16> to vector<11x16xbf16>
    %140 = vector.extract_strided_slice %113 {offsets = [0, 80], sizes = [11, 16], strides = [1, 1]} : vector<11x128xbf16> to vector<11x16xbf16>
    %cst_58 = arith.constant dense<0.000000e+00> : vector<17x11xf32>
    %141 = tpu.matmul %138, %139, %cst_58 {dimension_numbers = #tpu.dot_dimension_numbers<[1], [1], [0], [0], [0, 0, 1, 0], [], []>} : vector<17x16xbf16>, vector<11x16xbf16>, vector<17x11xf32> -> vector<17x11xf32>
    %cst_59 = arith.constant dense<0xFF800000> : vector<17xf32>
    %142 = vector.multi_reduction <maximumf>, %141, %cst_59 [1] : vector<17x11xf32> to vector<17xf32>
    %143 = vector.shape_cast %142 : vector<17xf32> to vector<17x1xf32>
    %144 = vector.broadcast %143 : vector<17x1xf32> to vector<17x11xf32>
    %145 = arith.subf %141, %144 : vector<17x11xf32>
    %146 = math.exp %145 : vector<17x11xf32>
    %cst_60 = arith.constant dense<0.000000e+00> : vector<17xf32>
    %147 = vector.multi_reduction <add>, %146, %cst_60 [1] : vector<17x11xf32> to vector<17xf32>
    %148 = vector.shape_cast %147 : vector<17xf32> to vector<17x1xf32>
    %149 = tpu.reciprocal %148 {approx = true} : vector<17x1xf32> -> vector<17x1xf32>
    %150 = vector.broadcast %149 : vector<17x1xf32> to vector<17x11xf32>
    %151 = arith.mulf %146, %150 : vector<17x11xf32>
    %152 = arith.truncf %151 : vector<17x11xf32> to vector<17x11xbf16>
    %cst_61 = arith.constant dense<0.000000e+00> : vector<17x16xf32>
    %153 = tpu.matmul %152, %140, %cst_61 {dimension_numbers = #tpu.dot_dimension_numbers<[1], [0], [0], [1], [0, 0, 1, 1], [], []>} : vector<17x11xbf16>, vector<11x16xbf16>, vector<17x16xf32> -> vector<17x16xf32>
    %154 = arith.truncf %153 : vector<17x16xf32> to vector<17x16xbf16>
    %155 = vector.extract_strided_slice %115 {offsets = [16, 0], sizes = [16, 64], strides = [1, 1]} : vector<64x64xbf16> to vector<16x64xbf16>
    %cst_62 = arith.constant dense<0.000000e+00> : vector<17x64xf32>
    %156 = tpu.matmul %154, %155, %cst_62 {dimension_numbers = #tpu.dot_dimension_numbers<[1], [0], [0], [1], [0, 0, 1, 1], [], []>} : vector<17x16xbf16>, vector<16x64xbf16>, vector<17x64xf32> -> vector<17x64xf32>
    %157 = arith.addf %137, %156 : vector<17x64xf32>
    %158 = vector.extract_strided_slice %112 {offsets = [0, 32], sizes = [17, 16], strides = [1, 1]} : vector<17x64xbf16> to vector<17x16xbf16>
    %159 = vector.extract_strided_slice %113 {offsets = [0, 32], sizes = [11, 16], strides = [1, 1]} : vector<11x128xbf16> to vector<11x16xbf16>
    %160 = vector.extract_strided_slice %113 {offsets = [0, 96], sizes = [11, 16], strides = [1, 1]} : vector<11x128xbf16> to vector<11x16xbf16>
    %cst_63 = arith.constant dense<0.000000e+00> : vector<17x11xf32>
    %161 = tpu.matmul %158, %159, %cst_63 {dimension_numbers = #tpu.dot_dimension_numbers<[1], [1], [0], [0], [0, 0, 1, 0], [], []>} : vector<17x16xbf16>, vector<11x16xbf16>, vector<17x11xf32> -> vector<17x11xf32>
    %cst_64 = arith.constant dense<0xFF800000> : vector<17xf32>
    %162 = vector.multi_reduction <maximumf>, %161, %cst_64 [1] : vector<17x11xf32> to vector<17xf32>
    %163 = vector.shape_cast %162 : vector<17xf32> to vector<17x1xf32>
    %164 = vector.broadcast %163 : vector<17x1xf32> to vector<17x11xf32>
    %165 = arith.subf %161, %164 : vector<17x11xf32>
    %166 = math.exp %165 : vector<17x11xf32>
    %cst_65 = arith.constant dense<0.000000e+00> : vector<17xf32>
    %167 = vector.multi_reduction <add>, %166, %cst_65 [1] : vector<17x11xf32> to vector<17xf32>
    %168 = vector.shape_cast %167 : vector<17xf32> to vector<17x1xf32>
    %169 = tpu.reciprocal %168 {approx = true} : vector<17x1xf32> -> vector<17x1xf32>
    %170 = vector.broadcast %169 : vector<17x1xf32> to vector<17x11xf32>
    %171 = arith.mulf %166, %170 : vector<17x11xf32>
    %172 = arith.truncf %171 : vector<17x11xf32> to vector<17x11xbf16>
    %cst_66 = arith.constant dense<0.000000e+00> : vector<17x16xf32>
    %173 = tpu.matmul %172, %160, %cst_66 {dimension_numbers = #tpu.dot_dimension_numbers<[1], [0], [0], [1], [0, 0, 1, 1], [], []>} : vector<17x11xbf16>, vector<11x16xbf16>, vector<17x16xf32> -> vector<17x16xf32>
    %174 = arith.truncf %173 : vector<17x16xf32> to vector<17x16xbf16>
    %175 = vector.extract_strided_slice %115 {offsets = [32, 0], sizes = [16, 64], strides = [1, 1]} : vector<64x64xbf16> to vector<16x64xbf16>
    %cst_67 = arith.constant dense<0.000000e+00> : vector<17x64xf32>
    %176 = tpu.matmul %174, %175, %cst_67 {dimension_numbers = #tpu.dot_dimension_numbers<[1], [0], [0], [1], [0, 0, 1, 1], [], []>} : vector<17x16xbf16>, vector<16x64xbf16>, vector<17x64xf32> -> vector<17x64xf32>
    %177 = arith.addf %157, %176 : vector<17x64xf32>
    %178 = vector.extract_strided_slice %112 {offsets = [0, 48], sizes = [17, 16], strides = [1, 1]} : vector<17x64xbf16> to vector<17x16xbf16>
    %179 = vector.extract_strided_slice %113 {offsets = [0, 48], sizes = [11, 16], strides = [1, 1]} : vector<11x128xbf16> to vector<11x16xbf16>
    %180 = vector.extract_strided_slice %113 {offsets = [0, 112], sizes = [11, 16], strides = [1, 1]} : vector<11x128xbf16> to vector<11x16xbf16>
    %cst_68 = arith.constant dense<0.000000e+00> : vector<17x11xf32>
    %181 = tpu.matmul %178, %179, %cst_68 {dimension_numbers = #tpu.dot_dimension_numbers<[1], [1], [0], [0], [0, 0, 1, 0], [], []>} : vector<17x16xbf16>, vector<11x16xbf16>, vector<17x11xf32> -> vector<17x11xf32>
    %cst_69 = arith.constant dense<0xFF800000> : vector<17xf32>
    %182 = vector.multi_reduction <maximumf>, %181, %cst_69 [1] : vector<17x11xf32> to vector<17xf32>
    %183 = vector.shape_cast %182 : vector<17xf32> to vector<17x1xf32>
    %184 = vector.broadcast %183 : vector<17x1xf32> to vector<17x11xf32>
    %185 = arith.subf %181, %184 : vector<17x11xf32>
    %186 = math.exp %185 : vector<17x11xf32>
    %cst_70 = arith.constant dense<0.000000e+00> : vector<17xf32>
    %187 = vector.multi_reduction <add>, %186, %cst_70 [1] : vector<17x11xf32> to vector<17xf32>
    %188 = vector.shape_cast %187 : vector<17xf32> to vector<17x1xf32>
    %189 = tpu.reciprocal %188 {approx = true} : vector<17x1xf32> -> vector<17x1xf32>
    %190 = vector.broadcast %189 : vector<17x1xf32> to vector<17x11xf32>
    %191 = arith.mulf %186, %190 : vector<17x11xf32>
    %192 = arith.truncf %191 : vector<17x11xf32> to vector<17x11xbf16>
    %cst_71 = arith.constant dense<0.000000e+00> : vector<17x16xf32>
    %193 = tpu.matmul %192, %180, %cst_71 {dimension_numbers = #tpu.dot_dimension_numbers<[1], [0], [0], [1], [0, 0, 1, 1], [], []>} : vector<17x11xbf16>, vector<11x16xbf16>, vector<17x16xf32> -> vector<17x16xf32>
    %194 = arith.truncf %193 : vector<17x16xf32> to vector<17x16xbf16>
    %195 = vector.extract_strided_slice %115 {offsets = [48, 0], sizes = [16, 64], strides = [1, 1]} : vector<64x64xbf16> to vector<16x64xbf16>
    %cst_72 = arith.constant dense<0.000000e+00> : vector<17x64xf32>
    %196 = tpu.matmul %194, %195, %cst_72 {dimension_numbers = #tpu.dot_dimension_numbers<[1], [0], [0], [1], [0, 0, 1, 1], [], []>} : vector<17x16xbf16>, vector<16x64xbf16>, vector<17x64xf32> -> vector<17x64xf32>
    %197 = arith.addf %177, %196 : vector<17x64xf32>
    %c432 = arith.constant 432 : index
    %c0_73 = arith.constant 0 : index
    %198 = vector.load %arg2[%c432, %c0_73] : memref<960x64xf32, #tpu.memory_space<vmem>>, vector<1x64xf32>
    %c440 = arith.constant 440 : index
    %c0_74 = arith.constant 0 : index
    %199 = vector.load %arg2[%c440, %c0_74] : memref<960x64xf32, #tpu.memory_space<vmem>>, vector<1x64xf32>
    %cst_75 = arith.constant dense<0.000000e+00> : vector<17xf32>
    %200 = vector.multi_reduction <add>, %197, %cst_75 [1] : vector<17x64xf32> to vector<17xf32>
    %201 = vector.shape_cast %200 : vector<17xf32> to vector<17x1xf32>
    %cst_76 = arith.constant 6.400000e+01 : f32
    %202 = vector.broadcast %cst_76 : f32 to vector<17x1xf32>
    %203 = arith.divf %201, %202 : vector<17x1xf32>
    %204 = vector.broadcast %203 : vector<17x1xf32> to vector<17x64xf32>
    %205 = arith.subf %197, %204 : vector<17x64xf32>
    %206 = arith.mulf %205, %205 : vector<17x64xf32>
    %cst_77 = arith.constant dense<0.000000e+00> : vector<17xf32>
    %207 = vector.multi_reduction <add>, %206, %cst_77 [1] : vector<17x64xf32> to vector<17xf32>
    %208 = vector.shape_cast %207 : vector<17xf32> to vector<17x1xf32>
    %cst_78 = arith.constant 6.400000e+01 : f32
    %209 = vector.broadcast %cst_78 : f32 to vector<17x1xf32>
    %210 = arith.divf %208, %209 : vector<17x1xf32>
    %211 = vector.broadcast %203 : vector<17x1xf32> to vector<17x64xf32>
    %212 = arith.subf %197, %211 : vector<17x64xf32>
    %cst_79 = arith.constant 9.99999974E-6 : f32
    %213 = vector.broadcast %cst_79 : f32 to vector<17x1xf32>
    %214 = arith.addf %210, %213 : vector<17x1xf32>
    %215 = math.rsqrt %214 : vector<17x1xf32>
    %216 = vector.broadcast %215 : vector<17x1xf32> to vector<17x64xf32>
    %217 = arith.mulf %212, %216 : vector<17x64xf32>
    %218 = vector.broadcast %198 : vector<1x64xf32> to vector<17x64xf32>
    %219 = arith.mulf %217, %218 : vector<17x64xf32>
    %220 = vector.broadcast %199 : vector<1x64xf32> to vector<17x64xf32>
    %221 = arith.addf %219, %220 : vector<17x64xf32>
    %c88 = arith.constant 88 : index
    %c0_80 = arith.constant 0 : index
    %222 = vector.load %arg3[%c88, %c0_80] : memref<304x128xf32, #tpu.memory_space<vmem>>, vector<64x128xf32>
    %223 = arith.truncf %221 : vector<17x64xf32> to vector<17x64xbf16>
    %224 = arith.truncf %222 : vector<64x128xf32> to vector<64x128xbf16>
    %cst_81 = arith.constant dense<0.000000e+00> : vector<17x128xf32>
    %225 = tpu.matmul %223, %224, %cst_81 {dimension_numbers = #tpu.dot_dimension_numbers<[1], [0], [0], [1], [0, 0, 1, 1], [], []>} : vector<17x64xbf16>, vector<64x128xbf16>, vector<17x128xf32> -> vector<17x128xf32>
    %c152_82 = arith.constant 152 : index
    %c0_83 = arith.constant 0 : index
    %226 = vector.load %arg3[%c152_82, %c0_83] : memref<304x128xf32, #tpu.memory_space<vmem>>, vector<1x128xf32>
    %227 = vector.broadcast %226 : vector<1x128xf32> to vector<17x128xf32>
    %228 = arith.addf %225, %227 : vector<17x128xf32>
    %cst_84 = arith.constant 5.000000e-01 : f32
    %229 = vector.broadcast %cst_84 : f32 to vector<17x128xf32>
    %230 = arith.mulf %229, %228 : vector<17x128xf32>
    %cst_85 = arith.constant 4.471500e-02 : f32
    %231 = vector.broadcast %cst_85 : f32 to vector<17x128xf32>
    %232 = arith.mulf %231, %228 : vector<17x128xf32>
    %233 = arith.mulf %232, %228 : vector<17x128xf32>
    %234 = arith.mulf %233, %228 : vector<17x128xf32>
    %235 = arith.addf %228, %234 : vector<17x128xf32>
    %cst_86 = arith.constant 0.797884583 : f32
    %236 = vector.broadcast %cst_86 : f32 to vector<17x128xf32>
    %237 = arith.mulf %236, %235 : vector<17x128xf32>
    %238 = math.tanh %237 : vector<17x128xf32>
    %cst_87 = arith.constant 1.000000e+00 : f32
    %239 = vector.broadcast %cst_87 : f32 to vector<17x128xf32>
    %240 = arith.addf %239, %238 : vector<17x128xf32>
    %241 = arith.mulf %230, %240 : vector<17x128xf32>
    %c448 = arith.constant 448 : index
    %c0_88 = arith.constant 0 : index
    %242 = vector.load %arg2[%c448, %c0_88] : memref<960x64xf32, #tpu.memory_space<vmem>>, vector<128x64xf32>
    %243 = arith.truncf %241 : vector<17x128xf32> to vector<17x128xbf16>
    %244 = arith.truncf %242 : vector<128x64xf32> to vector<128x64xbf16>
    %cst_89 = arith.constant dense<0.000000e+00> : vector<17x64xf32>
    %245 = tpu.matmul %243, %244, %cst_89 {dimension_numbers = #tpu.dot_dimension_numbers<[1], [0], [0], [1], [0, 0, 1, 1], [], []>} : vector<17x128xbf16>, vector<128x64xbf16>, vector<17x64xf32> -> vector<17x64xf32>
    %c576 = arith.constant 576 : index
    %c0_90 = arith.constant 0 : index
    %246 = vector.load %arg2[%c576, %c0_90] : memref<960x64xf32, #tpu.memory_space<vmem>>, vector<1x64xf32>
    %247 = vector.broadcast %246 : vector<1x64xf32> to vector<17x64xf32>
    %248 = arith.addf %245, %247 : vector<17x64xf32>
    %249 = arith.addf %197, %248 : vector<17x64xf32>
    %c616 = arith.constant 616 : index
    %c0_91 = arith.constant 0 : index
    %250 = vector.load %arg2[%c616, %c0_91] : memref<960x64xf32, #tpu.memory_space<vmem>>, vector<1x64xf32>
    %c624 = arith.constant 624 : index
    %c0_92 = arith.constant 0 : index
    %251 = vector.load %arg2[%c624, %c0_92] : memref<960x64xf32, #tpu.memory_space<vmem>>, vector<1x64xf32>
    %cst_93 = arith.constant dense<0.000000e+00> : vector<17xf32>
    %252 = vector.multi_reduction <add>, %49, %cst_93 [1] : vector<17x64xf32> to vector<17xf32>
    %253 = vector.shape_cast %252 : vector<17xf32> to vector<17x1xf32>
    %cst_94 = arith.constant 6.400000e+01 : f32
    %254 = vector.broadcast %cst_94 : f32 to vector<17x1xf32>
    %255 = arith.divf %253, %254 : vector<17x1xf32>
    %256 = vector.broadcast %255 : vector<17x1xf32> to vector<17x64xf32>
    %257 = arith.subf %49, %256 : vector<17x64xf32>
    %258 = arith.mulf %257, %257 : vector<17x64xf32>
    %cst_95 = arith.constant dense<0.000000e+00> : vector<17xf32>
    %259 = vector.multi_reduction <add>, %258, %cst_95 [1] : vector<17x64xf32> to vector<17xf32>
    %260 = vector.shape_cast %259 : vector<17xf32> to vector<17x1xf32>
    %cst_96 = arith.constant 6.400000e+01 : f32
    %261 = vector.broadcast %cst_96 : f32 to vector<17x1xf32>
    %262 = arith.divf %260, %261 : vector<17x1xf32>
    %263 = vector.broadcast %255 : vector<17x1xf32> to vector<17x64xf32>
    %264 = arith.subf %49, %263 : vector<17x64xf32>
    %cst_97 = arith.constant 9.99999974E-6 : f32
    %265 = vector.broadcast %cst_97 : f32 to vector<17x1xf32>
    %266 = arith.addf %262, %265 : vector<17x1xf32>
    %267 = math.rsqrt %266 : vector<17x1xf32>
    %268 = vector.broadcast %267 : vector<17x1xf32> to vector<17x64xf32>
    %269 = arith.mulf %264, %268 : vector<17x64xf32>
    %270 = vector.broadcast %250 : vector<1x64xf32> to vector<17x64xf32>
    %271 = arith.mulf %269, %270 : vector<17x64xf32>
    %272 = vector.broadcast %251 : vector<1x64xf32> to vector<17x64xf32>
    %273 = arith.addf %271, %272 : vector<17x64xf32>
    %c616_98 = arith.constant 616 : index
    %c0_99 = arith.constant 0 : index
    %274 = vector.load %arg2[%c616_98, %c0_99] : memref<960x64xf32, #tpu.memory_space<vmem>>, vector<1x64xf32>
    %c624_100 = arith.constant 624 : index
    %c0_101 = arith.constant 0 : index
    %275 = vector.load %arg2[%c624_100, %c0_101] : memref<960x64xf32, #tpu.memory_space<vmem>>, vector<1x64xf32>
    %cst_102 = arith.constant dense<0.000000e+00> : vector<11xf32>
    %276 = vector.multi_reduction <add>, %48, %cst_102 [1] : vector<11x64xf32> to vector<11xf32>
    %277 = vector.shape_cast %276 : vector<11xf32> to vector<11x1xf32>
    %cst_103 = arith.constant 6.400000e+01 : f32
    %278 = vector.broadcast %cst_103 : f32 to vector<11x1xf32>
    %279 = arith.divf %277, %278 : vector<11x1xf32>
    %280 = vector.broadcast %279 : vector<11x1xf32> to vector<11x64xf32>
    %281 = arith.subf %48, %280 : vector<11x64xf32>
    %282 = arith.mulf %281, %281 : vector<11x64xf32>
    %cst_104 = arith.constant dense<0.000000e+00> : vector<11xf32>
    %283 = vector.multi_reduction <add>, %282, %cst_104 [1] : vector<11x64xf32> to vector<11xf32>
    %284 = vector.shape_cast %283 : vector<11xf32> to vector<11x1xf32>
    %cst_105 = arith.constant 6.400000e+01 : f32
    %285 = vector.broadcast %cst_105 : f32 to vector<11x1xf32>
    %286 = arith.divf %284, %285 : vector<11x1xf32>
    %287 = vector.broadcast %279 : vector<11x1xf32> to vector<11x64xf32>
    %288 = arith.subf %48, %287 : vector<11x64xf32>
    %cst_106 = arith.constant 9.99999974E-6 : f32
    %289 = vector.broadcast %cst_106 : f32 to vector<11x1xf32>
    %290 = arith.addf %286, %289 : vector<11x1xf32>
    %291 = math.rsqrt %290 : vector<11x1xf32>
    %292 = vector.broadcast %291 : vector<11x1xf32> to vector<11x64xf32>
    %293 = arith.mulf %288, %292 : vector<11x64xf32>
    %294 = vector.broadcast %274 : vector<1x64xf32> to vector<11x64xf32>
    %295 = arith.mulf %293, %294 : vector<11x64xf32>
    %296 = vector.broadcast %275 : vector<1x64xf32> to vector<11x64xf32>
    %297 = arith.addf %295, %296 : vector<11x64xf32>
    %c632 = arith.constant 632 : index
    %c0_107 = arith.constant 0 : index
    %298 = vector.load %arg2[%c632, %c0_107] : memref<960x64xf32, #tpu.memory_space<vmem>>, vector<64x64xf32>
    %299 = arith.truncf %297 : vector<11x64xf32> to vector<11x64xbf16>
    %300 = arith.truncf %298 : vector<64x64xf32> to vector<64x64xbf16>
    %cst_108 = arith.constant dense<0.000000e+00> : vector<11x64xf32>
    %301 = tpu.matmul %299, %300, %cst_108 {dimension_numbers = #tpu.dot_dimension_numbers<[1], [0], [0], [1], [0, 0, 1, 1], [], []>} : vector<11x64xbf16>, vector<64x64xbf16>, vector<11x64xf32> -> vector<11x64xf32>
    %c696 = arith.constant 696 : index
    %c0_109 = arith.constant 0 : index
    %302 = vector.load %arg2[%c696, %c0_109] : memref<960x64xf32, #tpu.memory_space<vmem>>, vector<1x64xf32>
    %303 = vector.broadcast %302 : vector<1x64xf32> to vector<11x64xf32>
    %304 = arith.addf %301, %303 : vector<11x64xf32>
    %c160 = arith.constant 160 : index
    %c0_110 = arith.constant 0 : index
    %305 = vector.load %arg3[%c160, %c0_110] : memref<304x128xf32, #tpu.memory_space<vmem>>, vector<64x128xf32>
    %306 = arith.truncf %273 : vector<17x64xf32> to vector<17x64xbf16>
    %307 = arith.truncf %305 : vector<64x128xf32> to vector<64x128xbf16>
    %cst_111 = arith.constant dense<0.000000e+00> : vector<17x128xf32>
    %308 = tpu.matmul %306, %307, %cst_111 {dimension_numbers = #tpu.dot_dimension_numbers<[1], [0], [0], [1], [0, 0, 1, 1], [], []>} : vector<17x64xbf16>, vector<64x128xbf16>, vector<17x128xf32> -> vector<17x128xf32>
    %c224_112 = arith.constant 224 : index
    %c0_113 = arith.constant 0 : index
    %309 = vector.load %arg3[%c224_112, %c0_113] : memref<304x128xf32, #tpu.memory_space<vmem>>, vector<1x128xf32>
    %310 = vector.broadcast %309 : vector<1x128xf32> to vector<17x128xf32>
    %311 = arith.addf %308, %310 : vector<17x128xf32>
    %312 = arith.truncf %304 : vector<11x64xf32> to vector<11x64xbf16>
    %313 = arith.truncf %311 : vector<17x128xf32> to vector<17x128xbf16>
    %c704 = arith.constant 704 : index
    %c0_114 = arith.constant 0 : index
    %314 = vector.load %arg2[%c704, %c0_114] : memref<960x64xf32, #tpu.memory_space<vmem>>, vector<64x64xf32>
    %315 = arith.truncf %314 : vector<64x64xf32> to vector<64x64xbf16>
    %c768 = arith.constant 768 : index
    %c0_115 = arith.constant 0 : index
    %316 = vector.load %arg2[%c768, %c0_115] : memref<960x64xf32, #tpu.memory_space<vmem>>, vector<1x64xf32>
    %317 = vector.extract_strided_slice %312 {offsets = [0, 0], sizes = [11, 16], strides = [1, 1]} : vector<11x64xbf16> to vector<11x16xbf16>
    %318 = vector.extract_strided_slice %313 {offsets = [0, 0], sizes = [17, 16], strides = [1, 1]} : vector<17x128xbf16> to vector<17x16xbf16>
    %319 = vector.extract_strided_slice %313 {offsets = [0, 64], sizes = [17, 16], strides = [1, 1]} : vector<17x128xbf16> to vector<17x16xbf16>
    %cst_116 = arith.constant dense<0.000000e+00> : vector<11x17xf32>
    %320 = tpu.matmul %317, %318, %cst_116 {dimension_numbers = #tpu.dot_dimension_numbers<[1], [1], [0], [0], [0, 0, 1, 0], [], []>} : vector<11x16xbf16>, vector<17x16xbf16>, vector<11x17xf32> -> vector<11x17xf32>
    %cst_117 = arith.constant dense<0xFF800000> : vector<11xf32>
    %321 = vector.multi_reduction <maximumf>, %320, %cst_117 [1] : vector<11x17xf32> to vector<11xf32>
    %322 = vector.shape_cast %321 : vector<11xf32> to vector<11x1xf32>
    %323 = vector.broadcast %322 : vector<11x1xf32> to vector<11x17xf32>
    %324 = arith.subf %320, %323 : vector<11x17xf32>
    %325 = math.exp %324 : vector<11x17xf32>
    %cst_118 = arith.constant dense<0.000000e+00> : vector<11xf32>
    %326 = vector.multi_reduction <add>, %325, %cst_118 [1] : vector<11x17xf32> to vector<11xf32>
    %327 = vector.shape_cast %326 : vector<11xf32> to vector<11x1xf32>
    %328 = tpu.reciprocal %327 {approx = true} : vector<11x1xf32> -> vector<11x1xf32>
    %329 = vector.broadcast %328 : vector<11x1xf32> to vector<11x17xf32>
    %330 = arith.mulf %325, %329 : vector<11x17xf32>
    %331 = arith.truncf %330 : vector<11x17xf32> to vector<11x17xbf16>
    %cst_119 = arith.constant dense<0.000000e+00> : vector<11x16xf32>
    %332 = tpu.matmul %331, %319, %cst_119 {dimension_numbers = #tpu.dot_dimension_numbers<[1], [0], [0], [1], [0, 0, 1, 1], [], []>} : vector<11x17xbf16>, vector<17x16xbf16>, vector<11x16xf32> -> vector<11x16xf32>
    %333 = arith.truncf %332 : vector<11x16xf32> to vector<11x16xbf16>
    %334 = vector.extract_strided_slice %315 {offsets = [0, 0], sizes = [16, 64], strides = [1, 1]} : vector<64x64xbf16> to vector<16x64xbf16>
    %cst_120 = arith.constant dense<0.000000e+00> : vector<11x64xf32>
    %335 = tpu.matmul %333, %334, %cst_120 {dimension_numbers = #tpu.dot_dimension_numbers<[1], [0], [0], [1], [0, 0, 1, 1], [], []>} : vector<11x16xbf16>, vector<16x64xbf16>, vector<11x64xf32> -> vector<11x64xf32>
    %336 = vector.broadcast %316 : vector<1x64xf32> to vector<11x64xf32>
    %337 = arith.addf %336, %335 : vector<11x64xf32>
    %338 = vector.extract_strided_slice %312 {offsets = [0, 16], sizes = [11, 16], strides = [1, 1]} : vector<11x64xbf16> to vector<11x16xbf16>
    %339 = vector.extract_strided_slice %313 {offsets = [0, 16], sizes = [17, 16], strides = [1, 1]} : vector<17x128xbf16> to vector<17x16xbf16>
    %340 = vector.extract_strided_slice %313 {offsets = [0, 80], sizes = [17, 16], strides = [1, 1]} : vector<17x128xbf16> to vector<17x16xbf16>
    %cst_121 = arith.constant dense<0.000000e+00> : vector<11x17xf32>
    %341 = tpu.matmul %338, %339, %cst_121 {dimension_numbers = #tpu.dot_dimension_numbers<[1], [1], [0], [0], [0, 0, 1, 0], [], []>} : vector<11x16xbf16>, vector<17x16xbf16>, vector<11x17xf32> -> vector<11x17xf32>
    %cst_122 = arith.constant dense<0xFF800000> : vector<11xf32>
    %342 = vector.multi_reduction <maximumf>, %341, %cst_122 [1] : vector<11x17xf32> to vector<11xf32>
    %343 = vector.shape_cast %342 : vector<11xf32> to vector<11x1xf32>
    %344 = vector.broadcast %343 : vector<11x1xf32> to vector<11x17xf32>
    %345 = arith.subf %341, %344 : vector<11x17xf32>
    %346 = math.exp %345 : vector<11x17xf32>
    %cst_123 = arith.constant dense<0.000000e+00> : vector<11xf32>
    %347 = vector.multi_reduction <add>, %346, %cst_123 [1] : vector<11x17xf32> to vector<11xf32>
    %348 = vector.shape_cast %347 : vector<11xf32> to vector<11x1xf32>
    %349 = tpu.reciprocal %348 {approx = true} : vector<11x1xf32> -> vector<11x1xf32>
    %350 = vector.broadcast %349 : vector<11x1xf32> to vector<11x17xf32>
    %351 = arith.mulf %346, %350 : vector<11x17xf32>
    %352 = arith.truncf %351 : vector<11x17xf32> to vector<11x17xbf16>
    %cst_124 = arith.constant dense<0.000000e+00> : vector<11x16xf32>
    %353 = tpu.matmul %352, %340, %cst_124 {dimension_numbers = #tpu.dot_dimension_numbers<[1], [0], [0], [1], [0, 0, 1, 1], [], []>} : vector<11x17xbf16>, vector<17x16xbf16>, vector<11x16xf32> -> vector<11x16xf32>
    %354 = arith.truncf %353 : vector<11x16xf32> to vector<11x16xbf16>
    %355 = vector.extract_strided_slice %315 {offsets = [16, 0], sizes = [16, 64], strides = [1, 1]} : vector<64x64xbf16> to vector<16x64xbf16>
    %cst_125 = arith.constant dense<0.000000e+00> : vector<11x64xf32>
    %356 = tpu.matmul %354, %355, %cst_125 {dimension_numbers = #tpu.dot_dimension_numbers<[1], [0], [0], [1], [0, 0, 1, 1], [], []>} : vector<11x16xbf16>, vector<16x64xbf16>, vector<11x64xf32> -> vector<11x64xf32>
    %357 = arith.addf %337, %356 : vector<11x64xf32>
    %358 = vector.extract_strided_slice %312 {offsets = [0, 32], sizes = [11, 16], strides = [1, 1]} : vector<11x64xbf16> to vector<11x16xbf16>
    %359 = vector.extract_strided_slice %313 {offsets = [0, 32], sizes = [17, 16], strides = [1, 1]} : vector<17x128xbf16> to vector<17x16xbf16>
    %360 = vector.extract_strided_slice %313 {offsets = [0, 96], sizes = [17, 16], strides = [1, 1]} : vector<17x128xbf16> to vector<17x16xbf16>
    %cst_126 = arith.constant dense<0.000000e+00> : vector<11x17xf32>
    %361 = tpu.matmul %358, %359, %cst_126 {dimension_numbers = #tpu.dot_dimension_numbers<[1], [1], [0], [0], [0, 0, 1, 0], [], []>} : vector<11x16xbf16>, vector<17x16xbf16>, vector<11x17xf32> -> vector<11x17xf32>
    %cst_127 = arith.constant dense<0xFF800000> : vector<11xf32>
    %362 = vector.multi_reduction <maximumf>, %361, %cst_127 [1] : vector<11x17xf32> to vector<11xf32>
    %363 = vector.shape_cast %362 : vector<11xf32> to vector<11x1xf32>
    %364 = vector.broadcast %363 : vector<11x1xf32> to vector<11x17xf32>
    %365 = arith.subf %361, %364 : vector<11x17xf32>
    %366 = math.exp %365 : vector<11x17xf32>
    %cst_128 = arith.constant dense<0.000000e+00> : vector<11xf32>
    %367 = vector.multi_reduction <add>, %366, %cst_128 [1] : vector<11x17xf32> to vector<11xf32>
    %368 = vector.shape_cast %367 : vector<11xf32> to vector<11x1xf32>
    %369 = tpu.reciprocal %368 {approx = true} : vector<11x1xf32> -> vector<11x1xf32>
    %370 = vector.broadcast %369 : vector<11x1xf32> to vector<11x17xf32>
    %371 = arith.mulf %366, %370 : vector<11x17xf32>
    %372 = arith.truncf %371 : vector<11x17xf32> to vector<11x17xbf16>
    %cst_129 = arith.constant dense<0.000000e+00> : vector<11x16xf32>
    %373 = tpu.matmul %372, %360, %cst_129 {dimension_numbers = #tpu.dot_dimension_numbers<[1], [0], [0], [1], [0, 0, 1, 1], [], []>} : vector<11x17xbf16>, vector<17x16xbf16>, vector<11x16xf32> -> vector<11x16xf32>
    %374 = arith.truncf %373 : vector<11x16xf32> to vector<11x16xbf16>
    %375 = vector.extract_strided_slice %315 {offsets = [32, 0], sizes = [16, 64], strides = [1, 1]} : vector<64x64xbf16> to vector<16x64xbf16>
    %cst_130 = arith.constant dense<0.000000e+00> : vector<11x64xf32>
    %376 = tpu.matmul %374, %375, %cst_130 {dimension_numbers = #tpu.dot_dimension_numbers<[1], [0], [0], [1], [0, 0, 1, 1], [], []>} : vector<11x16xbf16>, vector<16x64xbf16>, vector<11x64xf32> -> vector<11x64xf32>
    %377 = arith.addf %357, %376 : vector<11x64xf32>
    %378 = vector.extract_strided_slice %312 {offsets = [0, 48], sizes = [11, 16], strides = [1, 1]} : vector<11x64xbf16> to vector<11x16xbf16>
    %379 = vector.extract_strided_slice %313 {offsets = [0, 48], sizes = [17, 16], strides = [1, 1]} : vector<17x128xbf16> to vector<17x16xbf16>
    %380 = vector.extract_strided_slice %313 {offsets = [0, 112], sizes = [17, 16], strides = [1, 1]} : vector<17x128xbf16> to vector<17x16xbf16>
    %cst_131 = arith.constant dense<0.000000e+00> : vector<11x17xf32>
    %381 = tpu.matmul %378, %379, %cst_131 {dimension_numbers = #tpu.dot_dimension_numbers<[1], [1], [0], [0], [0, 0, 1, 0], [], []>} : vector<11x16xbf16>, vector<17x16xbf16>, vector<11x17xf32> -> vector<11x17xf32>
    %cst_132 = arith.constant dense<0xFF800000> : vector<11xf32>
    %382 = vector.multi_reduction <maximumf>, %381, %cst_132 [1] : vector<11x17xf32> to vector<11xf32>
    %383 = vector.shape_cast %382 : vector<11xf32> to vector<11x1xf32>
    %384 = vector.broadcast %383 : vector<11x1xf32> to vector<11x17xf32>
    %385 = arith.subf %381, %384 : vector<11x17xf32>
    %386 = math.exp %385 : vector<11x17xf32>
    %cst_133 = arith.constant dense<0.000000e+00> : vector<11xf32>
    %387 = vector.multi_reduction <add>, %386, %cst_133 [1] : vector<11x17xf32> to vector<11xf32>
    %388 = vector.shape_cast %387 : vector<11xf32> to vector<11x1xf32>
    %389 = tpu.reciprocal %388 {approx = true} : vector<11x1xf32> -> vector<11x1xf32>
    %390 = vector.broadcast %389 : vector<11x1xf32> to vector<11x17xf32>
    %391 = arith.mulf %386, %390 : vector<11x17xf32>
    %392 = arith.truncf %391 : vector<11x17xf32> to vector<11x17xbf16>
    %cst_134 = arith.constant dense<0.000000e+00> : vector<11x16xf32>
    %393 = tpu.matmul %392, %380, %cst_134 {dimension_numbers = #tpu.dot_dimension_numbers<[1], [0], [0], [1], [0, 0, 1, 1], [], []>} : vector<11x17xbf16>, vector<17x16xbf16>, vector<11x16xf32> -> vector<11x16xf32>
    %394 = arith.truncf %393 : vector<11x16xf32> to vector<11x16xbf16>
    %395 = vector.extract_strided_slice %315 {offsets = [48, 0], sizes = [16, 64], strides = [1, 1]} : vector<64x64xbf16> to vector<16x64xbf16>
    %cst_135 = arith.constant dense<0.000000e+00> : vector<11x64xf32>
    %396 = tpu.matmul %394, %395, %cst_135 {dimension_numbers = #tpu.dot_dimension_numbers<[1], [0], [0], [1], [0, 0, 1, 1], [], []>} : vector<11x16xbf16>, vector<16x64xbf16>, vector<11x64xf32> -> vector<11x64xf32>
    %397 = arith.addf %377, %396 : vector<11x64xf32>
    %c776 = arith.constant 776 : index
    %c0_136 = arith.constant 0 : index
    %398 = vector.load %arg2[%c776, %c0_136] : memref<960x64xf32, #tpu.memory_space<vmem>>, vector<1x64xf32>
    %c784 = arith.constant 784 : index
    %c0_137 = arith.constant 0 : index
    %399 = vector.load %arg2[%c784, %c0_137] : memref<960x64xf32, #tpu.memory_space<vmem>>, vector<1x64xf32>
    %cst_138 = arith.constant dense<0.000000e+00> : vector<11xf32>
    %400 = vector.multi_reduction <add>, %397, %cst_138 [1] : vector<11x64xf32> to vector<11xf32>
    %401 = vector.shape_cast %400 : vector<11xf32> to vector<11x1xf32>
    %cst_139 = arith.constant 6.400000e+01 : f32
    %402 = vector.broadcast %cst_139 : f32 to vector<11x1xf32>
    %403 = arith.divf %401, %402 : vector<11x1xf32>
    %404 = vector.broadcast %403 : vector<11x1xf32> to vector<11x64xf32>
    %405 = arith.subf %397, %404 : vector<11x64xf32>
    %406 = arith.mulf %405, %405 : vector<11x64xf32>
    %cst_140 = arith.constant dense<0.000000e+00> : vector<11xf32>
    %407 = vector.multi_reduction <add>, %406, %cst_140 [1] : vector<11x64xf32> to vector<11xf32>
    %408 = vector.shape_cast %407 : vector<11xf32> to vector<11x1xf32>
    %cst_141 = arith.constant 6.400000e+01 : f32
    %409 = vector.broadcast %cst_141 : f32 to vector<11x1xf32>
    %410 = arith.divf %408, %409 : vector<11x1xf32>
    %411 = vector.broadcast %403 : vector<11x1xf32> to vector<11x64xf32>
    %412 = arith.subf %397, %411 : vector<11x64xf32>
    %cst_142 = arith.constant 9.99999974E-6 : f32
    %413 = vector.broadcast %cst_142 : f32 to vector<11x1xf32>
    %414 = arith.addf %410, %413 : vector<11x1xf32>
    %415 = math.rsqrt %414 : vector<11x1xf32>
    %416 = vector.broadcast %415 : vector<11x1xf32> to vector<11x64xf32>
    %417 = arith.mulf %412, %416 : vector<11x64xf32>
    %418 = vector.broadcast %398 : vector<1x64xf32> to vector<11x64xf32>
    %419 = arith.mulf %417, %418 : vector<11x64xf32>
    %420 = vector.broadcast %399 : vector<1x64xf32> to vector<11x64xf32>
    %421 = arith.addf %419, %420 : vector<11x64xf32>
    %c232_143 = arith.constant 232 : index
    %c0_144 = arith.constant 0 : index
    %422 = vector.load %arg3[%c232_143, %c0_144] : memref<304x128xf32, #tpu.memory_space<vmem>>, vector<64x128xf32>
    %423 = arith.truncf %421 : vector<11x64xf32> to vector<11x64xbf16>
    %424 = arith.truncf %422 : vector<64x128xf32> to vector<64x128xbf16>
    %cst_145 = arith.constant dense<0.000000e+00> : vector<11x128xf32>
    %425 = tpu.matmul %423, %424, %cst_145 {dimension_numbers = #tpu.dot_dimension_numbers<[1], [0], [0], [1], [0, 0, 1, 1], [], []>} : vector<11x64xbf16>, vector<64x128xbf16>, vector<11x128xf32> -> vector<11x128xf32>
    %c296 = arith.constant 296 : index
    %c0_146 = arith.constant 0 : index
    %426 = vector.load %arg3[%c296, %c0_146] : memref<304x128xf32, #tpu.memory_space<vmem>>, vector<1x128xf32>
    %427 = vector.broadcast %426 : vector<1x128xf32> to vector<11x128xf32>
    %428 = arith.addf %425, %427 : vector<11x128xf32>
    %cst_147 = arith.constant 5.000000e-01 : f32
    %429 = vector.broadcast %cst_147 : f32 to vector<11x128xf32>
    %430 = arith.mulf %429, %428 : vector<11x128xf32>
    %cst_148 = arith.constant 4.471500e-02 : f32
    %431 = vector.broadcast %cst_148 : f32 to vector<11x128xf32>
    %432 = arith.mulf %431, %428 : vector<11x128xf32>
    %433 = arith.mulf %432, %428 : vector<11x128xf32>
    %434 = arith.mulf %433, %428 : vector<11x128xf32>
    %435 = arith.addf %428, %434 : vector<11x128xf32>
    %cst_149 = arith.constant 0.797884583 : f32
    %436 = vector.broadcast %cst_149 : f32 to vector<11x128xf32>
    %437 = arith.mulf %436, %435 : vector<11x128xf32>
    %438 = math.tanh %437 : vector<11x128xf32>
    %cst_150 = arith.constant 1.000000e+00 : f32
    %439 = vector.broadcast %cst_150 : f32 to vector<11x128xf32>
    %440 = arith.addf %439, %438 : vector<11x128xf32>
    %441 = arith.mulf %430, %440 : vector<11x128xf32>
    %c792 = arith.constant 792 : index
    %c0_151 = arith.constant 0 : index
    %442 = vector.load %arg2[%c792, %c0_151] : memref<960x64xf32, #tpu.memory_space<vmem>>, vector<128x64xf32>
    %443 = arith.truncf %441 : vector<11x128xf32> to vector<11x128xbf16>
    %444 = arith.truncf %442 : vector<128x64xf32> to vector<128x64xbf16>
    %cst_152 = arith.constant dense<0.000000e+00> : vector<11x64xf32>
    %445 = tpu.matmul %443, %444, %cst_152 {dimension_numbers = #tpu.dot_dimension_numbers<[1], [0], [0], [1], [0, 0, 1, 1], [], []>} : vector<11x128xbf16>, vector<128x64xbf16>, vector<11x64xf32> -> vector<11x64xf32>
    %c920 = arith.constant 920 : index
    %c0_153 = arith.constant 0 : index
    %446 = vector.load %arg2[%c920, %c0_153] : memref<960x64xf32, #tpu.memory_space<vmem>>, vector<1x64xf32>
    %447 = vector.broadcast %446 : vector<1x64xf32> to vector<11x64xf32>
    %448 = arith.addf %445, %447 : vector<11x64xf32>
    %449 = arith.addf %397, %448 : vector<11x64xf32>
    %450 = vector.extract_strided_slice %249 {offsets = [0, 0], sizes = [1, 64], strides = [1, 1]} : vector<17x64xf32> to vector<1x64xf32>
    %c584 = arith.constant 584 : index
    %c0_154 = arith.constant 0 : index
    %451 = vector.load %arg2[%c584, %c0_154] : memref<960x64xf32, #tpu.memory_space<vmem>>, vector<1x64xf32>
    %c592 = arith.constant 592 : index
    %c0_155 = arith.constant 0 : index
    %452 = vector.load %arg2[%c592, %c0_155] : memref<960x64xf32, #tpu.memory_space<vmem>>, vector<1x64xf32>
    %cst_156 = arith.constant dense<0.000000e+00> : vector<1xf32>
    %453 = vector.multi_reduction <add>, %450, %cst_156 [1] : vector<1x64xf32> to vector<1xf32>
    %454 = vector.shape_cast %453 : vector<1xf32> to vector<1x1xf32>
    %cst_157 = arith.constant 6.400000e+01 : f32
    %455 = vector.broadcast %cst_157 : f32 to vector<1x1xf32>
    %456 = arith.divf %454, %455 : vector<1x1xf32>
    %457 = vector.broadcast %456 : vector<1x1xf32> to vector<1x64xf32>
    %458 = arith.subf %450, %457 : vector<1x64xf32>
    %459 = arith.mulf %458, %458 : vector<1x64xf32>
    %cst_158 = arith.constant dense<0.000000e+00> : vector<1xf32>
    %460 = vector.multi_reduction <add>, %459, %cst_158 [1] : vector<1x64xf32> to vector<1xf32>
    %461 = vector.shape_cast %460 : vector<1xf32> to vector<1x1xf32>
    %cst_159 = arith.constant 6.400000e+01 : f32
    %462 = vector.broadcast %cst_159 : f32 to vector<1x1xf32>
    %463 = arith.divf %461, %462 : vector<1x1xf32>
    %464 = vector.broadcast %456 : vector<1x1xf32> to vector<1x64xf32>
    %465 = arith.subf %450, %464 : vector<1x64xf32>
    %cst_160 = arith.constant 9.99999997E-7 : f32
    %466 = vector.broadcast %cst_160 : f32 to vector<1x1xf32>
    %467 = arith.addf %463, %466 : vector<1x1xf32>
    %468 = math.rsqrt %467 : vector<1x1xf32>
    %469 = vector.broadcast %468 : vector<1x1xf32> to vector<1x64xf32>
    %470 = arith.mulf %465, %469 : vector<1x64xf32>
    %471 = arith.mulf %470, %451 : vector<1x64xf32>
    %472 = arith.addf %471, %452 : vector<1x64xf32>
    %c600 = arith.constant 600 : index
    %c0_161 = arith.constant 0 : index
    %473 = vector.load %arg2[%c600, %c0_161] : memref<960x64xf32, #tpu.memory_space<vmem>>, vector<1x64xf32>
    %474 = arith.mulf %472, %473 : vector<1x64xf32>
    %cst_162 = arith.constant dense<0.000000e+00> : vector<1xf32>
    %475 = vector.multi_reduction <add>, %474, %cst_162 [1] : vector<1x64xf32> to vector<1xf32>
    %476 = vector.shape_cast %475 : vector<1xf32> to vector<1x1xf32>
    %c608 = arith.constant 608 : index
    %c0_163 = arith.constant 0 : index
    %477 = vector.load %arg2[%c608, %c0_163] : memref<960x64xf32, #tpu.memory_space<vmem>>, vector<1x1xf32>
    %478 = arith.addf %476, %477 : vector<1x1xf32>
    %479 = arith.negf %478 : vector<1x1xf32>
    %480 = math.exp %479 : vector<1x1xf32>
    %cst_164 = arith.constant 1.000000e+00 : f32
    %481 = vector.broadcast %cst_164 : f32 to vector<1x1xf32>
    %482 = arith.addf %481, %480 : vector<1x1xf32>
    %483 = arith.divf %481, %482 : vector<1x1xf32>
    %484 = vector.extract_strided_slice %449 {offsets = [0, 0], sizes = [1, 64], strides = [1, 1]} : vector<11x64xf32> to vector<1x64xf32>
    %c928 = arith.constant 928 : index
    %c0_165 = arith.constant 0 : index
    %485 = vector.load %arg2[%c928, %c0_165] : memref<960x64xf32, #tpu.memory_space<vmem>>, vector<1x64xf32>
    %c936 = arith.constant 936 : index
    %c0_166 = arith.constant 0 : index
    %486 = vector.load %arg2[%c936, %c0_166] : memref<960x64xf32, #tpu.memory_space<vmem>>, vector<1x64xf32>
    %cst_167 = arith.constant dense<0.000000e+00> : vector<1xf32>
    %487 = vector.multi_reduction <add>, %484, %cst_167 [1] : vector<1x64xf32> to vector<1xf32>
    %488 = vector.shape_cast %487 : vector<1xf32> to vector<1x1xf32>
    %cst_168 = arith.constant 6.400000e+01 : f32
    %489 = vector.broadcast %cst_168 : f32 to vector<1x1xf32>
    %490 = arith.divf %488, %489 : vector<1x1xf32>
    %491 = vector.broadcast %490 : vector<1x1xf32> to vector<1x64xf32>
    %492 = arith.subf %484, %491 : vector<1x64xf32>
    %493 = arith.mulf %492, %492 : vector<1x64xf32>
    %cst_169 = arith.constant dense<0.000000e+00> : vector<1xf32>
    %494 = vector.multi_reduction <add>, %493, %cst_169 [1] : vector<1x64xf32> to vector<1xf32>
    %495 = vector.shape_cast %494 : vector<1xf32> to vector<1x1xf32>
    %cst_170 = arith.constant 6.400000e+01 : f32
    %496 = vector.broadcast %cst_170 : f32 to vector<1x1xf32>
    %497 = arith.divf %495, %496 : vector<1x1xf32>
    %498 = vector.broadcast %490 : vector<1x1xf32> to vector<1x64xf32>
    %499 = arith.subf %484, %498 : vector<1x64xf32>
    %cst_171 = arith.constant 9.99999997E-7 : f32
    %500 = vector.broadcast %cst_171 : f32 to vector<1x1xf32>
    %501 = arith.addf %497, %500 : vector<1x1xf32>
    %502 = math.rsqrt %501 : vector<1x1xf32>
    %503 = vector.broadcast %502 : vector<1x1xf32> to vector<1x64xf32>
    %504 = arith.mulf %499, %503 : vector<1x64xf32>
    %505 = arith.mulf %504, %485 : vector<1x64xf32>
    %506 = arith.addf %505, %486 : vector<1x64xf32>
    %c944 = arith.constant 944 : index
    %c0_172 = arith.constant 0 : index
    %507 = vector.load %arg2[%c944, %c0_172] : memref<960x64xf32, #tpu.memory_space<vmem>>, vector<1x64xf32>
    %508 = arith.mulf %506, %507 : vector<1x64xf32>
    %cst_173 = arith.constant dense<0.000000e+00> : vector<1xf32>
    %509 = vector.multi_reduction <add>, %508, %cst_173 [1] : vector<1x64xf32> to vector<1xf32>
    %510 = vector.shape_cast %509 : vector<1xf32> to vector<1x1xf32>
    %c952 = arith.constant 952 : index
    %c0_174 = arith.constant 0 : index
    %511 = vector.load %arg2[%c952, %c0_174] : memref<960x64xf32, #tpu.memory_space<vmem>>, vector<1x1xf32>
    %512 = arith.addf %510, %511 : vector<1x1xf32>
    %513 = arith.negf %512 : vector<1x1xf32>
    %514 = math.exp %513 : vector<1x1xf32>
    %cst_175 = arith.constant 1.000000e+00 : f32
    %515 = vector.broadcast %cst_175 : f32 to vector<1x1xf32>
    %516 = arith.addf %515, %514 : vector<1x1xf32>
    %517 = arith.divf %515, %516 : vector<1x1xf32>
    %518 = arith.addf %483, %517 : vector<1x1xf32>
    %cst_176 = arith.constant 5.000000e-01 : f32
    %519 = vector.broadcast %cst_176 : f32 to vector<1x1xf32>
    %520 = arith.mulf %519, %518 : vector<1x1xf32>
    %c0_177 = arith.constant 0 : index
    %c0_178 = arith.constant 0 : index
    %521 = vector.load %arg4[%c0_177, %c0_178] : memref<1x1xf32, #tpu.memory_space<vmem>>, vector<1x1xf32>
    tpu.vector_store %arg4[%c0_177, %c0_178], %520 {strides = array<i32>} : memref<1x1xf32, #tpu.memory_space<vmem>>, vector<1x1xf32>,
    return
  }
}

</mosaic_0001>

<bundles_post_ra>
// kernel: muti_modal_forward.1
= control target key start
LH: loop header
LB: loop body
LE: loop exit
PB: predicated region body
PF: predicated region fallthrough
CT: control target
= control target key end

     0   :  { %v3776_v3 = vmov 0.0   ;;  %vm3777_vm0 = vmmov 0   ;;  %s4866_s0 = inlined_call_operand.vmem [shape: f32[80,128], index: 0, kind: input, shape index: {}]   ;;  %s4867_s1 = inlined_call_operand.vmem [shape: f32[16,1], index: 1, kind: input, shape index: {}]   ;;  %s4868_s2 = inlined_call_operand.vmem [shape: f32[960,64], index: 2, kind: input, shape index: {}]   ;;  %s4869_s3 = inlined_call_operand.vmem [shape: f32[304,128], index: 3, kind: input, shape index: {}]   ;;  %s4870_s4 = inlined_call_operand.hbm [shape: f32[1,1], index: 4, kind: output, shape index: {}]  }
   0x1   :  { %v29_v0 = vld [vmem:[%s4868_s2] sm:$0xff]  ;;  %v30_v1 = vld [vmem:[%s4868_s2 + $0x8] sm:$0xff]  ;;  %v31_v2 = vld [vmem:[%s4868_s2 + $0x10] sm:$0xff]  ;;  %3213 = vmatprep.subr.bf16.mxu0 %v3776_v3  ;;  %3229 = vmatprep.mubr.msk.bf16.mxu0 %vm3777_vm0, %v3776_v3 }
   0x2   :  { %v50_v4 = vpack.c.bf16 %v30_v1, %v29_v0  ;;  %v32_v5 = vld [vmem:[%s4868_s2 + $0x18] sm:$0xff]  ;;  %3249 = vmatprep.subr.bf16.mxu1 %v3776_v3  ;;  %3257 = vmatprep.mubr.msk.bf16.mxu1 %vm3777_vm0, %v3776_v3  ;;  %v33_v7 = vld [vmem:[%s4868_s2 + $0x20] sm:$0xff]  ;;  %v34_v8 = vld [vmem:[%s4868_s2 + $0x28] sm:$0xff] }
   0x3   :  { %v51_v6 = vpack.c.bf16 %v32_v5, %v31_v2  ;;  %v52_v9 = vpack.c.bf16 %v34_v8, %v33_v7  ;;  %v35_v10 = vld [vmem:[%s4868_s2 + $0x30] sm:$0xff]  ;;  %v36_v11 = vld [vmem:[%s4868_s2 + $0x38] sm:$0xff]  ;;  %v137_v13 = vld [vmem:[%s4868_s2 + $0xa0] sm:$0xff] }
   0x4   :  { %3214 = vmatpush3.bf16.msra.mxu0 %v50_v4  ;;  %v136_v12 = vld [vmem:[%s4868_s2 + $0x98] sm:$0xff]  ;;  %v138_v14 = vld [vmem:[%s4868_s2 + $0xa8] sm:$0xff]  ;;  %v139_v15 = vld [vmem:[%s4868_s2 + $0xb0] sm:$0xff] }
   0x5   :  { %3215 = vmatprep.subr.bf16.mxu0 %v3776_v3  ;;  %v149_v16 = vpack.c.bf16 %v137_v13, %v136_v12 }
   0x8   :  { %3216 = vmatpush3.bf16.msra.mxu0 %v51_v6 }
   0x9   :  { %3217 = vmatprep.subr.bf16.mxu0 %v3776_v3 }
   0xa   :  { %9 = vsyncpa [#allocation5], 0  ;;  %v53_v17 = vpack.c.bf16 %v36_v11, %v35_v10  ;;  %v37_v18 = vld [vmem:[%s4868_s2 + $0x40] sm:$0xff]  ;;  %v38_v19 = vld [vmem:[%s4868_s2 + $0x48] sm:$0xff]  ;;  %3250 = vmatpush3.bf16.msra.mxu1 %v149_v16  ;;  %v150_v20 = vpack.c.bf16 %v139_v15, %v138_v14  ;;  %vm158_vm1 = vcmask 523264   ;;  %vm432_vm2 = vcmask 516096  }
   0xb   :  { %3251 = vmatprep.subr.bf16.mxu1 %v3776_v3  ;;  %v54_v21 = vpack.c.bf16 %v38_v19, %v37_v18  ;;  %v39_v22 = vld [vmem:[%s4868_s2 + $0x50] sm:$0xff]  ;;  %v40_v23 = vld [vmem:[%s4868_s2 + $0x58] sm:$0xff]  ;;  %v41_v25 = vld [vmem:[%s4868_s2 + $0x60] sm:$0xff]  ;;  %vm385_vm3 = vcmask 654336   ;;  %vm436_vm4 = vcmask 1040384   ;;  %vm444_vm5 = vcmask 523265  }
   0xc   :  { %3218 = vmatpush3.bf16.msra.mxu0 %v52_v9  ;;  %v55_v24 = vpack.c.bf16 %v40_v23, %v39_v22  ;;  %v42_v26 = vld [vmem:[%s4868_s2 + $0x68] sm:$0xff]  ;;  %v43_v28 = vld [vmem:[%s4868_s2 + $0x70] sm:$0xff]  ;;  %v44_v29 = vld [vmem:[%s4868_s2 + $0x78] sm:$0xff]  ;;  %vm446_vm6 = vcmask 518144   ;;  %vm727_vm7 = vcmask 130048   ;;  %s3779_s19 = smov 112  }
   0xd   :  { %3219 = vmatprep.subr.bf16.mxu0 %v3776_v3  ;;  %v56_v27 = vpack.c.bf16 %v42_v26, %v41_v25  ;;  %v57_v30 = vpack.c.bf16 %v44_v29, %v43_v28  ;;  %v19_v31 = vld [vmem:[%s4866_s0] sm:$0xff]  ;;  %v20_v32 = vld [vmem:[%s4866_s0 + $0x8] sm:$0xff]  ;;  %v21_v34 = vld [vmem:[%s4866_s0 + $0x10] sm:$0xff]  ;;  %s3780_s20 = smov 96   ;;  %vm785_vm8 = vcmask 89088   ;;  %vm792_vm9 = vcmask 81920  }
   0xe   :  { %3252 = vmatpush3.bf16.msra.mxu1 %v150_v20  ;;  %v45_v33 = vpack.c.bf16 %v20_v32, %v19_v31  ;;  %v22_v35 = vld [vmem:[%s4866_s0 + $0x18] sm:$0xff]  ;;  %v23_v37 = vld [vmem:[%s4866_s0 + $0x20] sm:$0xff]  ;;  %v24_v38 = vld [vmem:[%s4866_s0 + $0x28] sm:$0xff]  ;;  %s3781_s21 = smov 64   ;;  %s3782_s22 = smov 80   ;;  %vm831_vm10 = vcmask 1044480  }
   0xf   :  { %3253 = vmatprep.subr.bf16.mxu1 %v3776_v3  ;;  %v46_v36 = vpack.c.bf16 %v22_v35, %v21_v34  ;;  %v47_v39 = vpack.c.bf16 %v24_v38, %v23_v37  ;;  %v25_v40 = vld [vmem:[%s4866_s0 + $0x30] sm:$0xff]  ;;  %v26_v41 = vld [vmem:[%s4866_s0 + $0x38] sm:$0xff]  ;;  %v27_v43 = vld [vmem:[%s4866_s0 + $0x40] sm:$0xff]  ;;  %vm832_vm11 = vcmask 1045504   ;;  %s3784_s23 = smov 32   ;;  %s3785_s28 = smov 48  }
  0x10   :  { %3220 = vmatpush3.bf16.msra.mxu0 %v53_v17  ;;  %v48_v42 = vpack.c.bf16 %v26_v41, %v25_v40  ;;  %v28_v44 = vld [vmem:[%s4866_s0 + $0x48] sm:$0xff]  ;;  %v140_v46 = vld [vmem:[%s4868_s2 + $0xb8] sm:$0xff]  ;;  %v141_v47 = vld [vmem:[%s4868_s2 + $0xc0] sm:$0xff]  ;;  %s3786_s10 = smov 16   ;;  %vm2053_vm12 = vcmask 138240   ;;  %vm2057_vm13 = vcmask 133120  }
  0x11   :  { %3221 = vmatprep.subr.bf16.mxu0 %v3776_v3  ;;  %v49_v45 = vpack.c.bf16 %v28_v44, %v27_v43  ;;  %v151_v48 = vpack.c.bf16 %v141_v47, %v140_v46  ;;  %v142_v49 = vld [vmem:[%s4868_s2 + $0xc8] sm:$0xff]  ;;  %v143_v50 = vld [vmem:[%s4868_s2 + $0xd0] sm:$0xff]  ;;  %v2989_v52 = vld [vmem:[%s4868_s2 + $0x80] ss:$0 sm:$0xff]  ;;  %s3787_s0 = smov [#allocation4]   ;;  %vm2973_vm14 = vcmask 0  }
  0x12   :  { %v152_v51 = vpack.c.bf16 %v143_v50, %v142_v49  ;;  %v3991_v25 = vld [vmem:[%s4868_s2 + $0xd8] ss:$0 sm:$0xff]  ;;  %v4000_v38 = vld [vmem:[%s4868_s2 + $0xe0] ss:$0 sm:$0xff] }
  0x13   :  { %3254 = vmatpush3.bf16.msra.mxu1 %v151_v48 }
  0x14   :  { %3222 = vmatpush3.bf16.msra.mxu0 %v54_v21  ;;  %3255 = vmatprep.subr.bf16.mxu1 %v3776_v3 }
  0x15   :  { %3223 = vmatprep.subr.bf16.mxu0 %v3776_v3 }
  0x17   :  { %3256 = vmatpush3.bf16.msra.mxu1 %v152_v51 }
  0x18   :  { %3224 = vmatpush3.bf16.msra.mxu0 %v55_v24  ;;  %3277 = vmatprep.subr.bf16.mxu1 %v3776_v3 }
  0x19   :  { %3225 = vmatprep.subr.bf16.mxu0 %v3776_v3 }
  0x1c   :  { %3226 = vmatpush3.bf16.msra.mxu0 %v56_v27 }
  0x1d   :  { %3227 = vmatprep.subr.bf16.mxu0 %v3776_v3 }
  0x20   :  { %3228 = vmatpush3.bf16.msra.mxu0 %v57_v30 }
  0x23   :  { %3230 = vmatmul.mubr.bf16.vlgmr.msra.gmra.mrb[0].mxu0 %v45_v33 }
  0x24   :  { %3233 = vmatprep.mubr.msk.bf16.mxu0 %vm3777_vm0, %v3776_v3 }
  0x2b   :  { %3234 = vmatmul.mubr.bf16.gmra.mrb[4].mxu0 %v46_v36 }
  0x2c   :  { %3237 = vmatprep.mubr.msk.bf16.mxu0 %vm3777_vm0, %v3776_v3 }
  0x33   :  { %3238 = vmatmul.mubr.bf16.gmra.mrb[8].mxu0 %v47_v39 }
  0x34   :  { %3241 = vmatprep.mubr.msk.bf16.mxu0 %vm3777_vm0, %v3776_v3 }
  0x3b   :  { %3242 = vmatmul.mubr.bf16.gmra.mrb[12].mxu0 %v48_v42 }
  0x3c   :  { %3245 = vmatprep.mubr.msk.bf16.mxu0 %vm3777_vm0, %v3776_v3 }
  0x43   :  { %3246 = vmatmul.mubr.bf16.gmra.mrb[16].mxu0 %v49_v45 }
  0xf6   :  { %v97_v53 = vpop.f32.mrb[0].mxu0 }
  0xf7   :  { %v3231_v54 = vpop.f32.mrb[1].mxu0  ;;  %v3943_v56 = vadd.f32 %v2989_v52, %v97_v53 }
  0xf8   :  { %v100_v55 = vpop.f32.mrb[2].mxu0 }
  0xf9   :  { %v3945_v57 = vadd.f32 %v2989_v52, %v100_v55  ;;  %v3232_v58 = vpop.f32.mrb[3].mxu0 }
  0xfb   :  { %v144_v59 = vpack.c.bf16 %v3945_v57, %v3943_v56 }
  0xfd   :  { %3258 = vmatmul.mubr.msk.bf16.vlgmr.msra.gmra.mrb[0].mxu1 %vm158_vm1, %v144_v59 }
  0xfe   :  { %v105_v60 = vpop.f32.mrb[4].mxu0  ;;  %3261 = vmatprep.mubr.msk.bf16.mxu1 %vm3777_vm0, %v3776_v3 }
  0xff   :  { %v3235_v61 = vpop.f32.mrb[5].mxu0  ;;  %v3952_v63 = vadd.f32 %v2989_v52, %v105_v60 }
 0x100   :  { %v108_v62 = vpop.f32.mrb[6].mxu0 }
 0x101   :  { %v3954_v0 = vadd.f32 %v2989_v52, %v108_v62  ;;  %v3236_v1 = vpop.f32.mrb[7].mxu0 }
 0x103   :  { %v145_v2 = vpack.c.bf16 %v3954_v0, %v3952_v63 }
 0x105   :  { %3262 = vmatmul.mubr.msk.bf16.gmra.mrb[4].mxu1 %vm158_vm1, %v145_v2 }
 0x106   :  { %v113_v4 = vpop.f32.mrb[8].mxu0  ;;  %3265 = vmatprep.mubr.msk.bf16.mxu1 %vm3777_vm0, %v3776_v3 }
 0x107   :  { %v3239_v5 = vpop.f32.mrb[9].mxu0  ;;  %v3961_v7 = vadd.f32 %v2989_v52, %v113_v4 }
 0x108   :  { %v116_v6 = vpop.f32.mrb[10].mxu0 }
 0x109   :  { %v3963_v8 = vadd.f32 %v2989_v52, %v116_v6  ;;  %v3240_v9 = vpop.f32.mrb[11].mxu0 }
 0x10b   :  { %v146_v10 = vpack.c.bf16 %v3963_v8, %v3961_v7 }
 0x10d   :  { %3266 = vmatmul.mubr.msk.bf16.gmra.mrb[8].mxu1 %vm158_vm1, %v146_v10 }
 0x10e   :  { %v121_v11 = vpop.f32.mrb[12].mxu0  ;;  %3269 = vmatprep.mubr.msk.bf16.mxu1 %vm3777_vm0, %v3776_v3 }
 0x10f   :  { %v3243_v12 = vpop.f32.mrb[13].mxu0  ;;  %v3970_v14 = vadd.f32 %v2989_v52, %v121_v11 }
 0x110   :  { %v124_v13 = vpop.f32.mrb[14].mxu0  ;;  %v3778_v12 = vmov 0  }
 0x111   :  { %v3972_v15 = vadd.f32 %v2989_v52, %v124_v13  ;;  %v3244_v16 = vpop.f32.mrb[15].mxu0  ;;  %3608 = vset.pattern.permute.xlu0 %v3778_v12  ;;  %3609 = vset.pattern.permute.xlu1 %v3778_v12 }
 0x113   :  { %v147_v17 = vpack.c.bf16 %v3972_v15, %v3970_v14 }
 0x115   :  { %3270 = vmatmul.mubr.msk.bf16.gmra.mrb[12].mxu1 %vm158_vm1, %v147_v17 }
 0x116   :  { %v129_v18 = vpop.f32.mrb[16].mxu0  ;;  %3273 = vmatprep.mubr.msk.bf16.mxu1 %vm3777_vm0, %v3776_v3 }
 0x117   :  { %v3247_v19 = vpop.f32.mrb[17].mxu0  ;;  %v3979_v21 = vadd.f32 %v2989_v52, %v129_v18 }
 0x118   :  { %v132_v20 = vpop.f32.mrb[18].mxu0 }
 0x119   :  { %v3981_v22 = vadd.f32 %v2989_v52, %v132_v20  ;;  %v3248_v23 = vpop.f32.mrb[19].mxu0 }
 0x11b   :  { %v148_v24 = vpack.c.bf16 %v3981_v22, %v3979_v21 }
 0x11d   :  { %3274 = vmatmul.mubr.msk.bf16.gmra.mrb[16].mxu1 %vm158_vm1, %v148_v24 }
 0x11e   :  { %3287 = vmatprep.mubr.msk.bf16.mxu1 %vm3777_vm0, %v3776_v3 }
 0x1d0   :  { %v208_v26 = vpop.f32.mrb[0].mxu1 }
 0x1d1   :  { %v209_v27 = vadd.f32 %v3991_v25, %v208_v26  ;;  %v3259_v28 = vpop.f32.mrb[1].mxu1 }
 0x1d2   :  { %v211_v29 = vpop.f32.mrb[2].mxu1 }
 0x1d3   :  { %3610 = vtanh.f32 %v209_v27  ;;  %v212_v30 = vadd.f32 %v3991_v25, %v211_v29  ;;  %v3260_v31 = vpop.f32.mrb[3].mxu1 }
 0x1d5   :  { %3612 = vtanh.f32 %v212_v30 }
 0x1d8   :  { %v216_v32 = vpop.f32.mrb[4].mxu1 }
 0x1d9   :  { %v217_v33 = vadd.f32 %v3991_v25, %v216_v32  ;;  %v3263_v34 = vpop.f32.mrb[5].mxu1 }
 0x1da   :  { %v219_v35 = vpop.f32.mrb[6].mxu1 }
 0x1db   :  { %3614 = vtanh.f32 %v217_v33  ;;  %v220_v36 = vadd.f32 %v3991_v25, %v219_v35  ;;  %v3264_v37 = vpop.f32.mrb[7].mxu1  ;;  %v2997_v35 = vld [vmem:[%s4868_s2 + $0xe8] ss:$0 sm:$0xff] }
 0x1dd   :  { %v3611_v39 = vpop.eup %3610  ;;  %3616 = vtanh.f32 %v220_v36 }
 0x1de   :  { %v262_v40 = vmul.f32 %v3611_v39, %v4000_v38 }
 0x1df   :  { %v3613_v41 = vpop.eup %3612 }
 0x1e0   :  { %v224_v42 = vpop.f32.mrb[8].mxu1  ;;  %v272_v43 = vsel %vm158_vm1, %v262_v40, 0.0  ;;  %v263_v44 = vmul.f32 %v3613_v41, %v4000_v38 }
 0x1e1   :  { %v225_v45 = vadd.f32 %v3991_v25, %v224_v42  ;;  %273 = vadd.xlane.f32.xlu0 %v272_v43  ;;  %v3267_v46 = vpop.f32.mrb[9].mxu1 }
 0x1e2   :  { %v227_v47 = vpop.f32.mrb[10].mxu1  ;;  %v275_v50 = vsel %vm158_vm1, %v263_v44, 0.0 }
 0x1e3   :  { %3618 = vtanh.f32 %v225_v45  ;;  %v228_v48 = vadd.f32 %v3991_v25, %v227_v47  ;;  %v3268_v49 = vpop.f32.mrb[11].mxu1 }
 0x1e5   :  { %v3615_v51 = vpop.eup %3614  ;;  %3620 = vtanh.f32 %v228_v48  ;;  %276 = vadd.xlane.f32.xlu0 %v275_v50 }
 0x1e6   :  { %v264_v52 = vmul.f32 %v3615_v51, %v4000_v38 }
 0x1e7   :  { %v3617_v53 = vpop.eup %3616 }
 0x1e8   :  { %v232_v54 = vpop.f32.mrb[12].mxu1  ;;  %v278_v55 = vsel %vm158_vm1, %v264_v52, 0.0  ;;  %v265_v58 = vmul.f32 %v3617_v53, %v4000_v38 }
 0x1e9   :  { %v233_v59 = vadd.f32 %v3991_v25, %v232_v54  ;;  %279 = vadd.xlane.f32.xlu1 %v278_v55  ;;  %v3271_v60 = vpop.f32.mrb[13].mxu1 }
 0x1ea   :  { %v235_v61 = vpop.f32.mrb[14].mxu1  ;;  %v281_v2 = vsel %vm158_vm1, %v265_v58, 0.0  ;;  %v448_v58 = vld [vmem:[%s4867_s1] sm:$0xff]  ;;  %v467_v60 = vld [vmem:[%s4868_s2 + $0xf8] sm:$0xff] }
 0x1eb   :  { %3622 = vtanh.f32 %v233_v59  ;;  %v236_v62 = vadd.f32 %v3991_v25, %v235_v61  ;;  %v3272_v1 = vpop.f32.mrb[15].mxu1  ;;  %v449_v59 = vld [vmem:[%s4867_s1 + $0x8] sm:$0xff]  ;;  %470 = vst.msk [vmem:[#allocation3] sm:$0x1] %vm432_vm2, %v467_v60 }
 0x1ed   :  { %v3619_v4 = vpop.eup %3618  ;;  %3624 = vtanh.f32 %v236_v62  ;;  %282 = vadd.xlane.f32.xlu1 %v281_v2 }
 0x1ee   :  { %v266_v5 = vmul.f32 %v3619_v4, %v4000_v38 }
 0x1ef   :  { %v3621_v6 = vpop.eup %3620 }
 0x1f0   :  { %v240_v9 = vpop.f32.mrb[16].mxu1  ;;  %v284_v10 = vsel %vm158_vm1, %v266_v5, 0.0  ;;  %v267_v11 = vmul.f32 %v3621_v6, %v4000_v38 }
 0x1f1   :  { %v241_v13 = vadd.f32 %v3991_v25, %v240_v9  ;;  %285 = vadd.xlane.f32.xlu0 %v284_v10  ;;  %v3275_v16 = vpop.f32.mrb[17].mxu1 }
 0x1f2   :  { %v243_v17 = vpop.f32.mrb[18].mxu1  ;;  %v287_v18 = vsel %vm158_vm1, %v267_v11, 0.0 }
 0x1f3   :  { %3626 = vtanh.f32 %v241_v13  ;;  %v244_v19 = vadd.f32 %v3991_v25, %v243_v17  ;;  %288 = vadd.xlane.f32.xlu1 %v287_v18  ;;  %v3276_v20 = vpop.f32.mrb[19].mxu1 }
 0x1f5   :  { %v3623_v23 = vpop.eup %3622  ;;  %3628 = vtanh.f32 %v244_v19 }
 0x1f6   :  { %v268_v24 = vmul.f32 %v3623_v23, %v4000_v38 }
 0x1f7   :  { %v3625_v26 = vpop.eup %3624 }
 0x1f8   :  { %v290_v27 = vsel %vm158_vm1, %v268_v24, 0.0  ;;  %v269_v28 = vmul.f32 %v3625_v26, %v4000_v38 }
 0x1f9   :  { %291 = vadd.xlane.f32.xlu0 %v290_v27 }
 0x1fa   :  { %v293_v29 = vsel %vm158_vm1, %v269_v28, 0.0 }
 0x1fb   :  { %294 = vadd.xlane.f32.xlu1 %v293_v29 }
 0x1fd   :  { %v3627_v30 = vpop.eup %3626 }
 0x1fe   :  { %v270_v31 = vmul.f32 %v3627_v30, %v4000_v38 }
 0x1ff   :  { %v3629_v32 = vpop.eup %3628 }
 0x200   :  { %v296_v25 = vsel %vm158_vm1, %v270_v31, 0.0  ;;  %v271_v33 = vmul.f32 %v3629_v32, %v4000_v38 }
 0x201   :  { %297 = vadd.xlane.f32.xlu0 %v296_v25 }
 0x202   :  { %v299_v34 = vsel %vm158_vm1, %v271_v33, 0.0  ;;  %v468_v33 = vld [vmem:[%s4868_s2 + $0x100] sm:$0xff] }
 0x203   :  { %300 = vadd.xlane.f32.xlu1 %v299_v34 }
 0x26e   :  { %v274_v36 = vpop.xlane.xlu0 %273 }
 0x26f   :  { %v307_v37 = vadd.f32 %v2997_v35, %v274_v36 }
 0x271   :  { %321 = vperm.xlu0 %3608, %v307_v37  }
 0x272   :  { %v277_v39 = vpop.xlane.xlu0 %276 }
 0x273   :  { %v308_v40 = vadd.f32 %v2997_v35, %v277_v39  ;;  %v430_v39 = vld [vmem:[%s4868_s2 + $0x88] sm:$0xff] }
 0x274   :  { %433 = vst.msk [vmem:[#allocation2] sm:$0x1] %vm432_vm2, %v430_v39 }
 0x275   :  { %326 = vperm.xlu1 %3609, %v308_v40  }
 0x276   :  { %v280_v41 = vpop.xlane.xlu1 %279 }
 0x277   :  { %v309_v42 = vadd.f32 %v2997_v35, %v280_v41 }
 0x279   :  { %331 = vperm.xlu1 %3609, %v309_v42  }
 0x27a   :  { %v283_v43 = vpop.xlane.xlu1 %282 }
 0x27b   :  { %v310_v44 = vadd.f32 %v2997_v35, %v283_v43 }
 0x27d   :  { %336 = vperm.xlu1 %3609, %v310_v44  }
 0x27e   :  { %v286_v38 = vpop.xlane.xlu0 %285 }
 0x27f   :  { %v311_v45 = vadd.f32 %v2997_v35, %v286_v38  ;;  %v431_v38 = vld [vmem:[%s4868_s2 + $0x90] sm:$0x7] }
 0x280   :  { %v289_v46 = vpop.xlane.xlu1 %288 }
 0x281   :  { %341 = vperm.xlu1 %3609, %v311_v45   ;;  %v312_v47 = vadd.f32 %v2997_v35, %v289_v46 }
 0x285   :  { %346 = vperm.xlu1 %3609, %v312_v47  }
 0x286   :  { %v292_v48 = vpop.xlane.xlu0 %291 }
 0x287   :  { %v313_v49 = vadd.f32 %v2997_v35, %v292_v48 }
 0x288   :  { %v295_v50 = vpop.xlane.xlu1 %294 }
 0x289   :  { %351 = vperm.xlu1 %3609, %v313_v49   ;;  %v314_v51 = vadd.f32 %v2997_v35, %v295_v50 }
 0x28d   :  { %356 = vperm.xlu1 %3609, %v314_v51  }
 0x28e   :  { %v298_v52 = vpop.xlane.xlu0 %297 }
 0x28f   :  { %v315_v53 = vadd.f32 %v2997_v35, %v298_v52 }
 0x290   :  { %v301_v54 = vpop.xlane.xlu1 %300 }
 0x291   :  { %v316_v55 = vadd.f32 %v2997_v35, %v301_v54  ;;  %361 = vperm.xlu1 %3609, %v315_v53  }
 0x293   :  { %366 = vperm.xlu0 %3608, %v316_v55  }
 0x295   :  { %453 = vperm.xlu1 %3609, %v448_v58  }
 0x297   :  { %458 = vperm.xlu0 %3608, %v449_v59  }
 0x2f0   :  { %v322_v61 = vpop.permute.xlu0 %321 }
 0x2f1   :  { %v369_v1 = vmul.f32 %v322_v61, %v3943_v56 }
 0x2f4   :  { %v327_v62 = vpop.permute.xlu1 %326 }
 0x2f5   :  { %v370_v2 = vmul.f32 %v327_v62, %v3945_v57 }
 0x2f7   :  { %v380_v4 = vpack.c.bf16 %v370_v2, %v369_v1 }
 0x2f8   :  { %v332_v5 = vpop.permute.xlu1 %331 }
 0x2f9   :  { %3278 = vmatpush3.bf16.msra.mxu1 %v380_v4  ;;  %v371_v9 = vmul.f32 %v332_v5, %v3952_v63 }
 0x2fa   :  { %3279 = vmatprep.subr.bf16.mxu1 %v3776_v3 }
 0x2fc   :  { %v337_v6 = vpop.permute.xlu1 %336 }
 0x2fd   :  { %v372_v10 = vmul.f32 %v337_v6, %v3954_v0 }
 0x2ff   :  { %v381_v11 = vpack.c.bf16 %v372_v10, %v371_v9 }
 0x300   :  { %v342_v13 = vpop.permute.xlu1 %341 }
 0x301   :  { %3280 = vmatpush3.bf16.msra.mxu1 %v381_v11  ;;  %v373_v56 = vmul.f32 %v342_v13, %v3961_v7  ;;  %v2999_v7 = vld [vmem:[%s4868_s2 + $0xf0] ss:$0 sm:$0xff] }
 0x302   :  { %3281 = vmatprep.subr.bf16.mxu1 %v3776_v3 }
 0x304   :  { %v347_v16 = vpop.permute.xlu1 %346 }
 0x305   :  { %v374_v57 = vmul.f32 %v347_v16, %v3963_v8 }
 0x307   :  { %v382_v17 = vpack.c.bf16 %v374_v57, %v373_v56 }
 0x308   :  { %v352_v18 = vpop.permute.xlu1 %351 }
 0x309   :  { %3282 = vmatpush3.bf16.msra.mxu1 %v382_v17  ;;  %v375_v63 = vmul.f32 %v352_v18, %v3970_v14  ;;  %v317_v14 = vld [vmem:[%s4869_s3] sm:$0xff] }
 0x30a   :  { %3283 = vmatprep.subr.bf16.mxu1 %v3776_v3 }
 0x30c   :  { %v357_v19 = vpop.permute.xlu1 %356 }
 0x30d   :  { %v376_v0 = vmul.f32 %v357_v19, %v3972_v15  ;;  %v318_v15 = vld [vmem:[%s4869_s3 + $0x8] sm:$0x3] }
 0x30e   :  { %v379_v31 = vpack.c.bf16 %v318_v15, %v317_v14  ;;  %v649_v14 = vld [vmem:[%s4869_s3 + $0x10] sm:$0xff]  ;;  %v650_v15 = vld [vmem:[%s4869_s3 + $0x18] sm:$0xff] }
 0x30f   :  { %v383_v20 = vpack.c.bf16 %v376_v0, %v375_v63 }
 0x310   :  { %v362_v23 = vpop.permute.xlu1 %361 }
 0x311   :  { %3284 = vmatpush3.bf16.msra.mxu1 %v383_v20  ;;  %v377_v8 = vmul.f32 %v362_v23, %v3979_v21  ;;  %v469_v21 = vld [vmem:[%s4868_s2 + $0x108] sm:$0x1] }
 0x312   :  { %v367_v24 = vpop.permute.xlu0 %366  ;;  %3285 = vmatprep.subr.bf16.mxu1 %v3776_v3 }
 0x313   :  { %v378_v26 = vmul.f32 %v367_v24, %v3981_v22 }
 0x314   :  { %v454_v27 = vpop.permute.xlu1 %453 }
 0x315   :  { %v384_v28 = vpack.c.bf16 %v378_v26, %v377_v8  ;;  %v465_v29 = vmul.f32 %v2999_v7, %v454_v27  ;;  %v658_v27 = vpack.c.bf16 %v650_v15, %v649_v14 }
 0x316   :  { %v459_v30 = vpop.permute.xlu0 %458 }
 0x317   :  { %v473_v32 = vrot.slane %v465_v29, 7  ;;  %v466_v25 = vmul.f32 %v2999_v7, %v459_v30  ;;  %3286 = vmatpush3.bf16.msra.mxu1 %v384_v28  ;;  %v651_v28 = vld [vmem:[%s4869_s3 + $0x20] sm:$0xff]  ;;  %v652_v29 = vld [vmem:[%s4869_s3 + $0x28] sm:$0xff] }
 0x318   :  { %3303 = vmatprep.subr.bf16.mxu1 %v3776_v3  ;;  %v659_v30 = vpack.c.bf16 %v652_v29, %v651_v28 }
 0x319   :  { %v479_v22 = vadd.f32 %v473_v32, %v467_v60  ;;  %v474_v34 = vrot.slane %v466_v25, 7 }
 0x31a   :  { %3288 = vmatmul.mubr.msk.bf16.vlgmr.msra.gmra.mrb[20].mxu1 %vm385_vm3, %v379_v31  ;;  %v576_v31 = vld [vmem:[%s4868_s2 + $0x120] sm:$0xff] }
 0x31b   :  { %482 = vst.msk [vmem:[#allocation3] sm:$0xfe] %vm444_vm5, %v479_v22  ;;  %v475_v35 = vsel %vm436_vm4, %v473_v32, %v474_v34  ;;  %v481_v36 = vadd.f32 %v474_v34, %v469_v21  ;;  %3311 = vmatprep.mubr.msk.bf16.mxu1 %vm3777_vm0, %v3776_v3  ;;  %3304 = vmatpush3.bf16.msra.mxu1 %v658_v27  ;;  %v577_v32 = vld [vmem:[%s4868_s2 + $0x128] sm:$0xff]  ;;  %v653_v21 = vld [vmem:[%s4869_s3 + $0x30] sm:$0xff]  ;;  %v654_v22 = vld [vmem:[%s4869_s3 + $0x38] sm:$0xff] }
 0x31c   :  { %v480_v37 = vadd.f32 %v475_v35, %v468_v33  ;;  %3305 = vmatprep.subr.bf16.mxu1 %v3776_v3  ;;  %v586_v25 = vpack.c.bf16 %v577_v32, %v576_v31  ;;  %v660_v33 = vpack.c.bf16 %v654_v22, %v653_v21  ;;  %v578_v34 = vld [vmem:[%s4868_s2 + $0x130] sm:$0xff]  ;;  %v579_v35 = vld [vmem:[%s4868_s2 + $0x138] sm:$0xff] }
 0x31d   :  { %484 = vst.msk [vmem:[#allocation3 + $0x10] sm:$0x1] %vm432_vm2, %v481_v36  ;;  %v587_v36 = vpack.c.bf16 %v579_v35, %v578_v34 }
 0x31e   :  { %483 = vst.msk [vmem:[#allocation3 + $0x8] sm:$0xff] %vm158_vm1, %v480_v37  ;;  %3291 = vmatprep.subr.bf16.mxu0 %v586_v25  ;;  %v655_v37 = vld [vmem:[%s4869_s3 + $0x40] sm:$0xff] }
 0x31f   :  { %3306 = vmatpush3.bf16.msra.mxu1 %v659_v30  ;;  %3292 = vmatpush3.bf16.msra.mxu0 %v586_v25 }
 0x320   :  { %3307 = vmatprep.subr.bf16.mxu1 %v3776_v3  ;;  %3293 = vmatprep.subr.bf16.mxu0 %v587_v36 }
 0x322   :  { %v487_v55 = vld [vmem:[#allocation3] sm:$0xff] }
 0x323   :  { %v531_v58 = vsel %vm158_vm1, %v487_v55, 0.0  ;;  %3308 = vmatpush3.bf16.msra.mxu1 %v660_v33  ;;  %3294 = vmatpush3.bf16.msra.mxu0 %v587_v36  ;;  %v3005_v36 = vld [vmem:[%s4869_s3 + $0x50] ss:$0 sm:$0xff] }
 0x324   :  { %v489_v59 = vld [vmem:[#allocation3 + $0x10] sm:$0x1]  ;;  %3309 = vmatprep.subr.bf16.mxu1 %v3776_v3 }
 0x325   :  { %v488_v51 = vld [vmem:[#allocation3 + $0x8] sm:$0xff]  ;;  %v537_v60 = vsel %vm432_vm2, %v489_v59, 0.0 }
 0x326   :  { %v534_v54 = vsel %vm158_vm1, %v488_v51, 0.0 }
 0x3ed   :  { %v423_v40 = vpop.f32.mrb[20].mxu1 }
 0x3ee   :  { %v437_v41 = vrot.slane %v423_v40, 7  ;;  %v3289_v42 = vpop.f32.mrb[21].mxu1 }
 0x3ef   :  { %v426_v43 = vpop.f32.mrb[22].mxu1  ;;  %v581_v42 = vld [vmem:[%s4868_s2 + $0x148] sm:$0xff] }
 0x3f0   :  { %v442_v44 = vadd.f32 %v437_v41, %v430_v39  ;;  %v438_v45 = vrot.slane %v426_v43, 7  ;;  %v3290_v46 = vpop.f32.mrb[23].mxu1  ;;  %v656_v39 = vld [vmem:[%s4869_s3 + $0x48] sm:$0xff] }
 0x3f1   :  { %v661_v40 = vpack.c.bf16 %v656_v39, %v655_v37 }
 0x3f2   :  { %445 = vst.msk [vmem:[#allocation2] sm:$0xfe] %vm444_vm5, %v442_v44  ;;  %v439_v47 = vsel %vm436_vm4, %v437_v41, %v438_v45  ;;  %v580_v41 = vld [vmem:[%s4868_s2 + $0x140] sm:$0xff]  ;;  %v582_v44 = vld [vmem:[%s4868_s2 + $0x150] sm:$0xff] }
 0x3f3   :  { %v443_v48 = vadd.f32 %v439_v47, %v431_v38  ;;  %3310 = vmatpush3.bf16.msra.mxu1 %v661_v40  ;;  %v588_v43 = vpack.c.bf16 %v581_v42, %v580_v41  ;;  %v583_v38 = vld [vmem:[%s4868_s2 + $0x158] sm:$0xff] }
 0x3f4   :  { %v589_v45 = vpack.c.bf16 %v583_v38, %v582_v44  ;;  %v3002_v38 = vld [vmem:[%s4868_s2 + $0x160] ss:$0 sm:$0xff] }
 0x3f5   :  { %447 = vst.msk [vmem:[#allocation2 + $0x8] sm:$0x7] %vm446_vm6, %v443_v48  ;;  %3295 = vmatprep.subr.bf16.mxu0 %v588_v43 }
 0x3f6   :  { %3296 = vmatpush3.bf16.msra.mxu0 %v588_v43 }
 0x3f7   :  { %3297 = vmatprep.subr.bf16.mxu0 %v589_v45 }
 0x3f9   :  { %v485_v49 = vld [vmem:[#allocation2] sm:$0xff] }
 0x3fa   :  { %v492_v50 = vsel %vm158_vm1, %v485_v49, 0.0  ;;  %3298 = vmatpush3.bf16.msra.mxu0 %v589_v45 }
 0x3fb   :  { %493 = vadd.xlane.f32.xlu1 %v492_v50 }
 0x3fc   :  { %v486_v52 = vld [vmem:[#allocation2 + $0x8] sm:$0x7] }
 0x3fd   :  { %v495_v53 = vsel %vm446_vm6, %v486_v52, 0.0 }
 0x3fe   :  { %496 = vadd.xlane.f32.xlu0 %v495_v53 }
 0x3ff   :  { %535 = vadd.xlane.f32.xlu1 %v534_v54 }
 0x402   :  { %532 = vadd.xlane.f32.xlu0 %v531_v58 }
 0x406   :  { %538 = vadd.xlane.f32.xlu0 %v537_v60 }
 0x488   :  { %v494_v61 = vpop.xlane.xlu1 %493 }
 0x489   :  { %v499_v62 = vmul.f32 0.015625, %v494_v61 }
 0x48b   :  { %v4094_v1 = vsub.f32 %v485_v49, %v499_v62  ;;  %v497_v2 = vpop.xlane.xlu0 %496 }
 0x48c   :  { %v500_v4 = vmul.f32 0.015625, %v497_v2  ;;  %v536_v5 = vpop.xlane.xlu1 %535 }
 0x48d   :  { %v541_v6 = vmul.f32 0.015625, %v536_v5  ;;  %v503_v9 = vmul.f32 %v4094_v1, %v4094_v1  ;;  %v4176_v5 = vld [vmem:[%s4868_s2 + $0x268] ss:$0 sm:$0xff] }
 0x48e   :  { %v4098_v10 = vsub.f32 %v486_v52, %v500_v4  ;;  %v3000_v4 = vld [vmem:[%s4868_s2 + $0x110] ss:$0 sm:$0xff] }
 0x48f   :  { %v4100_v11 = vsub.f32 %v488_v51, %v541_v6  ;;  %v533_v13 = vpop.xlane.xlu0 %532  ;;  %v505_v16 = vsel %vm158_vm1, %v503_v9, 0.0 }
 0x490   :  { %v540_v56 = vmul.f32 0.015625, %v533_v13  ;;  %506 = vadd.xlane.f32.xlu1 %v505_v16  ;;  %v504_v57 = vmul.f32 %v4098_v10, %v4098_v10 }
 0x491   :  { %v547_v19 = vmul.f32 %v4100_v11, %v4100_v11 }
 0x492   :  { %v4105_v17 = vsub.f32 %v487_v55, %v540_v56  ;;  %v508_v18 = vsel %vm446_vm6, %v504_v57, 0.0  ;;  %v3001_v57 = vld [vmem:[%s4868_s2 + $0x118] ss:$0 sm:$0xff] }
 0x493   :  { %509 = vadd.xlane.f32.xlu0 %v508_v18  ;;  %v539_v63 = vpop.xlane.xlu0 %538  ;;  %v552_v24 = vsel %vm158_vm1, %v547_v19, 0.0  ;;  %v4187_v18 = vld [vmem:[%s4868_s2 + $0x270] ss:$0 sm:$0xff] }
 0x494   :  { %v542_v0 = vmul.f32 0.015625, %v539_v63  ;;  %v546_v20 = vmul.f32 %v4105_v17, %v4105_v17 }
 0x496   :  { %v4112_v23 = vsub.f32 %v489_v59, %v542_v0  ;;  %v549_v7 = vsel %vm158_vm1, %v546_v20, 0.0 }
 0x497   :  { %553 = vadd.xlane.f32.xlu0 %v552_v24  ;;  %550 = vadd.xlane.f32.xlu1 %v549_v7 }
 0x498   :  { %v548_v8 = vmul.f32 %v4112_v23, %v4112_v23 }
 0x49a   :  { %v555_v26 = vsel %vm432_vm2, %v548_v8, 0.0 }
 0x49b   :  { %556 = vadd.xlane.f32.xlu1 %v555_v26 }
 0x51d   :  { %v507_v46 = vpop.xlane.xlu1 %506 }
 0x51e   :  { %v511_v47 = vmul.f32 0.015625, %v507_v46 }
 0x520   :  { %v513_v48 = vadd.f32 1e-05, %v511_v47  ;;  %v510_v49 = vpop.xlane.xlu0 %509 }
 0x521   :  { %v512_v50 = vmul.f32 0.015625, %v510_v49 }
 0x522   :  { %3630 = vrsqrt.f32 %v513_v48 }
 0x523   :  { %v514_v51 = vadd.f32 1e-05, %v512_v50 }
 0x524   :  { %v551_v52 = vpop.xlane.xlu1 %550  ;;  %v554_v53 = vpop.xlane.xlu0 %553 }
 0x525   :  { %3632 = vrsqrt.f32 %v514_v51  ;;  %v558_v54 = vmul.f32 0.015625, %v551_v52  ;;  %v559_v55 = vmul.f32 0.015625, %v554_v53 }
 0x527   :  { %v561_v58 = vadd.f32 1e-05, %v558_v54  ;;  %v562_v59 = vadd.f32 1e-05, %v559_v55 }
 0x528   :  { %v557_v60 = vpop.xlane.xlu1 %556 }
 0x529   :  { %3634 = vrsqrt.f32 %v561_v58  ;;  %v560_v61 = vmul.f32 0.015625, %v557_v60 }
 0x52a   :  { %3636 = vrsqrt.f32 %v562_v59 }
 0x52b   :  { %v563_v62 = vadd.f32 1e-05, %v560_v61 }
 0x52c   :  { %v3631_v2 = vpop.eup %3630 }
 0x52d   :  { %v517_v6 = vmul.f32 %v3631_v2, %v4094_v1  ;;  %3638 = vrsqrt.f32 %v563_v62 }
 0x52f   :  { %v3633_v9 = vpop.eup %3632  ;;  %v523_v13 = vmul.f32 %v3000_v4, %v517_v6  ;;  %v1848_v16 = vmul.f32 %v4176_v5, %v517_v6 }
 0x530   :  { %v518_v56 = vmul.f32 %v3633_v9, %v4098_v10 }
 0x531   :  { %v529_v0 = vadd.f32 %v3001_v57, %v523_v13  ;;  %v4192_v10 = vadd.f32 %v4187_v18, %v1848_v16 }
 0x532   :  { %v524_v19 = vmul.f32 %v3000_v4, %v518_v56  ;;  %v1849_v63 = vmul.f32 %v4176_v5, %v518_v56 }
 0x533   :  { %v3635_v1 = vpop.eup %3634 }
 0x534   :  { %v3637_v20 = vpop.eup %3636  ;;  %v567_v24 = vmul.f32 %v3635_v1, %v4105_v17  ;;  %v530_v7 = vadd.f32 %v3001_v57, %v524_v19  ;;  %v4195_v8 = vadd.f32 %v4187_v18, %v1849_v63 }
 0x535   :  { %v568_v26 = vmul.f32 %v3637_v20, %v4100_v11 }
 0x536   :  { %v657_v14 = vpack.c.bf16 %v530_v7, %v529_v0  ;;  %v570_v15 = vmul.f32 %v3000_v4, %v567_v24  ;;  %v1860_v27 = vpack.c.bf16 %v4195_v8, %v4192_v10  ;;  %v1838_v28 = vmul.f32 %v4176_v5, %v567_v24 }
 0x537   :  { %v3639_v29 = vpop.eup %3638  ;;  %v571_v30 = vmul.f32 %v3000_v4, %v568_v26  ;;  %v1839_v17 = vmul.f32 %v4176_v5, %v568_v26 }
 0x538   :  { %v4203_v31 = vmul.f32 %v3639_v29, %v4112_v23  ;;  %3312 = vmatmul.mubr.msk.bf16.vlgmr.msra.gmra.mrb[24].mxu1 %vm158_vm1, %v657_v14  ;;  %v573_v32 = vadd.f32 %v3001_v57, %v570_v15  ;;  %v4207_v25 = vadd.f32 %v4187_v18, %v1838_v28 }
 0x539   :  { %v574_v11 = vadd.f32 %v3001_v57, %v571_v30  ;;  %v4210_v21 = vadd.f32 %v4187_v18, %v1839_v17 }
 0x53a   :  { %v572_v22 = vmul.f32 %v3000_v4, %v4203_v31  ;;  %v1840_v8 = vmul.f32 %v4176_v5, %v4203_v31  ;;  %v1755_v5 = vld [vmem:[%s4868_s2 + $0x1c8] sm:$0xff] }
 0x53b   :  { %v584_v33 = vpack.c.bf16 %v574_v11, %v573_v32  ;;  %v1922_v34 = vpack.c.bf16 %v4210_v21, %v4207_v25  ;;  %v1754_v21 = vld [vmem:[%s4868_s2 + $0x1c0] sm:$0xff] }
 0x53c   :  { %v575_v35 = vadd.f32 %v3001_v57, %v572_v22  ;;  %v1772_v31 = vpack.c.bf16 %v1755_v5, %v1754_v21 }
 0x53d   :  { %3299 = vmatprep.mubr.msk.bf16.mxu0 %vm158_vm1, %v584_v33 }
 0x53e   :  { %v585_v23 = vpack.c.bf16 %v575_v35, %v575_v35 }
 0x540   :  { %3300 = vmatmul.mubr.msk.bf16.vlgmr.msra.gmra.mrb[20].mxu0 %vm158_vm1, %v585_v23 }
 0x60b   :  { %v704_v37 = vpop.f32.mrb[24].mxu1 }
 0x60c   :  { %v3313_v39 = vpop.f32.mrb[25].mxu1  ;;  %v705_v41 = vadd.f32 %v3005_v36, %v704_v37 }
 0x60d   :  { %v707_v40 = vpop.f32.mrb[26].mxu1 }
 0x60e   :  { %v708_v42 = vadd.f32 %v3005_v36, %v707_v40  ;;  %v3314_v43 = vpop.f32.mrb[27].mxu1 }
 0x610   :  { %v4220_v44 = vpack.c.bf16 %v708_v42, %v705_v41 }
 0x612   :  { %955 = vrot.lane.b32.xlu0 %v4220_v44, %s3779_s19  ;;  %3592 = vmatprep.subr.msk.bf16.mxu0 %vm727_vm7, %v4220_v44  ;;  %v735_v45 = vsel %vm727_vm7, %v4220_v44, 0 }
 0x613   :  { %v3301_v46 = vpop.f32.mrb[20].mxu0  ;;  %3316 = vmatpush3.bf16.xpose.msra.mxu0 %v735_v45 }
 0x614   :  { %v644_v47 = vadd.f32 %v3301_v46, %v3002_v38  ;;  %v635_v48 = vpop.f32.mrb[21].mxu0 }
 0x615   :  { %v3302_v49 = vpop.f32.mrb[22].mxu0  ;;  %v636_v51 = vadd.f32 %v3002_v38, %v635_v48 }
 0x616   :  { %1171 = vrot.lane.b32.xlu0 %v4220_v44, %s3780_s20  ;;  %v638_v50 = vpop.f32.mrb[23].mxu0  ;;  %v4233_v53 = vpack.c.bf16 %v644_v47, %v644_v47 }
 0x617   :  { %v639_v52 = vadd.f32 %v3002_v38, %v638_v50 }
 0x619   :  { %v4235_v54 = vpack.c.bf16 %v639_v52, %v636_v51 }
 0x61a   :  { %1169 = vrot.lane.b32.xlu0 %v4233_v53, %s3780_s20 }
 0x61b   :  { %951 = vrot.lane.b32.xlu1 %v4235_v54, %s3779_s19  ;;  %3317 = vmatprep.mubr.msk.bf16.mxu0 %vm727_vm7, %v4235_v54 }
 0x61c   :  { %3318 = vmatmul.mubr.msk.bf16.vlgmr.msra.gmra.mrb[24].mxu0 %vm727_vm7, %v4233_v53 }
 0x61f   :  { %953 = vrot.lane.b32.xlu1 %v4233_v53, %s3779_s19 }
 0x623   :  { %1167 = vrot.lane.b32.xlu1 %v4235_v54, %s3780_s20 }
 0x684   :  { %v956_v55 = vpop.permute.xlu0 %955 }
 0x685   :  { %v964_v58 = vsel %vm727_vm7, %v956_v55, 0  ;;  %3593 = vmatprep.subr.msk.bf16.mxu1 %vm727_vm7, %v956_v55 }
 0x686   :  { %3334 = vmatpush3.bf16.xpose.msra.mxu1 %v964_v58 }
 0x688   :  { %v1172_v59 = vpop.permute.xlu0 %1171 }
 0x689   :  { %3594 = vmatprep.subr.msk.bf16.mxu1 %vm727_vm7, %v1172_v59  ;;  %v1180_v62 = vsel %vm727_vm7, %v1172_v59, 0 }
 0x68c   :  { %v1170_v4 = vpop.permute.xlu0 %1169 }
 0x68d   :  { %v952_v60 = vpop.permute.xlu1 %951 }
 0x68e   :  { %3335 = vmatprep.mubr.msk.bf16.mxu1 %vm727_vm7, %v952_v60 }
 0x691   :  { %v954_v61 = vpop.permute.xlu1 %953 }
 0x692   :  { %3336 = vmatmul.mubr.msk.bf16.vlgmr.msra.gmra.mrb[28].mxu1 %vm727_vm7, %v954_v61 }
 0x693   :  { %3352 = vmatpush3.bf16.xpose.msra.mxu1 %v1180_v62 }
 0x695   :  { %v1168_v2 = vpop.permute.xlu1 %1167 }
 0x696   :  { %3353 = vmatprep.mubr.msk.bf16.mxu1 %vm727_vm7, %v1168_v2 }
 0x69a   :  { %3354 = vmatmul.mubr.msk.bf16.vlgmr.msra.gmra.mrb[32].mxu1 %vm727_vm7, %v1170_v4  ;;  %v3783_v4 = vmov 65535  }
 0x6ef   :  { %v3319_v6 = vpop.f32.mrb[24].mxu0 }
 0x6f0   :  { %v771_v9 = vpop.f32.mrb[25].mxu0  ;;  %v793_v19 = vsel %vm792_vm9, %v3319_v6, -inf }
 0x6f1   :  { %v3320_v13 = vpop.f32.mrb[26].mxu0  ;;  %v786_v16 = vsel %vm785_vm8, %v771_v9, -inf }
 0x6f2   :  { %787 = vmax.xlane.f32.xlu1 %v786_v16  ;;  %v774_v56 = vpop.f32.mrb[27].mxu0 }
 0x6f3   :  { %v789_v57 = vsel %vm785_vm8, %v774_v56, -inf }
 0x6f4   :  { %790 = vmax.xlane.f32.xlu0 %v789_v57 }
 0x6f8   :  { %794 = vmax.xlane.f32.xlu0 %v793_v19 }
 0x765   :  { %v4260_v63 = vpop.f32.mrb[28].mxu1 }
 0x766   :  { %v4262_v1 = vpop.f32.mrb[29].mxu1  ;;  %v1020_v45 = vsel %vm792_vm9, %v4260_v63, -inf }
 0x767   :  { %v3338_v0 = vpop.f32.mrb[30].mxu1  ;;  %v1014_v38 = vsel %vm785_vm8, %v4262_v1, -inf }
 0x768   :  { %v4264_v20 = vpop.f32.mrb[31].mxu1 }
 0x76d   :  { %v3355_v24 = vpop.f32.mrb[32].mxu1 }
 0x76e   :  { %v1216_v7 = vpop.f32.mrb[33].mxu1  ;;  %v1236_v29 = vsel %vm792_vm9, %v3355_v24, -inf }
 0x76f   :  { %v3356_v26 = vpop.f32.mrb[34].mxu1  ;;  %v1230_v14 = vsel %vm785_vm8, %v1216_v7, -inf }
 0x770   :  { %v1219_v15 = vpop.f32.mrb[35].mxu1  ;;  %1231 = vmax.xlane.f32.xlu1 %v1230_v14 }
 0x771   :  { %v1233_v28 = vsel %vm785_vm8, %v1219_v15, -inf }
 0x772   :  { %1234 = vmax.xlane.f32.xlu0 %v1233_v28 }
 0x774   :  { %1237 = vmax.xlane.f32.xlu1 %v1236_v29  ;;  %v1017_v29 = vsel %vm785_vm8, %v4264_v20, -inf }
 0x77f   :  { %v788_v30 = vpop.xlane.xlu1 %787 }
 0x780   :  { %v796_v17 = vsub.f32 %v771_v9, %v788_v30 }
 0x781   :  { %v791_v32 = vpop.xlane.xlu0 %790 }
 0x782   :  { %v799_v11 = vmul.f32 1.442695, %v796_v17  ;;  %v797_v22 = vsub.f32 %v774_v56, %v791_v32 }
 0x784   :  { %3640 = vpow2.f32 %v799_v11  ;;  %v801_v33 = vmul.f32 1.442695, %v797_v22 }
 0x785   :  { %v795_v35 = vpop.xlane.xlu0 %794 }
 0x786   :  { %3642 = vpow2.f32 %v801_v33  ;;  %v798_v23 = vsub.f32 %v3319_v6, %v795_v35  ;;  %v833_v6 = vsel %vm831_vm10, 4294967295, %v3783_v4 }
 0x787   :  { %v4296_v13 = vsel %vm832_vm11, %v833_v6, 0 }
 0x788   :  { %v803_v36 = vmul.f32 1.442695, %v798_v23 }
 0x78a   :  { %3644 = vpow2.f32 %v803_v36 }
 0x78e   :  { %v3641_v37 = vpop.eup %3640 }
 0x78f   :  { %v805_v39 = vsel %vm785_vm8, %v3641_v37, 0.0 }
 0x790   :  { %v3643_v40 = vpop.eup %3642  ;;  %806 = vadd.xlane.f32.xlu0 %v805_v39 }
 0x791   :  { %v808_v41 = vsel %vm785_vm8, %v3643_v40, 0.0 }
 0x792   :  { %809 = vadd.xlane.f32.xlu1 %v808_v41 }
 0x794   :  { %v3645_v42 = vpop.eup %3644 }
 0x795   :  { %v811_v43 = vsel %vm792_vm9, %v3645_v42, 0.0 }
 0x796   :  { %812 = vadd.xlane.f32.xlu0 %v811_v43 }
 0x7a3   :  { %823 = vrot.lane.b32.xlu1 %v4220_v44, %s3781_s21 }
 0x7a7   :  { %1387 = vrot.lane.b32.xlu1 %v4220_v44, %s3782_s22 }
 0x7ab   :  { %1383 = vrot.lane.b32.xlu1 %v4235_v54, %s3782_s22 }
 0x7af   :  { %1385 = vrot.lane.b32.xlu1 %v4233_v53, %s3782_s22 }
 0x7d3   :  { %1015 = vmax.xlane.f32.xlu1 %v1014_v38 }
 0x7d7   :  { %1021 = vmax.xlane.f32.xlu1 %v1020_v45 }
 0x7fd   :  { %v1232_v46 = vpop.xlane.xlu1 %1231 }
 0x7fe   :  { %v1239_v47 = vsub.f32 %v1216_v7, %v1232_v46 }
 0x7ff   :  { %v1235_v48 = vpop.xlane.xlu0 %1234 }
 0x800   :  { %v1242_v51 = vmul.f32 1.442695, %v1239_v47  ;;  %v1240_v52 = vsub.f32 %v1219_v15, %v1235_v48 }
 0x801   :  { %v1238_v49 = vpop.xlane.xlu1 %1237 }
 0x802   :  { %v1241_v50 = vsub.f32 %v3355_v24, %v1238_v49  ;;  %v1244_v54 = vmul.f32 1.442695, %v1240_v52 }
 0x804   :  { %v1246_v55 = vmul.f32 1.442695, %v1241_v50 }
 0x806   :  { %3646 = vpow2.f32 %v1246_v55 }
 0x807   :  { %3648 = vpow2.f32 %v1242_v51 }
 0x808   :  { %3650 = vpow2.f32 %v1244_v54 }
 0x810   :  { %v4284_v53 = vpop.eup %3646 }
 0x811   :  { %v1254_v58 = vsel %vm792_vm9, %v4284_v53, 0.0  ;;  %v4288_v59 = vpop.eup %3648 }
 0x812   :  { %1255 = vadd.xlane.f32.xlu0 %v1254_v58  ;;  %v1248_v60 = vsel %vm785_vm8, %v4288_v59, 0.0  ;;  %v4292_v61 = vpop.eup %3650 }
 0x813   :  { %v1251_v62 = vsel %vm785_vm8, %v4292_v61, 0.0 }
 0x816   :  { %1249 = vadd.xlane.f32.xlu0 %v1248_v60 }
 0x81a   :  { %1252 = vadd.xlane.f32.xlu0 %v1251_v62 }
 0x81d   :  { %v807_v2 = vpop.xlane.xlu0 %806 }
 0x81e   :  { %3652 = vrcp.f32 %v807_v2 }
 0x81f   :  { %v810_v9 = vpop.xlane.xlu1 %809 }
 0x820   :  { %3654 = vrcp.f32 %v810_v9 }
 0x823   :  { %v824_v16 = vpop.permute.xlu1 %823  ;;  %v813_v56 = vpop.xlane.xlu0 %812 }
 0x824   :  { %v836_v57 = vand.u32 %v4296_v13, %v824_v16  ;;  %3656 = vrcp.f32 %v813_v56 }
 0x826   :  { %3321 = vmatprep.subr.bf16.mxu0 %v836_v57 }
 0x827   :  { %3322 = vmatpush3.bf16.msra.mxu0 %v836_v57  ;;  %v1388_v30 = vpop.permute.xlu1 %1387 }
 0x828   :  { %v3653_v19 = vpop.eup %3652  ;;  %v1396_v60 = vsel %vm727_vm7, %v1388_v30, 0 }
 0x829   :  { %v817_v24 = vmul.f32 %v3653_v19, %v3641_v37 }
 0x82a   :  { %v3655_v0 = vpop.eup %3654 }
 0x82b   :  { %v818_v7 = vmul.f32 %v3655_v0, %v3643_v40  ;;  %v1384_v17 = vpop.permute.xlu1 %1383 }
 0x82d   :  { %v820_v26 = vpack.c.bf16 %v818_v7, %v817_v24 }
 0x82e   :  { %v3657_v14 = vpop.eup %3656 }
 0x82f   :  { %v819_v15 = vmul.f32 %v3657_v14, %v3645_v42  ;;  %3323 = vmatprep.mubr.msk.bf16.mxu0 %vm785_vm8, %v820_v26  ;;  %v1386_v32 = vpop.permute.xlu1 %1385 }
 0x830   :  { %1265 = vrot.lane.b32.xlu0 %v4220_v44, %s3784_s23 }
 0x831   :  { %v821_v28 = vpack.c.bf16 %v819_v15, %v819_v15 }
 0x833   :  { %3324 = vmatmul.mubr.msk.bf16.vlgmr.msra.gmra.mrb[28].mxu0 %vm785_vm8, %v821_v28 }
 0x84f   :  { %1018 = vmax.xlane.f32.xlu0 %v1017_v29 }
 0x860   :  { %v1016_v11 = vpop.xlane.xlu1 %1015 }
 0x861   :  { %v1023_v22 = vsub.f32 %v4262_v1, %v1016_v11  ;;  %v714_v1 = vld [vmem:[%s4868_s2 + $0x168] sm:$0xff] }
 0x863   :  { %v1026_v33 = vmul.f32 1.442695, %v1023_v22 }
 0x864   :  { %v1022_v35 = vpop.xlane.xlu1 %1021 }
 0x865   :  { %3658 = vpow2.f32 %v1026_v33  ;;  %v1025_v23 = vsub.f32 %v4260_v63, %v1022_v35  ;;  %v715_v63 = vld [vmem:[%s4868_s2 + $0x170] sm:$0xff] }
 0x866   :  { %v722_v42 = vpack.c.bf16 %v715_v63, %v714_v1 }
 0x867   :  { %v1030_v36 = vmul.f32 1.442695, %v1025_v23 }
 0x868   :  { %3327 = vmatprep.subr.bf16.mxu0 %v722_v42 }
 0x869   :  { %3660 = vpow2.f32 %v1030_v36  ;;  %3328 = vmatpush3.bf16.msra.mxu0 %v722_v42  ;;  %v716_v42 = vld [vmem:[%s4868_s2 + $0x178] sm:$0xff] }
 0x86f   :  { %v4307_v37 = vpop.eup %3658 }
 0x870   :  { %v1032_v39 = vsel %vm785_vm8, %v4307_v37, 0.0 }
 0x871   :  { %1033 = vadd.xlane.f32.xlu0 %v1032_v39 }
 0x873   :  { %v4311_v40 = vpop.eup %3660 }
 0x874   :  { %v1038_v41 = vsel %vm792_vm9, %v4311_v40, 0.0 }
 0x875   :  { %1039 = vadd.xlane.f32.xlu0 %v1038_v41 }
 0x89f   :  { %v1256_v43 = vpop.xlane.xlu0 %1255 }
 0x8a0   :  { %3662 = vrcp.f32 %v1256_v43  ;;  %v717_v43 = vld [vmem:[%s4868_s2 + $0x180] sm:$0xff] }
 0x8a3   :  { %v1250_v38 = vpop.xlane.xlu0 %1249 }
 0x8a4   :  { %3664 = vrcp.f32 %v1250_v38  ;;  %v723_v38 = vpack.c.bf16 %v717_v43, %v716_v42 }
 0x8a7   :  { %v1253_v45 = vpop.xlane.xlu0 %1252 }
 0x8a8   :  { %3666 = vrcp.f32 %v1253_v45  ;;  %v718_v45 = vld [vmem:[%s4868_s2 + $0x188] sm:$0xff] }
 0x8aa   :  { %v3663_v48 = vpop.eup %3662 }
 0x8ab   :  { %v1266_v46 = vpop.permute.xlu0 %1265  ;;  %v1262_v51 = vmul.f32 %v3663_v48, %v4284_v53 }
 0x8ac   :  { %v1274_v47 = vand.u32 %v1266_v46, %v4296_v13  ;;  %v719_v46 = vld [vmem:[%s4868_s2 + $0x190] sm:$0xff] }
 0x8ad   :  { %v1264_v58 = vpack.c.bf16 %v1262_v51, %v1262_v51 }
 0x8ae   :  { %3357 = vmatprep.subr.bf16.mxu1 %v1274_v47  ;;  %v3665_v49 = vpop.eup %3664 }
 0x8af   :  { %3358 = vmatpush3.bf16.msra.mxu1 %v1274_v47  ;;  %v1260_v52 = vmul.f32 %v3665_v49, %v4288_v59  ;;  %v724_v47 = vpack.c.bf16 %v719_v46, %v718_v45 }
 0x8b0   :  { %3595 = vmatprep.subr.msk.bf16.mxu1 %vm727_vm7, %v1388_v30 }
 0x8b2   :  { %v3667_v50 = vpop.eup %3666 }
 0x8b3   :  { %v1261_v55 = vmul.f32 %v3667_v50, %v4292_v61 }
 0x8b5   :  { %v1263_v54 = vpack.c.bf16 %v1261_v55, %v1260_v52 }
 0x8b7   :  { %3359 = vmatprep.mubr.msk.bf16.mxu1 %vm785_vm8, %v1263_v54 }
 0x8b8   :  { %3360 = vmatmul.mubr.msk.bf16.vlgmr.msra.gmra.mrb[36].mxu1 %vm785_vm8, %v1264_v58 }
 0x8b9   :  { %3370 = vmatpush3.bf16.xpose.msra.mxu1 %v1396_v60  ;;  %3371 = vmatprep.mubr.msk.bf16.mxu1 %vm727_vm7, %v1384_v17 }
 0x8c0   :  { %3372 = vmatmul.mubr.msk.bf16.vlgmr.msra.gmra.mrb[40].mxu1 %vm727_vm7, %v1386_v32 }
 0x8dc   :  { %v1019_v62 = vpop.xlane.xlu0 %1018 }
 0x8dd   :  { %v1024_v53 = vsub.f32 %v4264_v20, %v1019_v62 }
 0x8df   :  { %v1028_v2 = vmul.f32 1.442695, %v1024_v53 }
 0x8e1   :  { %3668 = vpow2.f32 %v1028_v2 }
 0x8eb   :  { %v3669_v59 = vpop.eup %3668 }
 0x8ec   :  { %v1035_v61 = vsel %vm785_vm8, %v3669_v59, 0.0 }
 0x8ed   :  { %1036 = vadd.xlane.f32.xlu1 %v1035_v61 }
 0x8fe   :  { %1049 = vrot.lane.b32.xlu1 %v4220_v44, %s3785_s28  ;;  %v1034_v20 = vpop.xlane.xlu0 %1033 }
 0x902   :  { %v1040_v19 = vpop.xlane.xlu0 %1039 }
 0x903   :  { %3670 = vrcp.f32 %v1040_v19 }
 0x904   :  { %3672 = vrcp.f32 %v1034_v20 }
 0x906   :  { %v3325_v4 = vpop.f32.mrb[28].mxu0 }
 0x907   :  { %v872_v6 = vpop.f32.mrb[29].mxu0  ;;  %v887_v57 = vpack.c.bf16 %v3325_v4, %v3325_v4 }
 0x908   :  { %v3326_v9 = vpop.f32.mrb[30].mxu0 }
 0x909   :  { %v875_v16 = vpop.f32.mrb[31].mxu0 }
 0x90a   :  { %v886_v56 = vpack.c.bf16 %v875_v16, %v872_v6 }
 0x90c   :  { %3329 = vmatprep.mubr.msk.bf16.mxu0 %vm727_vm7, %v886_v56 }
 0x90d   :  { %3330 = vmatmul.mubr.msk.bf16.vlgmr.msra.gmra.mrb[32].mxu0 %vm727_vm7, %v887_v57  ;;  %v3671_v26 = vpop.eup %3670 }
 0x90e   :  { %v3673_v14 = vpop.eup %3672  ;;  %v1046_v28 = vmul.f32 %v3671_v26, %v4311_v40 }
 0x90f   :  { %v1044_v29 = vmul.f32 %v3673_v14, %v4307_v37 }
 0x910   :  { %v1048_v32 = vpack.c.bf16 %v1046_v28, %v1046_v28 }
 0x97a   :  { %v1037_v0 = vpop.xlane.xlu1 %1036 }
 0x97b   :  { %3674 = vrcp.f32 %v1037_v0 }
 0x97e   :  { %v1050_v24 = vpop.permute.xlu1 %1049 }
 0x97f   :  { %v1058_v7 = vand.u32 %v1050_v24, %v4296_v13 }
 0x981   :  { %3339 = vmatprep.subr.bf16.mxu0 %v1058_v7 }
 0x982   :  { %3340 = vmatpush3.bf16.msra.mxu0 %v1058_v7 }
 0x983   :  { %3345 = vmatprep.subr.bf16.mxu0 %v723_v38 }
 0x985   :  { %v3675_v15 = vpop.eup %3674 }
 0x986   :  { %v1045_v30 = vmul.f32 %v3675_v15, %v3669_v59 }
 0x988   :  { %v1047_v17 = vpack.c.bf16 %v1045_v30, %v1044_v29 }
 0x98a   :  { %3341 = vmatprep.mubr.msk.bf16.mxu0 %vm785_vm8, %v1047_v17 }
 0x98b   :  { %3342 = vmatmul.mubr.msk.bf16.vlgmr.msra.gmra.mrb[36].mxu0 %vm785_vm8, %v1048_v32  ;;  %v3361_v11 = vpop.f32.mrb[36].mxu1 }
 0x98c   :  { %v1310_v22 = vpop.f32.mrb[37].mxu1  ;;  %3346 = vmatpush3.bf16.msra.mxu0 %v723_v38  ;;  %v1325_v19 = vpack.c.bf16 %v3361_v11, %v3361_v11 }
 0x98d   :  { %v3362_v33 = vpop.f32.mrb[38].mxu1  ;;  %3363 = vmatprep.subr.bf16.mxu0 %v724_v47 }
 0x98e   :  { %v1313_v35 = vpop.f32.mrb[39].mxu1 }
 0x98f   :  { %v1324_v23 = vpack.c.bf16 %v1313_v35, %v1310_v22  ;;  %v720_v22 = vld [vmem:[%s4868_s2 + $0x198] sm:$0xff] }
 0x993   :  { %v3373_v36 = vpop.f32.mrb[40].mxu1 }
 0x994   :  { %v1432_v39 = vpop.f32.mrb[41].mxu1  ;;  %v1452_v63 = vsel %vm792_vm9, %v3373_v36, -inf }
 0x995   :  { %v3374_v41 = vpop.f32.mrb[42].mxu1  ;;  %v1446_v1 = vsel %vm785_vm8, %v1432_v39, -inf }
 0x996   :  { %1447 = vmax.xlane.f32.xlu0 %v1446_v1  ;;  %v1435_v40 = vpop.f32.mrb[43].mxu1 }
 0x997   :  { %v1449_v37 = vsel %vm785_vm8, %v1435_v40, -inf }
 0x99a   :  { %1450 = vmax.xlane.f32.xlu0 %v1449_v37 }
 0x99e   :  { %1453 = vmax.xlane.f32.xlu0 %v1452_v63 }
 0xa23   :  { %v1448_v48 = vpop.xlane.xlu0 %1447 }
 0xa24   :  { %v1455_v49 = vsub.f32 %v1432_v39, %v1448_v48 }
 0xa26   :  { %v1458_v50 = vmul.f32 1.442695, %v1455_v49 }
 0xa27   :  { %v1451_v51 = vpop.xlane.xlu0 %1450 }
 0xa28   :  { %3676 = vpow2.f32 %v1458_v50  ;;  %v1456_v52 = vsub.f32 %v1435_v40, %v1451_v51  ;;  %v3013_v40 = vld [vmem:[%s4868_s2 + $0x1a8] ss:$0 sm:$0xff] }
 0xa2a   :  { %v1460_v55 = vmul.f32 1.442695, %v1456_v52 }
 0xa2b   :  { %v1454_v54 = vpop.xlane.xlu0 %1453 }
 0xa2c   :  { %3678 = vpow2.f32 %v1460_v55  ;;  %v1457_v58 = vsub.f32 %v3373_v36, %v1454_v54 }
 0xa2e   :  { %v1462_v60 = vmul.f32 1.442695, %v1457_v58 }
 0xa30   :  { %3680 = vpow2.f32 %v1462_v60 }
 0xa32   :  { %v3677_v62 = vpop.eup %3676 }
 0xa33   :  { %v1464_v53 = vsel %vm785_vm8, %v3677_v62, 0.0 }
 0xa34   :  { %1465 = vadd.xlane.f32.xlu0 %v1464_v53 }
 0xa36   :  { %v3679_v2 = vpop.eup %3678 }
 0xa37   :  { %v1467_v59 = vsel %vm785_vm8, %v3679_v2, 0.0 }
 0xa38   :  { %1468 = vadd.xlane.f32.xlu1 %v1467_v59 }
 0xa3a   :  { %v3681_v61 = vpop.eup %3680 }
 0xa3b   :  { %v1470_v4 = vsel %vm792_vm9, %v3681_v61, 0.0 }
 0xa3c   :  { %1471 = vadd.xlane.f32.xlu0 %v1470_v4 }
 0xa52   :  { %1481 = vrot.lane.b32.xlu0 %v4220_v44, %s3786_s10 }
 0xa5e   :  { %v3343_v6 = vpop.f32.mrb[36].mxu0 }
 0xa5f   :  { %v1094_v9 = vpop.f32.mrb[37].mxu0  ;;  %v1109_v20 = vpack.c.bf16 %v3343_v6, %v3343_v6 }
 0xa60   :  { %v3344_v16 = vpop.f32.mrb[38].mxu0 }
 0xa61   :  { %v1097_v56 = vpop.f32.mrb[39].mxu0  ;;  %v1654_v16 = vld [vmem:[%s4869_s3 + $0x58] sm:$0xff] }
 0xa62   :  { %v1108_v57 = vpack.c.bf16 %v1097_v56, %v1094_v9  ;;  %v1655_v56 = vld [vmem:[%s4869_s3 + $0x60] sm:$0xff] }
 0xa64   :  { %3347 = vmatprep.mubr.msk.bf16.mxu0 %vm727_vm7, %v1108_v57  ;;  %v1664_v57 = vpack.c.bf16 %v1655_v56, %v1654_v16  ;;  %v1916_v16 = vld [vmem:[%s4869_s3 + $0xb0] sm:$0xff]  ;;  %v1917_v56 = vld [vmem:[%s4869_s3 + $0xb8] sm:$0xff] }
 0xa65   :  { %3348 = vmatmul.mubr.msk.bf16.vlgmr.msra.gmra.mrb[32].mxu0 %vm727_vm7, %v1109_v20  ;;  %v1656_v20 = vld [vmem:[%s4869_s3 + $0x68] sm:$0xff] }
 0xa66   :  { %3365 = vmatprep.mubr.msk.bf16.mxu0 %vm727_vm7, %v1324_v23  ;;  %3364 = vmatpush3.bf16.msra.mxu0 %v724_v47 }
 0xa67   :  { %3387 = vmatprep.subr.bf16.mxu1 %v1664_v57 }
 0xa68   :  { %3388 = vmatpush3.bf16.msra.mxu1 %v1664_v57  ;;  %v1925_v57 = vpack.c.bf16 %v1917_v56, %v1916_v16 }
 0xa71   :  { %3366 = vmatmul.mubr.msk.bf16.vlgmr.msra.gmra.mrb[32].mxu0 %vm727_vm7, %v1325_v19  ;;  %v1657_v19 = vld [vmem:[%s4869_s3 + $0x70] sm:$0xff] }
 0xac1   :  { %v1466_v0 = vpop.xlane.xlu0 %1465 }
 0xac2   :  { %3682 = vrcp.f32 %v1466_v0  ;;  %v1665_v0 = vpack.c.bf16 %v1657_v19, %v1656_v20  ;;  %v1918_v20 = vld [vmem:[%s4869_s3 + $0xc0] sm:$0xff]  ;;  %v1919_v19 = vld [vmem:[%s4869_s3 + $0xc8] sm:$0xff] }
 0xac4   :  { %3389 = vmatprep.subr.bf16.mxu1 %v1665_v0 }
 0xac5   :  { %v1469_v24 = vpop.xlane.xlu1 %1468  ;;  %3390 = vmatpush3.bf16.msra.mxu1 %v1665_v0  ;;  %v1926_v0 = vpack.c.bf16 %v1919_v19, %v1918_v20 }
 0xac6   :  { %3684 = vrcp.f32 %v1469_v24  ;;  %v1658_v24 = vld [vmem:[%s4869_s3 + $0x78] sm:$0xff] }
 0xac9   :  { %v1472_v44 = vpop.xlane.xlu0 %1471 }
 0xaca   :  { %3686 = vrcp.f32 %v1472_v44  ;;  %v1659_v44 = vld [vmem:[%s4869_s3 + $0x80] sm:$0xff] }
 0xacc   :  { %v3683_v26 = vpop.eup %3682 }
 0xacd   :  { %v1482_v7 = vpop.permute.xlu0 %1481  ;;  %v1476_v28 = vmul.f32 %v3683_v26, %v3677_v62  ;;  %v1660_v26 = vld [vmem:[%s4869_s3 + $0x88] sm:$0xff] }
 0xace   :  { %v1490_v14 = vand.u32 %v1482_v7, %v4296_v13  ;;  %v721_v13 = vld [vmem:[%s4868_s2 + $0x1a0] sm:$0xff]  ;;  %v1666_v7 = vpack.c.bf16 %v1659_v44, %v1658_v24  ;;  %v1920_v24 = vld [vmem:[%s4869_s3 + $0xd0] sm:$0xff]  ;;  %v1921_v44 = vld [vmem:[%s4869_s3 + $0xd8] sm:$0xff] }
 0xacf   :  { %v725_v33 = vpack.c.bf16 %v721_v13, %v720_v22  ;;  %v1927_v10 = vpack.c.bf16 %v1921_v44, %v1920_v24 }
 0xad0   :  { %v3685_v15 = vpop.eup %3684  ;;  %3375 = vmatprep.subr.bf16.mxu0 %v1490_v14  ;;  %3391 = vmatprep.subr.bf16.mxu1 %v1666_v7 }
 0xad1   :  { %3376 = vmatpush3.bf16.msra.mxu0 %v1490_v14  ;;  %v1477_v29 = vmul.f32 %v3685_v15, %v3679_v2  ;;  %v1661_v14 = vld [vmem:[%s4869_s3 + $0x90] sm:$0xff]  ;;  %3392 = vmatpush3.bf16.msra.mxu1 %v1666_v7 }
 0xad2   :  { %3381 = vmatprep.subr.bf16.mxu0 %v725_v33  ;;  %v1667_v15 = vpack.c.bf16 %v1661_v14, %v1660_v26  ;;  %v1758_v26 = vld [vmem:[%s4868_s2 + $0x1e0] sm:$0xff]  ;;  %v1759_v14 = vld [vmem:[%s4868_s2 + $0x1e8] sm:$0xff] }
 0xad3   :  { %v1479_v30 = vpack.c.bf16 %v1477_v29, %v1476_v28 }
 0xad4   :  { %v3687_v17 = vpop.eup %3686  ;;  %3393 = vmatprep.subr.bf16.mxu1 %v1667_v15 }
 0xad5   :  { %v1478_v32 = vmul.f32 %v3687_v17, %v3681_v61  ;;  %3377 = vmatprep.mubr.msk.bf16.mxu0 %vm785_vm8, %v1479_v30  ;;  %3394 = vmatpush3.bf16.msra.mxu1 %v1667_v15  ;;  %v1774_v15 = vpack.c.bf16 %v1759_v14, %v1758_v26  ;;  %v3042_v26 = vld [vmem:[%s4869_s3 + $0xe0] ss:$0 sm:$0xff] }
 0xad6   :  { %3419 = vmatprep.subr.bf16.mxu1 %v3776_v3 }
 0xad7   :  { %v1480_v11 = vpack.c.bf16 %v1478_v32, %v1478_v32 }
 0xad9   :  { %3378 = vmatmul.mubr.msk.bf16.vlgmr.msra.gmra.mrb[40].mxu0 %vm785_vm8, %v1480_v11 }
 0xada   :  { %3382 = vmatpush3.bf16.msra.mxu0 %v725_v33 }
 0xadb   :  { %3399 = vmatprep.subr.bf16.mxu0 %v1772_v31 }
 0xbac   :  { %v3379_v35 = vpop.f32.mrb[40].mxu0 }
 0xbad   :  { %v1526_v23 = vpop.f32.mrb[41].mxu0  ;;  %v1541_v1 = vpack.c.bf16 %v3379_v35, %v3379_v35 }
 0xbae   :  { %v3380_v36 = vpop.f32.mrb[42].mxu0 }
 0xbaf   :  { %v1529_v39 = vpop.f32.mrb[43].mxu0  ;;  %v3032_v36 = vld [vmem:[%s4868_s2 + $0x1b0] ss:$0 sm:$0xff] }
 0xbb0   :  { %v1540_v41 = vpack.c.bf16 %v1529_v39, %v1526_v23 }
 0xbb2   :  { %3383 = vmatprep.mubr.msk.bf16.mxu0 %vm727_vm7, %v1540_v41 }
 0xbb3   :  { %3384 = vmatmul.mubr.msk.bf16.vlgmr.msra.gmra.mrb[32].mxu0 %vm727_vm7, %v1541_v1 }
 0xbb4   :  { %3400 = vmatpush3.bf16.msra.mxu0 %v1772_v31 }
 0xc86   :  { %v3385_v37 = vpop.f32.mrb[32].mxu0 }
 0xc87   :  { %v1582_v63 = vpop.f32.mrb[33].mxu0  ;;  %v3563_v47 = vadd.f32 %v3385_v37, %v3013_v40 }
 0xc88   :  { %v4380_v42 = vadd.f32 %v3013_v40, %v1582_v63  ;;  %v3386_v43 = vpop.f32.mrb[34].mxu0 }
 0xc89   :  { %v1585_v38 = vpop.f32.mrb[35].mxu0  ;;  %v1607_v49 = vsel %vm432_vm2, %v3563_v47, 0.0 }
 0xc8a   :  { %v3565_v45 = vadd.f32 %v3013_v40, %v1585_v38  ;;  %v1601_v46 = vsel %vm158_vm1, %v4380_v42, 0.0  ;;  %v3033_v40 = vld [vmem:[%s4868_s2 + $0x1b8] ss:$0 sm:$0xff] }
 0xc8b   :  { %1602 = vadd.xlane.f32.xlu0 %v1601_v46 }
 0xc8c   :  { %v1604_v48 = vsel %vm158_vm1, %v3565_v45, 0.0 }
 0xc8d   :  { %1605 = vadd.xlane.f32.xlu1 %v1604_v48  ;;  %v1852_v48 = vld [vmem:[%s4868_s2 + $0x278] sm:$0xff] }
 0xc91   :  { %1608 = vadd.xlane.f32.xlu1 %v1607_v49  ;;  %v1853_v49 = vld [vmem:[%s4868_s2 + $0x280] sm:$0xff] }
 0xd18   :  { %v1603_v50 = vpop.xlane.xlu0 %1602 }
 0xd19   :  { %v1610_v51 = vmul.f32 0.015625, %v1603_v50 }
 0xd1a   :  { %v1606_v52 = vpop.xlane.xlu1 %1605 }
 0xd1b   :  { %v1613_v55 = vsub.f32 %v4380_v42, %v1610_v51  ;;  %v1611_v54 = vmul.f32 0.015625, %v1606_v52  ;;  %v1861_v51 = vpack.c.bf16 %v1853_v49, %v1852_v48 }
 0xd1d   :  { %v1614_v58 = vsub.f32 %v3565_v45, %v1611_v54  ;;  %v1616_v60 = vmul.f32 %v1613_v55, %v1613_v55  ;;  %v1855_v54 = vld [vmem:[%s4868_s2 + $0x290] sm:$0xff] }
 0xd1e   :  { %v1609_v62 = vpop.xlane.xlu1 %1608 }
 0xd1f   :  { %v1612_v53 = vmul.f32 0.015625, %v1609_v62  ;;  %v1619_v2 = vsel %vm158_vm1, %v1616_v60, 0.0  ;;  %v1617_v59 = vmul.f32 %v1614_v58, %v1614_v58  ;;  %v1856_v60 = vld [vmem:[%s4868_s2 + $0x298] sm:$0xff]  ;;  %v1857_v62 = vld [vmem:[%s4868_s2 + $0x2a0] sm:$0xff] }
 0xd20   :  { %1620 = vadd.xlane.f32.xlu1 %v1619_v2  ;;  %v1858_v2 = vld [vmem:[%s4868_s2 + $0x2a8] sm:$0xff] }
 0xd21   :  { %v1615_v61 = vsub.f32 %v3563_v47, %v1612_v53  ;;  %v1622_v4 = vsel %vm158_vm1, %v1617_v59, 0.0  ;;  %v1863_v53 = vpack.c.bf16 %v1857_v62, %v1856_v60  ;;  %v1859_v59 = vld [vmem:[%s4868_s2 + $0x2b0] sm:$0xff] }
 0xd23   :  { %v1618_v6 = vmul.f32 %v1615_v61, %v1615_v61 }
 0xd24   :  { %1623 = vadd.xlane.f32.xlu1 %v1622_v4  ;;  %v1915_v4 = vld [vmem:[%s4869_s3 + $0xa8] sm:$0xff] }
 0xd25   :  { %v1625_v9 = vsel %vm432_vm2, %v1618_v6, 0.0  ;;  %v1864_v6 = vpack.c.bf16 %v1859_v59, %v1858_v2 }
 0xd28   :  { %1626 = vadd.xlane.f32.xlu1 %v1625_v9 }
 0xdad   :  { %v1621_v28 = vpop.xlane.xlu1 %1620 }
 0xdae   :  { %v1628_v29 = vmul.f32 0.015625, %v1621_v28  ;;  %v1760_v28 = vld [vmem:[%s4868_s2 + $0x1f0] sm:$0xff] }
 0xdb0   :  { %v1631_v30 = vadd.f32 1e-05, %v1628_v29  ;;  %v1761_v29 = vld [vmem:[%s4868_s2 + $0x1f8] sm:$0xff] }
 0xdb1   :  { %v1624_v17 = vpop.xlane.xlu1 %1623 }
 0xdb2   :  { %3688 = vrsqrt.f32 %v1631_v30  ;;  %v1629_v32 = vmul.f32 0.015625, %v1624_v17  ;;  %v1775_v30 = vpack.c.bf16 %v1761_v29, %v1760_v28  ;;  %v1762_v17 = vld [vmem:[%s4868_s2 + $0x200] sm:$0xff] }
 0xdb4   :  { %v1632_v11 = vadd.f32 1e-05, %v1629_v32  ;;  %v1763_v32 = vld [vmem:[%s4868_s2 + $0x208] sm:$0xff] }
 0xdb5   :  { %v1627_v22 = vpop.xlane.xlu1 %1626 }
 0xdb6   :  { %3690 = vrsqrt.f32 %v1632_v11  ;;  %v1630_v13 = vmul.f32 0.015625, %v1627_v22  ;;  %v1776_v11 = vpack.c.bf16 %v1763_v32, %v1762_v17  ;;  %v1764_v22 = vld [vmem:[%s4868_s2 + $0x210] sm:$0xff] }
 0xdb8   :  { %v1633_v33 = vadd.f32 1e-05, %v1630_v13  ;;  %v1765_v13 = vld [vmem:[%s4868_s2 + $0x218] sm:$0xff] }
 0xdba   :  { %3692 = vrsqrt.f32 %v1633_v33  ;;  %v1777_v33 = vpack.c.bf16 %v1765_v13, %v1764_v22 }
 0xdbc   :  { %v3689_v35 = vpop.eup %3688 }
 0xdbd   :  { %v1637_v23 = vmul.f32 %v3689_v35, %v1613_v55  ;;  %v1854_v55 = vld [vmem:[%s4868_s2 + $0x288] sm:$0xff]  ;;  %v1766_v35 = vld [vmem:[%s4868_s2 + $0x220] sm:$0xff] }
 0xdbf   :  { %v1644_v1 = vmul.f32 %v3032_v36, %v1637_v23  ;;  %v1767_v23 = vld [vmem:[%s4868_s2 + $0x228] sm:$0xff] }
 0xdc0   :  { %v3691_v39 = vpop.eup %3690 }
 0xdc1   :  { %v1638_v41 = vmul.f32 %v3691_v39, %v1614_v58  ;;  %v1651_v38 = vadd.f32 %v3033_v40, %v1644_v1  ;;  %v1862_v58 = vpack.c.bf16 %v1855_v54, %v1854_v55  ;;  %v1768_v39 = vld [vmem:[%s4868_s2 + $0x230] sm:$0xff] }
 0xdc3   :  { %v1645_v37 = vmul.f32 %v3032_v36, %v1638_v41  ;;  %v1769_v41 = vld [vmem:[%s4868_s2 + $0x238] sm:$0xff] }
 0xdc4   :  { %v3693_v63 = vpop.eup %3692  ;;  %v1779_v1 = vpack.c.bf16 %v1769_v41, %v1768_v39 }
 0xdc5   :  { %v1639_v43 = vmul.f32 %v3693_v63, %v1615_v61  ;;  %v1652_v45 = vadd.f32 %v3033_v40, %v1645_v37  ;;  %v1914_v61 = vld [vmem:[%s4869_s3 + $0xa0] sm:$0xff] }
 0xdc6   :  { %v1924_v9 = vpack.c.bf16 %v1915_v4, %v1914_v61 }
 0xdc7   :  { %v1662_v46 = vpack.c.bf16 %v1652_v45, %v1651_v38  ;;  %v1646_v47 = vmul.f32 %v3032_v36, %v1639_v43  ;;  %v1778_v36 = vpack.c.bf16 %v1767_v23, %v1766_v35 }
 0xdc9   :  { %3395 = vmatprep.mubr.msk.bf16.mxu1 %vm158_vm1, %v1662_v46  ;;  %v1653_v50 = vadd.f32 %v3033_v40, %v1646_v47  ;;  %v3034_v40 = vld [vmem:[%s4869_s3 + $0x98] ss:$0 sm:$0xff] }
 0xdcb   :  { %v1663_v52 = vpack.c.bf16 %v1653_v50, %v1653_v50 }
 0xdcd   :  { %3396 = vmatmul.mubr.msk.bf16.vlgmr.msra.gmra.mrb[44].mxu1 %vm158_vm1, %v1663_v52 }
 0xdce   :  { %3420 = vmatpush3.bf16.msra.mxu1 %v1861_v51  ;;  %3427 = vmatprep.mubr.msk.bf16.mxu1 %vm3777_vm0, %v3776_v3 }
 0xdcf   :  { %3421 = vmatprep.subr.bf16.mxu1 %v3776_v3 }
 0xdd2   :  { %3422 = vmatpush3.bf16.msra.mxu1 %v1862_v58 }
 0xdd3   :  { %3423 = vmatprep.subr.bf16.mxu1 %v3776_v3 }
 0xdd6   :  { %3424 = vmatpush3.bf16.msra.mxu1 %v1863_v53 }
 0xdd7   :  { %3425 = vmatprep.subr.bf16.mxu1 %v3776_v3 }
 0xdda   :  { %3426 = vmatpush3.bf16.msra.mxu1 %v1864_v6  ;;  %v3040_v6 = vld [vmem:[%s4868_s2 + $0x2b8] ss:$0 sm:$0xff] }
 0xddb   :  { %3431 = vmatprep.subr.bf16.mxu1 %v1924_v9 }
 0xddd   :  { %3428 = vmatmul.mubr.msk.bf16.vlgmr.msra.gmra.mrb[48].mxu1 %vm158_vm1, %v1860_v27  ;;  %v1847_v27 = vadd.f32 %v4187_v18, %v1840_v8  ;;  %v1756_v18 = vld [vmem:[%s4868_s2 + $0x1d0] sm:$0xff] }
 0xdde   :  { %3432 = vmatpush3.bf16.msra.mxu1 %v1924_v9  ;;  %3439 = vmatprep.mubr.msk.bf16.mxu1 %vm158_vm1, %v1922_v34  ;;  %v1757_v34 = vld [vmem:[%s4868_s2 + $0x1d8] sm:$0xff] }
 0xddf   :  { %3433 = vmatprep.subr.bf16.mxu1 %v1925_v57  ;;  %v1923_v25 = vpack.c.bf16 %v1847_v27, %v1847_v27  ;;  %v1773_v7 = vpack.c.bf16 %v1757_v34, %v1756_v18 }
 0xde1   :  { %3401 = vmatprep.subr.bf16.mxu0 %v1773_v7 }
 0xde2   :  { %3434 = vmatpush3.bf16.msra.mxu1 %v1925_v57  ;;  %3402 = vmatpush3.bf16.msra.mxu0 %v1773_v7 }
 0xde3   :  { %3435 = vmatprep.subr.bf16.mxu1 %v1926_v0  ;;  %3403 = vmatprep.subr.bf16.mxu0 %v1774_v15 }
 0xde6   :  { %3436 = vmatpush3.bf16.msra.mxu1 %v1926_v0  ;;  %3404 = vmatpush3.bf16.msra.mxu0 %v1774_v15 }
 0xde7   :  { %3437 = vmatprep.subr.bf16.mxu1 %v1927_v10  ;;  %3405 = vmatprep.subr.bf16.mxu0 %v1775_v30 }
 0xdea   :  { %3438 = vmatpush3.bf16.msra.mxu1 %v1927_v10  ;;  %3406 = vmatpush3.bf16.msra.mxu0 %v1775_v30 }
 0xdeb   :  { %3451 = vmatprep.subr.bf16.mxu1 %v3776_v3  ;;  %3407 = vmatprep.subr.bf16.mxu0 %v1776_v11 }
 0xded   :  { %3440 = vmatmul.mubr.msk.bf16.vlgmr.msra.gmra.mrb[52].mxu1 %vm158_vm1, %v1923_v25 }
 0xdee   :  { %3455 = vmatprep.mubr.msk.bf16.mxu1 %vm3777_vm0, %v3776_v3  ;;  %3408 = vmatpush3.bf16.msra.mxu0 %v1776_v11 }
 0xdef   :  { %3409 = vmatprep.subr.bf16.mxu0 %v1777_v33 }
 0xdf2   :  { %3410 = vmatpush3.bf16.msra.mxu0 %v1777_v33 }
 0xdf3   :  { %3411 = vmatprep.subr.bf16.mxu0 %v1778_v36 }
 0xdf6   :  { %3412 = vmatpush3.bf16.msra.mxu0 %v1778_v36 }
 0xdf7   :  { %3413 = vmatprep.subr.bf16.mxu0 %v1779_v1 }
 0xdfa   :  { %3414 = vmatpush3.bf16.msra.mxu0 %v1779_v1 }
 0xdfb   :  { %3443 = vmatprep.subr.bf16.mxu0 %v3776_v3 }
 0xea0   :  { %v3397_v37 = vpop.f32.mrb[44].mxu1 }
 0xea1   :  { %v1722_v63 = vadd.f32 %v3397_v37, %v3034_v40  ;;  %v1713_v43 = vpop.f32.mrb[45].mxu1 }
 0xea2   :  { %v1714_v38 = vadd.f32 %v3034_v40, %v1713_v43  ;;  %v3398_v45 = vpop.f32.mrb[46].mxu1 }
 0xea3   :  { %v1732_v46 = vmul.f32 0.044715, %v1722_v63  ;;  %v1716_v47 = vpop.f32.mrb[47].mxu1  ;;  %v1729_v25 = vmul.f32 0.5, %v1722_v63 }
 0xea4   :  { %v1730_v48 = vmul.f32 0.044715, %v1714_v38  ;;  %v1717_v49 = vadd.f32 %v3034_v40, %v1716_v47  ;;  %v1727_v21 = vmul.f32 0.5, %v1714_v38 }
 0xea5   :  { %v1735_v50 = vmul.f32 %v1732_v46, %v1722_v63 }
 0xea6   :  { %v1733_v51 = vmul.f32 %v1730_v48, %v1714_v38  ;;  %v1731_v52 = vmul.f32 0.044715, %v1717_v49  ;;  %v1728_v5 = vmul.f32 0.5, %v1717_v49 }
 0xea7   :  { %v1738_v55 = vmul.f32 %v1735_v50, %v1722_v63 }
 0xea8   :  { %v1736_v54 = vmul.f32 %v1733_v51, %v1714_v38  ;;  %v1734_v58 = vmul.f32 %v1731_v52, %v1717_v49 }
 0xea9   :  { %v1741_v60 = vadd.f32 %v1738_v55, %v1722_v63 }
 0xeaa   :  { %v1737_v62 = vmul.f32 %v1734_v58, %v1717_v49  ;;  %v1739_v53 = vadd.f32 %v1736_v54, %v1714_v38 }
 0xeab   :  { %v1744_v2 = vmul.f32 0.7978846, %v1741_v60 }
 0xeac   :  { %v1740_v59 = vadd.f32 %v1737_v62, %v1717_v49  ;;  %v1742_v61 = vmul.f32 0.7978846, %v1739_v53 }
 0xead   :  { %3694 = vtanh.f32 %v1744_v2 }
 0xeae   :  { %v1743_v4 = vmul.f32 0.7978846, %v1740_v59  ;;  %3696 = vtanh.f32 %v1742_v61 }
 0xeb0   :  { %v1907_v9 = vpop.f32.mrb[48].mxu1  ;;  %3698 = vtanh.f32 %v1743_v4 }
 0xeb1   :  { %v3429_v16 = vpop.f32.mrb[49].mxu1  ;;  %v1908_v57 = vadd.f32 %v3040_v6, %v1907_v9 }
 0xeb2   :  { %v1910_v56 = vpop.f32.mrb[50].mxu1 }
 0xeb3   :  { %v1911_v20 = vadd.f32 %v3040_v6, %v1910_v56  ;;  %v3430_v19 = vpop.f32.mrb[51].mxu1 }
 0xeb4   :  { %v4609_v19 = vsel %vm436_vm4, 65535, %v3778_v12 }
 0xeb5   :  { %v4546_v0 = vpack.c.bf16 %v1911_v20, %v1908_v57 }
 0xeb7   :  { %v3695_v24 = vpop.eup %3694 }
 0xeb8   :  { %v3697_v44 = vpop.eup %3696  ;;  %v1750_v10 = vadd.f32 1.0, %v3695_v24 }
 0xeb9   :  { %v1748_v8 = vadd.f32 1.0, %v3697_v44 }
 0xeba   :  { %v3699_v27 = vpop.eup %3698  ;;  %v1753_v18 = vmul.f32 %v1750_v10, %v1729_v25 }
 0xebb   :  { %v1749_v31 = vadd.f32 1.0, %v3699_v27  ;;  %v1751_v34 = vmul.f32 %v1748_v8, %v1727_v21 }
 0xebc   :  { %v1771_v28 = vpack.c.bf16 %v1753_v18, %v1753_v18 }
 0xebd   :  { %v1752_v7 = vmul.f32 %v1749_v31, %v1728_v5 }
 0xebf   :  { %v1770_v14 = vpack.c.bf16 %v1752_v7, %v1751_v34 }
 0xec0   :  { %v3441_v15 = vpop.f32.mrb[52].mxu1 }
 0xec1   :  { %v1982_v29 = vadd.f32 %v3441_v15, %v3042_v26  ;;  %v1973_v30 = vpop.f32.mrb[53].mxu1  ;;  %3415 = vmatprep.mubr.bf16.mxu0 %v1770_v14 }
 0xec2   :  { %v3442_v17 = vpop.f32.mrb[54].mxu1  ;;  %3416 = vmatmul.mubr.bf16.vlgmr.msra.gmra.mrb[44].mxu0 %v1771_v28  ;;  %v1974_v22 = vadd.f32 %v3042_v26, %v1973_v30 }
 0xec3   :  { %v4551_v32 = vpack.c.bf16 %v1982_v29, %v1982_v29  ;;  %v1976_v11 = vpop.f32.mrb[55].mxu1  ;;  %3447 = vmatprep.mubr.msk.bf16.mxu0 %vm3777_vm0, %v3776_v3 }
 0xec4   :  { %v1977_v13 = vadd.f32 %v3042_v26, %v1976_v11 }
 0xec5   :  { %2190 = vrot.lane.b32.xlu0 %v4551_v32, %s3779_s19  ;;  %v2010_v23 = vsel %vm727_vm7, %v4551_v32, 0 }
 0xec6   :  { %v4557_v33 = vpack.c.bf16 %v1977_v13, %v1974_v22 }
 0xec8   :  { %2188 = vrot.lane.b32.xlu1 %v4557_v33, %s3779_s19  ;;  %v2007_v35 = vsel %vm727_vm7, %v4557_v33, 0 }
 0xec9   :  { %3444 = vmatpush3.bf16.xpose.msra.mxu0 %v2007_v35 }
 0xeca   :  { %3445 = vmatprep.subr.bf16.mxu0 %v3776_v3 }
 0xecc   :  { %2186 = vrot.lane.b32.xlu1 %v4546_v0, %s3779_s19 }
 0xed1   :  { %3446 = vmatpush3.bf16.xpose.msra.mxu0 %v2010_v23 }
 0xed2   :  { %3465 = vmatprep.subr.bf16.mxu0 %v3776_v3 }
 0xed8   :  { %3448 = vmatmul.mubr.msk.bf16.vlgmr.msra.gmra.mrb[48].mxu0 %vm727_vm7, %v4546_v0 }
 0xed9   :  { %3469 = vmatprep.mubr.msk.bf16.mxu0 %vm3777_vm0, %v3776_v3 }
 0xf37   :  { %v2191_v41 = vpop.permute.xlu0 %2190 }
 0xf38   :  { %v2199_v1 = vsel %vm727_vm7, %v2191_v41, 0 }
 0xf3a   :  { %v2189_v36 = vpop.permute.xlu1 %2188 }
 0xf3b   :  { %v2196_v39 = vsel %vm727_vm7, %v2189_v36, 0 }
 0xf3c   :  { %3466 = vmatpush3.bf16.xpose.msra.mxu0 %v2196_v39 }
 0xf3d   :  { %3467 = vmatprep.subr.bf16.mxu0 %v3776_v3 }
 0xf3e   :  { %v2187_v40 = vpop.permute.xlu1 %2186 }
 0xf44   :  { %3468 = vmatpush3.bf16.xpose.msra.mxu0 %v2199_v1  ;;  %v1990_v1 = vld [vmem:[%s4868_s2 + $0x2c0] sm:$0xff] }
 0xf45   :  { %3487 = vmatprep.subr.bf16.mxu0 %v3776_v3 }
 0xf4b   :  { %3470 = vmatmul.mubr.msk.bf16.vlgmr.msra.gmra.mrb[52].mxu0 %vm727_vm7, %v2187_v40  ;;  %v1991_v40 = vld [vmem:[%s4868_s2 + $0x2c8] sm:$0xff] }
 0xf4c   :  { %3491 = vmatprep.mubr.msk.bf16.mxu0 %vm3777_vm0, %v3776_v3 }
 0xf95   :  { %v3417_v37 = vpop.f32.mrb[44].mxu0 }
 0xf96   :  { %v4580_v63 = vpop.f32.mrb[45].mxu0  ;;  %v1998_v37 = vpack.c.bf16 %v1991_v40, %v1990_v1 }
 0xf97   :  { %v3418_v43 = vpop.f32.mrb[46].mxu0 }
 0xf98   :  { %v1822_v38 = vpop.f32.mrb[47].mxu0 }
 0xfab   :  { %v2046_v45 = vpop.f32.mrb[48].mxu0 }
 0xfac   :  { %v3449_v46 = vpop.f32.mrb[49].mxu0  ;;  %v2054_v47 = vsel %vm2053_vm12, %v2046_v45, -inf }
 0xfad   :  { %2055 = vmax.xlane.f32.xlu1 %v2054_v47  ;;  %v2049_v48 = vpop.f32.mrb[50].mxu0 }
 0xfae   :  { %v3450_v49 = vpop.f32.mrb[51].mxu0  ;;  %v2058_v50 = vsel %vm2057_vm13, %v2049_v48, -inf }
 0xfaf   :  { %2059 = vmax.xlane.f32.xlu0 %v2058_v50 }
0x101e   :  { %v2235_v51 = vpop.f32.mrb[52].mxu0 }
0x101f   :  { %v3471_v52 = vpop.f32.mrb[53].mxu0  ;;  %v2242_v16 = vsel %vm2053_vm12, %v2235_v51, -inf }
0x1020   :  { %v4584_v55 = vpop.f32.mrb[54].mxu0 }
0x1021   :  { %v3472_v54 = vpop.f32.mrb[55].mxu0  ;;  %v2245_v56 = vsel %vm2057_vm13, %v4584_v55, -inf }
0x103a   :  { %v2056_v58 = vpop.xlane.xlu1 %2055 }
0x103b   :  { %v2061_v60 = vsub.f32 %v2046_v45, %v2056_v58 }
0x103c   :  { %v2060_v62 = vpop.xlane.xlu0 %2059 }
0x103d   :  { %v2063_v53 = vmul.f32 1.442695, %v2061_v60  ;;  %v2062_v2 = vsub.f32 %v2049_v48, %v2060_v62 }
0x103f   :  { %3700 = vpow2.f32 %v2063_v53  ;;  %v2065_v59 = vmul.f32 1.442695, %v2062_v2 }
0x1041   :  { %3702 = vpow2.f32 %v2065_v59 }
0x1049   :  { %v3701_v61 = vpop.eup %3700 }
0x104a   :  { %v2067_v4 = vsel %vm2053_vm12, %v3701_v61, 0.0 }
0x104b   :  { %v3703_v6 = vpop.eup %3702  ;;  %2068 = vadd.xlane.f32.xlu0 %v2067_v4 }
0x104c   :  { %v2070_v9 = vsel %vm2057_vm13, %v3703_v6, 0.0 }
0x104d   :  { %2071 = vadd.xlane.f32.xlu1 %v2070_v9  ;;  %v1993_v9 = vld [vmem:[%s4868_s2 + $0x2d8] sm:$0xff] }
0x105e   :  { %2082 = vrot.lane.b32.xlu1 %v4551_v32, %s3781_s21 }
0x1061   :  { %2080 = vrot.lane.b32.xlu0 %v4557_v33, %s3781_s21 }
0x1062   :  { %2366 = vrot.lane.b32.xlu1 %v4557_v33, %s3780_s20 }
0x1065   :  { %2368 = vrot.lane.b32.xlu0 %v4551_v32, %s3780_s20 }
0x1066   :  { %2364 = vrot.lane.b32.xlu1 %v4546_v0, %s3780_s20 }
0x1084   :  { %2243 = vmax.xlane.f32.xlu0 %v2242_v16 }
0x108a   :  { %2246 = vmax.xlane.f32.xlu1 %v2245_v56 }
0x109b   :  { %2265 = vrot.lane.b32.xlu1 %v4557_v33, %s3785_s28 }
0x109f   :  { %2544 = vrot.lane.b32.xlu1 %v4557_v33, %s3782_s22 }
0x10a3   :  { %2546 = vrot.lane.b32.xlu1 %v4551_v32, %s3782_s22 }
0x10d8   :  { %v2069_v57 = vpop.xlane.xlu0 %2068 }
0x10d9   :  { %3704 = vrcp.f32 %v2069_v57 }
0x10da   :  { %v2072_v20 = vpop.xlane.xlu1 %2071 }
0x10db   :  { %3706 = vrcp.f32 %v2072_v20 }
0x10dc   :  { %v2081_v24 = vpop.permute.xlu0 %2080 }
0x10dd   :  { %3452 = vmatpush3.bf16.msra.mxu1 %v2081_v24 }
0x10de   :  { %v2083_v44 = vpop.permute.xlu1 %2082  ;;  %3453 = vmatprep.subr.bf16.mxu1 %v3776_v3 }
0x10df   :  { %v2091_v10 = vand.u32 %v4609_v19, %v2083_v44 }
0x10e0   :  { %v2369_v31 = vpop.permute.xlu0 %2368 }
0x10e1   :  { %3454 = vmatpush3.bf16.msra.mxu1 %v2091_v10  ;;  %v2377_v34 = vsel %vm727_vm7, %v2369_v31, 0 }
0x10e2   :  { %v2367_v8 = vpop.permute.xlu1 %2366  ;;  %3459 = vmatprep.subr.bf16.mxu1 %v3776_v3 }
0x10e3   :  { %v3705_v27 = vpop.eup %3704  ;;  %v2374_v25 = vsel %vm727_vm7, %v2367_v8, 0 }
0x10e4   :  { %3488 = vmatpush3.bf16.xpose.msra.mxu0 %v2374_v25  ;;  %v2075_v12 = vmul.f32 %v3705_v27, %v3701_v61 }
0x10e5   :  { %v3707_v21 = vpop.eup %3706  ;;  %3489 = vmatprep.subr.bf16.mxu0 %v3776_v3 }
0x10e6   :  { %v2076_v5 = vmul.f32 %v3707_v21, %v3703_v6  ;;  %v2365_v7 = vpop.permute.xlu1 %2364  ;;  %v1992_v6 = vld [vmem:[%s4868_s2 + $0x2d0] sm:$0xff] }
0x10e7   :  { %v1999_v16 = vpack.c.bf16 %v1993_v9, %v1992_v6 }
0x10e8   :  { %v2077_v18 = vpack.c.bf16 %v2076_v5, %v2075_v12 }
0x10ea   :  { %3456 = vmatmul.mubr.msk.bf16.vlgmr.msra.gmra.mrb[56].mxu1 %vm2053_vm12, %v2077_v18 }
0x10eb   :  { %3461 = vmatprep.mubr.msk.bf16.mxu1 %vm3777_vm0, %v3776_v3  ;;  %3460 = vmatpush3.bf16.msra.mxu1 %v1998_v37 }
0x10ec   :  { %3490 = vmatpush3.bf16.xpose.msra.mxu0 %v2377_v34  ;;  %3473 = vmatprep.subr.bf16.mxu1 %v3776_v3 }
0x10ed   :  { %3509 = vmatprep.subr.bf16.mxu0 %v3776_v3 }
0x10f3   :  { %3492 = vmatmul.mubr.msk.bf16.vlgmr.msra.gmra.mrb[56].mxu0 %vm727_vm7, %v2365_v7 }
0x10f4   :  { %3513 = vmatprep.mubr.msk.bf16.mxu0 %vm3777_vm0, %v3776_v3 }
0x1111   :  { %v2244_v26 = vpop.xlane.xlu0 %2243 }
0x1112   :  { %v2248_v14 = vsub.f32 %v2235_v51, %v2244_v26 }
0x1114   :  { %v2250_v15 = vmul.f32 1.442695, %v2248_v14 }
0x1116   :  { %3708 = vpow2.f32 %v2250_v15 }
0x1117   :  { %v2247_v28 = vpop.xlane.xlu1 %2246 }
0x1118   :  { %v2249_v29 = vsub.f32 %v4584_v55, %v2247_v28 }
0x111a   :  { %v2252_v30 = vmul.f32 1.442695, %v2249_v29 }
0x111b   :  { %v2266_v17 = vpop.permute.xlu1 %2265 }
0x111c   :  { %3710 = vpow2.f32 %v2252_v30 }
0x111f   :  { %v2545_v11 = vpop.permute.xlu1 %2544 }
0x1120   :  { %v3709_v22 = vpop.eup %3708  ;;  %v2552_v13 = vsel %vm727_vm7, %v2545_v11, 0 }
0x1121   :  { %3510 = vmatpush3.bf16.xpose.msra.mxu0 %v2552_v13  ;;  %v2254_v35 = vsel %vm2053_vm12, %v3709_v22, 0.0 }
0x1122   :  { %2255 = vadd.xlane.f32.xlu0 %v2254_v35  ;;  %3511 = vmatprep.subr.bf16.mxu0 %v3776_v3 }
0x1123   :  { %v2547_v23 = vpop.permute.xlu1 %2546 }
0x1124   :  { %v2555_v41 = vsel %vm727_vm7, %v2547_v23, 0 }
0x1126   :  { %v3711_v36 = vpop.eup %3710 }
0x1127   :  { %v2257_v39 = vsel %vm2057_vm13, %v3711_v36, 0.0 }
0x1128   :  { %2258 = vadd.xlane.f32.xlu0 %v2257_v39 }
0x1129   :  { %3512 = vmatpush3.bf16.xpose.msra.mxu0 %v2555_v41 }
0x112a   :  { %3531 = vmatprep.subr.bf16.mxu0 %v3776_v3 }
0x113e   :  { %2267 = vrot.lane.b32.xlu0 %v4551_v32, %s3785_s28 }
0x1142   :  { %2542 = vrot.lane.b32.xlu0 %v4546_v0, %s3782_s22 }
0x11af   :  { %v2256_v43 = vpop.xlane.xlu0 %2255 }
0x11b5   :  { %v2259_v38 = vpop.xlane.xlu0 %2258 }
0x11b6   :  { %3712 = vrcp.f32 %v2259_v38 }
0x11b7   :  { %3714 = vrcp.f32 %v2256_v43 }
0x11b9   :  { %v2268_v45 = vpop.permute.xlu0 %2267 }
0x11ba   :  { %v2274_v54 = vand.u32 %v2268_v45, %v4609_v19 }
0x11bd   :  { %v2127_v46 = vpop.f32.mrb[56].mxu1  ;;  %v2543_v47 = vpop.permute.xlu0 %2542 }
0x11be   :  { %v3457_v48 = vpop.f32.mrb[57].mxu1  ;;  %3514 = vmatmul.mubr.msk.bf16.vlgmr.msra.gmra.mrb[60].mxu0 %vm727_vm7, %v2543_v47 }
0x11bf   :  { %v2130_v49 = vpop.f32.mrb[58].mxu1  ;;  %3539 = vmatprep.mubr.msk.bf16.mxu0 %vm3777_vm0, %v3776_v3 }
0x11c0   :  { %v2134_v50 = vpack.c.bf16 %v2130_v49, %v2127_v46  ;;  %v3458_v51 = vpop.f32.mrb[59].mxu1  ;;  %v3713_v52 = vpop.eup %3712 }
0x11c1   :  { %v3715_v0 = vpop.eup %3714  ;;  %v2263_v55 = vmul.f32 %v3713_v52, %v3711_v36  ;;  %v1995_v51 = vld [vmem:[%s4868_s2 + $0x2e8] sm:$0xff] }
0x11c2   :  { %3462 = vmatmul.mubr.msk.bf16.vlgmr.msra.gmra.mrb[60].mxu1 %vm727_vm7, %v2134_v50  ;;  %v2262_v58 = vmul.f32 %v3715_v0, %v3709_v22  ;;  %v1994_v50 = vld [vmem:[%s4868_s2 + $0x2e0] sm:$0xff] }
0x11c3   :  { %3474 = vmatpush3.bf16.msra.mxu1 %v2266_v17  ;;  %3477 = vmatprep.mubr.msk.bf16.mxu1 %vm3777_vm0, %v3776_v3  ;;  %v2000_v52 = vpack.c.bf16 %v1995_v51, %v1994_v50 }
0x11c4   :  { %3475 = vmatprep.subr.bf16.mxu1 %v3776_v3  ;;  %v2264_v59 = vpack.c.bf16 %v2263_v55, %v2262_v58 }
0x11c6   :  { %v2413_v60 = vpop.f32.mrb[56].mxu0 }
0x11c7   :  { %3476 = vmatpush3.bf16.msra.mxu1 %v2274_v54  ;;  %v3493_v62 = vpop.f32.mrb[57].mxu0  ;;  %v2420_v53 = vsel %vm2053_vm12, %v2413_v60, -inf }
0x11c8   :  { %2421 = vmax.xlane.f32.xlu1 %v2420_v53  ;;  %v2416_v2 = vpop.f32.mrb[58].mxu0  ;;  %3481 = vmatprep.subr.bf16.mxu1 %v3776_v3 }
0x11c9   :  { %v3494_v61 = vpop.f32.mrb[59].mxu0  ;;  %v2423_v4 = vsel %vm2057_vm13, %v2416_v2, -inf }
0x11ca   :  { %3478 = vmatmul.mubr.msk.bf16.vlgmr.msra.gmra.mrb[64].mxu1 %vm2053_vm12, %v2264_v59  ;;  %2424 = vmax.xlane.f32.xlu0 %v2423_v4 }
0x11cb   :  { %3483 = vmatprep.mubr.msk.bf16.mxu1 %vm3777_vm0, %v3776_v3  ;;  %3482 = vmatpush3.bf16.msra.mxu1 %v1999_v16  ;;  %v1996_v16 = vld [vmem:[%s4868_s2 + $0x2f0] sm:$0xff] }
0x11cc   :  { %3495 = vmatprep.subr.bf16.mxu1 %v3776_v3 }
0x1255   :  { %v2422_v56 = vpop.xlane.xlu1 %2421 }
0x1256   :  { %v2426_v57 = vsub.f32 %v2413_v60, %v2422_v56  ;;  %v1997_v56 = vld [vmem:[%s4868_s2 + $0x2f8] sm:$0xff] }
0x1257   :  { %v2425_v20 = vpop.xlane.xlu0 %2424 }
0x1258   :  { %v2428_v24 = vmul.f32 1.442695, %v2426_v57  ;;  %v2427_v44 = vsub.f32 %v2416_v2, %v2425_v20  ;;  %v2001_v57 = vpack.c.bf16 %v1997_v56, %v1996_v16 }
0x125a   :  { %3716 = vpow2.f32 %v2428_v24  ;;  %v2430_v10 = vmul.f32 1.442695, %v2427_v44 }
0x125c   :  { %3718 = vpow2.f32 %v2430_v10 }
0x1264   :  { %v3717_v8 = vpop.eup %3716 }
0x1265   :  { %v2432_v27 = vsel %vm2053_vm12, %v3717_v8, 0.0 }
0x1266   :  { %v3719_v25 = vpop.eup %3718  ;;  %2433 = vadd.xlane.f32.xlu0 %v2432_v27 }
0x1267   :  { %v2435_v21 = vsel %vm2057_vm13, %v3719_v25, 0.0 }
0x1268   :  { %2436 = vadd.xlane.f32.xlu1 %v2435_v21 }
0x1279   :  { %2445 = vrot.lane.b32.xlu1 %v4551_v32, %s3784_s23 }
0x127c   :  { %2443 = vrot.lane.b32.xlu0 %v4557_v33, %s3784_s23  ;;  %s2981_s23 = sshll.u32 %s3787_s0, 4  ;;  %s2982_s23 = int_to_ptr.vmem [resolvable:$true] %s2981_s23 }
0x127d   :  { %s3756_s30 = scalar_lea.vmem %s2982_s23, 32  ;;  %p3757_p1 = scmp.lt.s32.totalorder %s2982_s23, %s2982_s23 }
0x1291   :  { %v2591_v12 = vpop.f32.mrb[60].mxu0 }
0x1292   :  { %v3515_v5 = vpop.f32.mrb[61].mxu0  ;;  %v2598_v7 = vsel %vm2053_vm12, %v2591_v12, -inf }
0x1293   :  { %v2594_v31 = vpop.f32.mrb[62].mxu0 }
0x1294   :  { %v3516_v18 = vpop.f32.mrb[63].mxu0  ;;  %v2601_v34 = vsel %vm2057_vm13, %v2594_v31, -inf }
0x129b   :  { %2602 = vmax.xlane.f32.xlu0 %v2601_v34 }
0x129d   :  { %v2310_v26 = vpop.f32.mrb[64].mxu1  ;;  %2599 = vmax.xlane.f32.xlu1 %v2598_v7  ;;  %v3037_v7 = vld [vmem:[%s4868_s2 + $0x240] ss:$0 sm:$0xff] }
0x129e   :  { %v3479_v14 = vpop.f32.mrb[65].mxu1 }
0x129f   :  { %v2313_v15 = vpop.f32.mrb[66].mxu1 }
0x12a0   :  { %v2317_v28 = vpack.c.bf16 %v2313_v15, %v2310_v26  ;;  %v3480_v29 = vpop.f32.mrb[67].mxu1 }
0x12a2   :  { %3484 = vmatmul.mubr.msk.bf16.vlgmr.msra.gmra.mrb[60].mxu1 %vm727_vm7, %v2317_v28  ;;  %v1820_v28 = vadd.f32 %v3037_v7, %v4580_v63  ;;  %v2760_v63 = vld [vmem:[%s4869_s3 + $0xe8] sm:$0xff] }
0x12a3   :  { %3499 = vmatprep.mubr.msk.bf16.mxu1 %vm3777_vm0, %v3776_v3  ;;  %v2850_v7 = vld [vmem:[%s4868_s2 + $0x368] sm:$0xff] }
0x12f3   :  { %v2434_v30 = vpop.xlane.xlu0 %2433 }
0x12f4   :  { %3720 = vrcp.f32 %v2434_v30 }
0x12f5   :  { %v2437_v17 = vpop.xlane.xlu1 %2436 }
0x12f6   :  { %3722 = vrcp.f32 %v2437_v17 }
0x12f7   :  { %v2444_v11 = vpop.permute.xlu0 %2443 }
0x12f8   :  { %3496 = vmatpush3.bf16.msra.mxu1 %v2444_v11 }
0x12f9   :  { %v2446_v22 = vpop.permute.xlu1 %2445  ;;  %3497 = vmatprep.subr.bf16.mxu1 %v3776_v3 }
0x12fa   :  { %v2452_v13 = vand.u32 %v2446_v22, %v4609_v19  ;;  %v1831_v22 = vadd.f32 %v4380_v42, %v1820_v28  ;;  %v2762_v42 = vld [vmem:[%s4869_s3 + $0xf8] sm:$0xff] }
0x12fb   :  { %v2852_v28 = vld [vmem:[%s4868_s2 + $0x378] sm:$0xff] }
0x12fc   :  { %3498 = vmatpush3.bf16.msra.mxu1 %v2452_v13 }
0x12fd   :  { %3503 = vmatprep.subr.bf16.mxu1 %v3776_v3 }
0x12fe   :  { %v3721_v35 = vpop.eup %3720 }
0x12ff   :  { %v2440_v36 = vmul.f32 %v3721_v35, %v3717_v8  ;;  %v3048_v8 = vld [vmem:[%s4868_s2 + $0x300] ss:$0 sm:$0xff] }
0x1300   :  { %v3723_v23 = vpop.eup %3722 }
0x1301   :  { %v2441_v39 = vmul.f32 %v3723_v23, %v3719_v25 }
0x1303   :  { %v2442_v41 = vpack.c.bf16 %v2441_v39, %v2440_v36  ;;  %v2913_v36 = vsel %vm432_vm2, %v1831_v22, 0.0  ;;  %v2761_v39 = vld [vmem:[%s4869_s3 + $0xf0] sm:$0xff] }
0x1305   :  { %3500 = vmatmul.mubr.msk.bf16.vlgmr.msra.gmra.mrb[68].mxu1 %vm2053_vm12, %v2442_v41  ;;  %v2769_v41 = vpack.c.bf16 %v2761_v39, %v2760_v63  ;;  %v2911_v63 = vld [vmem:[%s4868_s2 + $0x248] sm:$0x1] }
0x1306   :  { %3505 = vmatprep.mubr.msk.bf16.mxu1 %vm3777_vm0, %v3776_v3  ;;  %3504 = vmatpush3.bf16.msra.mxu1 %v2000_v52 }
0x1307   :  { %3517 = vmatprep.subr.bf16.mxu1 %v3776_v3  ;;  %3532 = vmatpush3.bf16.msra.mxu0 %v2769_v41  ;;  %v2912_v41 = vld [vmem:[%s4868_s2 + $0x250] sm:$0x1] }
0x1308   :  { %3533 = vmatprep.subr.bf16.mxu0 %v3776_v3 }
0x1328   :  { %v2603_v1 = vpop.xlane.xlu0 %2602 }
0x1329   :  { %v2605_v40 = vsub.f32 %v2594_v31, %v2603_v1  ;;  %v2763_v1 = vld [vmem:[%s4869_s3 + $0x100] sm:$0xff] }
0x132a   :  { %v2600_v37 = vpop.xlane.xlu1 %2599 }
0x132b   :  { %v2608_v43 = vmul.f32 1.442695, %v2605_v40  ;;  %v2604_v38 = vsub.f32 %v2591_v12, %v2600_v37  ;;  %v2770_v40 = vpack.c.bf16 %v2763_v1, %v2762_v42  ;;  %v2764_v37 = vld [vmem:[%s4869_s3 + $0x108] sm:$0xff] }
0x132d   :  { %3724 = vpow2.f32 %v2608_v43  ;;  %v2606_v45 = vmul.f32 1.442695, %v2604_v38  ;;  %3534 = vmatpush3.bf16.msra.mxu0 %v2770_v40  ;;  %v2765_v43 = vld [vmem:[%s4869_s3 + $0x110] sm:$0xff] }
0x132e   :  { %3535 = vmatprep.subr.bf16.mxu0 %v3776_v3  ;;  %v2771_v38 = vpack.c.bf16 %v2765_v43, %v2764_v37  ;;  %v3060_v43 = vld [vmem:[%s4869_s3 + $0x128] ss:$0 sm:$0xff] }
0x132f   :  { %3726 = vpow2.f32 %v2606_v45  ;;  %v2766_v45 = vld [vmem:[%s4869_s3 + $0x118] sm:$0xff] }
0x1331   :  { %3536 = vmatpush3.bf16.msra.mxu0 %v2771_v38 }
0x1332   :  { %3537 = vmatprep.subr.bf16.mxu0 %v3776_v3 }
0x1337   :  { %v3725_v46 = vpop.eup %3724 }
0x1338   :  { %v2613_v47 = vsel %vm2057_vm13, %v3725_v46, 0.0 }
0x1339   :  { %v3727_v48 = vpop.eup %3726  ;;  %2614 = vadd.xlane.f32.xlu1 %v2613_v47 }
0x133a   :  { %v2610_v49 = vsel %vm2053_vm12, %v3727_v48, 0.0 }
0x133b   :  { %2611 = vadd.xlane.f32.xlu0 %v2610_v49 }
0x134a   :  { %2623 = vrot.lane.b32.xlu1 %v4551_v32, %s3786_s10 }
0x1351   :  { %2621 = vrot.lane.b32.xlu0 %v4557_v33, %s3786_s10 }
0x13c6   :  { %v2615_v55 = vpop.xlane.xlu1 %2614 }
0x13c8   :  { %v2612_v0 = vpop.xlane.xlu0 %2611 }
0x13c9   :  { %3728 = vrcp.f32 %v2612_v0 }
0x13ca   :  { %3730 = vrcp.f32 %v2615_v55  ;;  %v2624_v53 = vpop.permute.xlu1 %2623 }
0x13cb   :  { %v2630_v4 = vand.u32 %v2624_v53, %v4609_v19 }
0x13cc   :  { %v2622_v2 = vpop.permute.xlu0 %2621 }
0x13d3   :  { %v3729_v62 = vpop.eup %3728 }
0x13d4   :  { %v3731_v59 = vpop.eup %3730  ;;  %v2618_v61 = vmul.f32 %v3729_v62, %v3727_v48  ;;  %v3058_v62 = vld [vmem:[%s4868_s2 + $0x308] ss:$0 sm:$0xff] }
0x13d5   :  { %v2619_v6 = vmul.f32 %v3731_v59, %v3725_v46  ;;  %v2767_v46 = vld [vmem:[%s4869_s3 + $0x120] sm:$0xff] }
0x13d6   :  { %v2772_v47 = vpack.c.bf16 %v2767_v46, %v2766_v45 }
0x13d7   :  { %v2620_v9 = vpack.c.bf16 %v2619_v6, %v2618_v61 }
0x13d8   :  { %v2488_v32 = vpop.f32.mrb[68].mxu1  ;;  %3538 = vmatpush3.bf16.msra.mxu0 %v2772_v47 }
0x13d9   :  { %v3501_v54 = vpop.f32.mrb[69].mxu1 }
0x13da   :  { %v2491_v58 = vpop.f32.mrb[70].mxu1 }
0x13db   :  { %v2495_v33 = vpack.c.bf16 %v2491_v58, %v2488_v32  ;;  %v3502_v60 = vpop.f32.mrb[71].mxu1 }
0x13dd   :  { %3506 = vmatmul.mubr.msk.bf16.vlgmr.msra.gmra.mrb[60].mxu1 %vm727_vm7, %v2495_v33 }
0x13de   :  { %3518 = vmatpush3.bf16.msra.mxu1 %v2622_v2  ;;  %3521 = vmatprep.mubr.msk.bf16.mxu1 %vm3777_vm0, %v3776_v3 }
0x13df   :  { %3519 = vmatprep.subr.bf16.mxu1 %v3776_v3 }
0x13e2   :  { %3520 = vmatpush3.bf16.msra.mxu1 %v2630_v4  ;;  %v3059_v4 = vld [vmem:[%s4868_s2 + $0x310] ss:$0 sm:$0xff] }
0x13e3   :  { %3525 = vmatprep.subr.bf16.mxu1 %v3776_v3 }
0x13e5   :  { %3522 = vmatmul.mubr.msk.bf16.vlgmr.msra.gmra.mrb[72].mxu1 %vm2053_vm12, %v2620_v9 }
0x13e6   :  { %3527 = vmatprep.mubr.msk.bf16.mxu1 %vm3777_vm0, %v3776_v3  ;;  %3526 = vmatpush3.bf16.msra.mxu1 %v2001_v57  ;;  %v2840_v57 = vld [vmem:[%s4868_s2 + $0x318] sm:$0xff] }
0x13e7   :  { %3543 = vmatprep.subr.bf16.mxu1 %v3776_v3 }
0x14b8   :  { %v2666_v19 = vpop.f32.mrb[72].mxu1 }
0x14b9   :  { %v3523_v20 = vpop.f32.mrb[73].mxu1 }
0x14ba   :  { %v2669_v24 = vpop.f32.mrb[74].mxu1 }
0x14bb   :  { %v2673_v44 = vpack.c.bf16 %v2669_v24, %v2666_v19  ;;  %v3524_v10 = vpop.f32.mrb[75].mxu1  ;;  %v2841_v19 = vld [vmem:[%s4868_s2 + $0x320] sm:$0xff]  ;;  %v2842_v24 = vld [vmem:[%s4868_s2 + $0x328] sm:$0xff] }
0x14bc   :  { %v2857_v20 = vpack.c.bf16 %v2841_v19, %v2840_v57 }
0x14bd   :  { %3528 = vmatmul.mubr.msk.bf16.vlgmr.msra.gmra.mrb[60].mxu1 %vm727_vm7, %v2673_v44  ;;  %v2843_v44 = vld [vmem:[%s4868_s2 + $0x330] sm:$0xff] }
0x14be   :  { %3559 = vmatprep.mubr.msk.bf16.mxu1 %vm3777_vm0, %v3776_v3  ;;  %3544 = vmatpush3.bf16.msra.mxu1 %v2857_v20  ;;  %v2858_v10 = vpack.c.bf16 %v2843_v44, %v2842_v24 }
0x14bf   :  { %3545 = vmatprep.subr.bf16.mxu1 %v3776_v3 }
0x14c2   :  { %3546 = vmatpush3.bf16.msra.mxu1 %v2858_v10 }
0x14c3   :  { %3547 = vmatprep.subr.bf16.mxu1 %v3776_v3 }
0x1590   :  { %v2711_v27 = vpop.f32.mrb[60].mxu1 }
0x1591   :  { %v4715_v25 = vadd.f32 %v3048_v8, %v2711_v27  ;;  %v3529_v21 = vpop.f32.mrb[61].mxu1  ;;  %v2845_v27 = vld [vmem:[%s4868_s2 + $0x340] sm:$0xff] }
0x1592   :  { %v2714_v12 = vpop.f32.mrb[62].mxu1 }
0x1593   :  { %v3567_v5 = vadd.f32 %v3048_v8, %v2714_v12  ;;  %v3530_v31 = vpop.f32.mrb[63].mxu1  ;;  %v2722_v18 = vsel %vm158_vm1, %v4715_v25, 0.0  ;;  %v2844_v8 = vld [vmem:[%s4868_s2 + $0x338] sm:$0xff]  ;;  %v2846_v12 = vld [vmem:[%s4868_s2 + $0x348] sm:$0xff] }
0x1594   :  { %2723 = vadd.xlane.f32.xlu1 %v2722_v18  ;;  %v2859_v21 = vpack.c.bf16 %v2845_v27, %v2844_v8  ;;  %v2848_v18 = vld [vmem:[%s4868_s2 + $0x358] sm:$0xff] }
0x1595   :  { %v2725_v34 = vsel %vm446_vm6, %v3567_v5, 0.0 }
0x1596   :  { %2726 = vadd.xlane.f32.xlu0 %v2725_v34  ;;  %3548 = vmatpush3.bf16.msra.mxu1 %v2859_v21  ;;  %v2849_v34 = vld [vmem:[%s4868_s2 + $0x360] sm:$0xff] }
0x1597   :  { %3549 = vmatprep.subr.bf16.mxu1 %v3776_v3 }
0x1621   :  { %v2724_v26 = vpop.xlane.xlu1 %2723 }
0x1622   :  { %v2728_v14 = vmul.f32 0.015625, %v2724_v26  ;;  %v2861_v26 = vpack.c.bf16 %v2849_v34, %v2848_v18 }
0x1623   :  { %v2727_v15 = vpop.xlane.xlu0 %2726 }
0x1624   :  { %v2730_v29 = vsub.f32 %v4715_v25, %v2728_v14  ;;  %v2729_v30 = vmul.f32 0.015625, %v2727_v15  ;;  %v2851_v14 = vld [vmem:[%s4868_s2 + $0x370] sm:$0xff] }
0x1625   :  { %v2862_v15 = vpack.c.bf16 %v2851_v14, %v2850_v7 }
0x1626   :  { %v2731_v17 = vsub.f32 %v3567_v5, %v2729_v30  ;;  %v2732_v11 = vmul.f32 %v2730_v29, %v2730_v29  ;;  %v2847_v5 = vld [vmem:[%s4868_s2 + $0x350] sm:$0xff] }
0x1627   :  { %v2860_v31 = vpack.c.bf16 %v2847_v5, %v2846_v12 }
0x1628   :  { %v2734_v13 = vsel %vm158_vm1, %v2732_v11, 0.0  ;;  %v2733_v35 = vmul.f32 %v2731_v17, %v2731_v17  ;;  %v2855_v11 = vld [vmem:[%s4868_s2 + $0x390] sm:$0xff] }
0x1629   :  { %2735 = vadd.xlane.f32.xlu0 %v2734_v13  ;;  %3550 = vmatpush3.bf16.msra.mxu1 %v2860_v31 }
0x162a   :  { %v2737_v23 = vsel %vm446_vm6, %v2733_v35, 0.0  ;;  %3551 = vmatprep.subr.bf16.mxu1 %v3776_v3 }
0x162b   :  { %2738 = vadd.xlane.f32.xlu1 %v2737_v23 }
0x162d   :  { %2914 = vadd.xlane.f32.xlu0 %v2913_v36  ;;  %3552 = vmatpush3.bf16.msra.mxu1 %v2861_v26 }
0x162e   :  { %3553 = vmatprep.subr.bf16.mxu1 %v3776_v3 }
0x1631   :  { %3554 = vmatpush3.bf16.msra.mxu1 %v2862_v15  ;;  %v2942_v15 = vld [vmem:[%s4868_s2 + $0x3a8] sm:$0x1] }
0x1632   :  { %3555 = vmatprep.subr.bf16.mxu1 %v3776_v3 }
0x16b6   :  { %v2736_v48 = vpop.xlane.xlu0 %2735 }
0x16b7   :  { %v2740_v49 = vmul.f32 0.015625, %v2736_v48 }
0x16b8   :  { %v2739_v50 = vpop.xlane.xlu1 %2738 }
0x16b9   :  { %v2742_v51 = vadd.f32 1e-05, %v2740_v49  ;;  %v2741_v52 = vmul.f32 0.015625, %v2739_v50 }
0x16ba   :  { %v2915_v0 = vpop.xlane.xlu0 %2914 }
0x16bb   :  { %3732 = vrsqrt.f32 %v2742_v51  ;;  %v2743_v55 = vadd.f32 1e-05, %v2741_v52  ;;  %v2916_v32 = vmul.f32 0.015625, %v2915_v0 }
0x16bd   :  { %3734 = vrsqrt.f32 %v2743_v55  ;;  %v2917_v54 = vsub.f32 %v1831_v22, %v2916_v32 }
0x16bf   :  { %v2918_v58 = vmul.f32 %v2917_v54, %v2917_v54 }
0x16c1   :  { %v2919_v33 = vsel %vm432_vm2, %v2918_v58, 0.0 }
0x16c2   :  { %2920 = vadd.xlane.f32.xlu0 %v2919_v33 }
0x16c5   :  { %v3733_v60 = vpop.eup %3732 }
0x16c6   :  { %v2746_v53 = vmul.f32 %v3733_v60, %v2730_v29  ;;  %v2853_v29 = vld [vmem:[%s4868_s2 + $0x380] sm:$0xff] }
0x16c7   :  { %v3735_v2 = vpop.eup %3734  ;;  %v2863_v30 = vpack.c.bf16 %v2853_v29, %v2852_v28  ;;  %v2958_v29 = vld [vmem:[%s4868_s2 + $0x3b0] sm:$0x1] }
0x16c8   :  { %v2752_v59 = vmul.f32 %v3058_v62, %v2746_v53  ;;  %v2747_v61 = vmul.f32 %v3735_v2, %v2731_v17  ;;  %v2854_v17 = vld [vmem:[%s4868_s2 + $0x388] sm:$0xff] }
0x16c9   :  { %3556 = vmatpush3.bf16.msra.mxu1 %v2863_v30  ;;  %v2864_v22 = vpack.c.bf16 %v2855_v11, %v2854_v17 }
0x16ca   :  { %v2753_v6 = vmul.f32 %v3058_v62, %v2747_v61  ;;  %v2758_v9 = vadd.f32 %v3059_v4, %v2752_v59  ;;  %3557 = vmatprep.subr.bf16.mxu1 %v3776_v3  ;;  %v2928_v3 = vld [vmem:[%s4868_s2 + $0x258] sm:$0x1] }
0x16cc   :  { %v2759_v16 = vadd.f32 %v3059_v4, %v2753_v6 }
0x16cd   :  { %3558 = vmatpush3.bf16.msra.mxu1 %v2864_v22  ;;  %v2933_v22 = vld [vmem:[%s4868_s2 + $0x260] sm:$0x1] }
0x16ce   :  { %v2768_v56 = vpack.c.bf16 %v2759_v16, %v2758_v9 }
0x16d0   :  { %3540 = vmatmul.mubr.msk.bf16.vlgmr.msra.gmra.mrb[64].mxu0 %vm158_vm1, %v2768_v56  ;;  %v3062_v56 = vld [vmem:[%s4868_s2 + $0x398] ss:$0 sm:$0xff] }
0x174f   :  { %v2921_v13 = vpop.xlane.xlu0 %2920 }
0x1750   :  { %v2922_v35 = vmul.f32 0.015625, %v2921_v13 }
0x1752   :  { %v2923_v23 = vadd.f32 1e-06, %v2922_v35 }
0x1754   :  { %3736 = vrsqrt.f32 %v2923_v23 }
0x175e   :  { %v3737_v36 = vpop.eup %3736 }
0x175f   :  { %v2925_v39 = vmul.f32 %v3737_v36, %v2917_v54  ;;  %v2963_v36 = vld [vmem:[%s4868_s2 + $0x3b8] sm:$0x1] }
0x1761   :  { %v2926_v42 = vmul.f32 %v2925_v39, %v2911_v63 }
0x1763   :  { %v2927_v1 = vadd.f32 %v2926_v42, %v2912_v41 }
0x1765   :  { %v2929_v40 = vmul.f32 %v2928_v3, %v2927_v1 }
0x1767   :  { %v2930_v37 = vsel %vm432_vm2, %v2929_v40, 0.0 }
0x1768   :  { %2931 = vadd.xlane.f32.xlu0 %v2930_v37 }
0x17a3   :  { %v2815_v38 = vpop.f32.mrb[64].mxu0 }
0x17a4   :  { %v2816_v45 = vadd.f32 %v3060_v43, %v2815_v38  ;;  %v3541_v46 = vpop.f32.mrb[65].mxu0 }
0x17a5   :  { %v2818_v47 = vpop.f32.mrb[66].mxu0 }
0x17a6   :  { %v2824_v48 = vmul.f32 0.044715, %v2816_v45  ;;  %v2819_v49 = vadd.f32 %v3060_v43, %v2818_v47  ;;  %v3542_v50 = vpop.f32.mrb[67].mxu0  ;;  %v2822_v59 = vmul.f32 0.5, %v2816_v45 }
0x17a8   :  { %v2826_v51 = vmul.f32 %v2824_v48, %v2816_v45  ;;  %v2825_v52 = vmul.f32 0.044715, %v2819_v49  ;;  %v2823_v61 = vmul.f32 0.5, %v2819_v49 }
0x17aa   :  { %v2828_v0 = vmul.f32 %v2826_v51, %v2816_v45  ;;  %v2827_v55 = vmul.f32 %v2825_v52, %v2819_v49 }
0x17ac   :  { %v2830_v32 = vadd.f32 %v2828_v0, %v2816_v45  ;;  %v2829_v54 = vmul.f32 %v2827_v55, %v2819_v49 }
0x17ae   :  { %v2832_v58 = vmul.f32 0.7978846, %v2830_v32  ;;  %v2831_v33 = vadd.f32 %v2829_v54, %v2819_v49 }
0x17b0   :  { %3738 = vtanh.f32 %v2832_v58  ;;  %v2833_v60 = vmul.f32 0.7978846, %v2831_v33 }
0x17b2   :  { %3740 = vtanh.f32 %v2833_v60 }
0x17ba   :  { %v3739_v62 = vpop.eup %3738 }
0x17bb   :  { %v2836_v53 = vadd.f32 1.0, %v3739_v62 }
0x17bc   :  { %v3741_v2 = vpop.eup %3740 }
0x17bd   :  { %v2837_v4 = vadd.f32 1.0, %v3741_v2  ;;  %v2838_v6 = vmul.f32 %v2836_v53, %v2822_v59 }
0x17bf   :  { %v2839_v9 = vmul.f32 %v2837_v4, %v2823_v61 }
0x17c1   :  { %v2856_v16 = vpack.c.bf16 %v2839_v9, %v2838_v6 }
0x17c3   :  { %3560 = vmatmul.mubr.bf16.vlgmr.msra.gmra.mrb[76].mxu1 %v2856_v16 }
0x17f5   :  { %v2932_v13 = vpop.xlane.xlu0 %2931 }
0x17f6   :  { %v2934_v35 = vadd.f32 %v2933_v22, %v2932_v13 }
0x17f8   :  { %v3063_v23 = vmul.f32 -1.442695, %v2934_v35 }
0x1896   :  { %v2904_v57 = vpop.f32.mrb[76].mxu1 }
0x1897   :  { %v2905_v19 = vadd.f32 %v3062_v56, %v2904_v57  ;;  %v3561_v20 = vpop.f32.mrb[77].mxu1 }
0x1898   :  { %v2907_v24 = vpop.f32.mrb[78].mxu1 }
0x1899   :  { %v2910_v44 = vadd.f32 %v4715_v25, %v2905_v19  ;;  %v3562_v10 = vpop.f32.mrb[79].mxu1  ;;  %v2941_v25 = vld [vmem:[%s4868_s2 + $0x3a0] sm:$0x1]  ;;  %s3752_s2 = scalar_lea.vmem %s2982_s23, 16 }
0x189a   :  { %p3753_p0 = scmp.ne.s32.totalorder %s2982_s23, %s3752_s2  ;;  %p3758_p2 = scmp.lt.s32.totalorder %s3756_s30, %s3752_s2 }
0x189b   :  { %v2943_v8 = vsel %vm432_vm2, %v2910_v44, 0.0 }
0x189c   :  { %2944 = vadd.xlane.f32.xlu1 %v2943_v8  ;;  %p3759_p3 = por %p3758_p2, %p3757_p1 }
0x189e   :  { %p3760_p4 = pnand %p3759_p3, %p3753_p0 }
0x1929   :  { %v2945_v27 = vpop.xlane.xlu1 %2944 }
0x192a   :  { %v2946_v21 = vmul.f32 0.015625, %v2945_v27 }
0x192c   :  { %v2947_v12 = vsub.f32 %v2910_v44, %v2946_v21 }
0x192e   :  { %v2948_v5 = vmul.f32 %v2947_v12, %v2947_v12 }
0x1930   :  { %v2949_v31 = vsel %vm432_vm2, %v2948_v5, 0.0 }
0x1931   :  { %2950 = vadd.xlane.f32.xlu1 %v2949_v31 }
0x19be   :  { %v2951_v18 = vpop.xlane.xlu1 %2950 }
0x19bf   :  { %v2952_v34 = vmul.f32 0.015625, %v2951_v18 }
0x19c1   :  { %v2953_v7 = vadd.f32 1e-06, %v2952_v34 }
0x19c3   :  { %3742 = vrsqrt.f32 %v2953_v7 }
0x19c4   :  { %3744 = vpow2.f32 %v3063_v23 }
0x19cd   :  { %v3743_v26 = vpop.eup %3742 }
0x19ce   :  { %v2955_v14 = vmul.f32 %v3743_v26, %v2947_v12  ;;  %v3745_v42 = vpop.eup %3744 }
0x19cf   :  { %v2938_v3 = vadd.f32 1.0, %v3745_v42 }
0x19d0   :  { %v2956_v28 = vmul.f32 %v2955_v14, %v2941_v25 }
0x19d2   :  { %v2957_v30 = vadd.f32 %v2956_v28, %v2942_v15 }
0x19d4   :  { %v2959_v17 = vmul.f32 %v2958_v29, %v2957_v30 }
0x19d6   :  { %v2960_v11 = vsel %vm432_vm2, %v2959_v17, 0.0 }
0x19d7   :  { %2961 = vadd.xlane.f32.xlu1 %v2960_v11 }
0x1a64   :  { %v2962_v63 = vpop.xlane.xlu1 %2961 }
0x1a65   :  { %v2964_v39 = vadd.f32 %v2963_v36, %v2962_v63 }
0x1a67   :  { %v3064_v41 = vmul.f32 -1.442695, %v2964_v39 }
0x1a69   :  { %3746 = vpow2.f32 %v3064_v41 }
0x1a6a   :  { %3748 = vrcp.f32 %v2938_v3 }
0x1a73   :  { %v3747_v1 = vpop.eup %3746 }
0x1a74   :  { %v2968_v40 = vadd.f32 1.0, %v3747_v1  ;;  %v3749_v37 = vpop.eup %3748 }
0x1a76   :  { %3750 = vrcp.f32 %v2968_v40 }
0x1a80   :  { %v3751_v43 = vpop.eup %3750 }
0x1a81   :  { %v2971_v38 = vadd.f32 %v3751_v43, %v3749_v37 }
0x1a83   :  { %v2972_v45 = vmul.f32 0.5, %v2971_v38 }
0x1a85   :  { %2974 = vst.msk [vmem:[#allocation4] sm:$0x1] %vm2973_vm14, %v2972_v45 }
0x1a86   :  { %3763 = shalt.err (!%p3760_p4)
}
0x1a87   :  { %s3764_s10 = scalar_lea.hbm %s4870_s4, 16 }
0x1a88   :  { %p3765_p5 = scmp.ne.s32.totalorder %s4870_s4, %s3764_s10  ;;  %p3768_p6 = scmp.lt.u32.totalorder %s3764_s10, %s4870_s4 }
0x1a8a   :  { %p3770_p7 = pnand %p3768_p6, %p3765_p5 }
0x1a8c   :  { %3773 = shalt.err (!%p3770_p7)
}
0x1a8d   :  { %2984 = dma.vmem_to_hbm [thread:$0]  %s2982_s23, 16, %s4870_s4, [#allocation5]  }
0x1a8e   :  { %3774 = dma.done.wait [#allocation5], 16  }
0x1a8f   :  { %3775 = vsyncadd [#allocation5], 4294967280 }
0x1a90   :  { %2988 = vsyncpa [#allocation5], 1 }

</bundles_post_ra>
